<compile_context>
chip_gen: v6e
topology: v6e:2x2x1
jax: 0.10.0
libtpu: 0.0.40
codegen_flags: <defaults>
</compile_context>

<pallas_src>
import jax
import jax.numpy as jnp
from jax.experimental import pallas as pl
from jax.experimental.pallas import tpu as pltpu


# Logical (PyTorch) layer dims and their lane-dense padded counterparts.
DIMS = [(900, 600), (600, 400), (400, 200), (200, 6)]
PADDED_DIMS = [(900, 640), (640, 512), (512, 256), (256, 128)]
OUT_PAD = PADDED_DIMS[-1][1]   # 128: lane-dense final layer width
OUT_FEATS = DIMS[-1][1]        # 6:   real outputs
IN_FEATS = DIMS[0][0]          # 900


def _round_up(x, m):
    return (x + m - 1) // m * m


def mlp_kernel(x_ref,
               w1_ref, b1_ref,
               w2_ref, b2_ref,
               w3_ref, b3_ref,
               w4_ref, b4_ref,
               o_ref):
    # x arrives from HBM as f32 (single HBM pass); cast to bf16 in VMEM for MXU.
    h = x_ref[...].astype(jnp.bfloat16)

    # fc1..fc3: bf16 MXU operands, f32 accumulation, f32 bias+ReLU (v5e-safe),
    # recast to bf16 only as the next layer's MXU operand.
    for w_ref, b_ref in ((w1_ref, b1_ref), (w2_ref, b2_ref), (w3_ref, b3_ref)):
        z = jnp.dot(h, w_ref[...], preferred_element_type=jnp.float32) + b_ref[...]
        h = jnp.maximum(z, 0.0).astype(jnp.bfloat16)

    # fc4 (128 padded lanes) + sigmoid; the reciprocal runs on the EUP slot.
    z = jnp.dot(h, w4_ref[...], preferred_element_type=jnp.float32) + b4_ref[...]
    o_ref[...] = pl.reciprocal(1.0 + jnp.exp(-z), approx=True).astype(o_ref.dtype)


def _choose_m_tile(batch):
    # Big tiles amortize the ~0.35 us/grid-step overhead and keep the MXU fed;
    # cap at 512 (tiles + resident weights stay well under scoped VMEM on every
    # generation, including v7x's 64 MiB).
    m = min(512, _round_up(batch, 8))
    # Guarantee >=2 grid steps for batch>8 so v7x's two TensorCores both work.
    if _round_up(batch, m) // m < 2 and batch > 8:
        m = _round_up(pl.cdiv(batch, 2), 8)
    return m


def net_forward(x, params, *, m_tile=None):
    """x: (batch, 900) f32.  params: padded [(W bf16 (in,out), b f32 (1,out))]."""
    (w1, b1), (w2, b2), (w3, b3), (w4, b4) = params
    batch = x.shape[0]

    if m_tile is None:
        m_tile = _choose_m_tile(batch)
    m_tile = _round_up(m_tile, 8)
    padded = _round_up(batch, m_tile)
    n_tiles = padded // m_tile

    if padded != batch:
        x = jnp.pad(x, ((0, padded - batch), (0, 0)))

    weight_args = (w1, b1, w2, b2, w3, b3, w4, b4)
    # Constant index_map (0, 0): weights are DMA'd once and stay VMEM-resident
    # while batch tiles stream through the 1-D grid.
    weight_specs = [pl.BlockSpec(w.shape, lambda i: (0, 0)) for w in weight_args]

    flops = 2 * padded * sum(fi * fo for fi, fo in PADDED_DIMS)
    bytes_accessed = (
        x.size * x.dtype.itemsize
        + sum(int(w.size) * w.dtype.itemsize for w in weight_args)
        + padded * OUT_PAD * 2)
    cost = pl.CostEstimate(flops=flops,
                           transcendentals=padded * OUT_PAD,
                           bytes_accessed=bytes_accessed)

    out = pl.pallas_call(
        mlp_kernel,
        out_shape=jax.ShapeDtypeStruct((padded, OUT_PAD), jnp.bfloat16),
        grid_spec=pltpu.PrefetchScalarGridSpec(
            num_scalar_prefetch=0,
            grid=(n_tiles,),
            in_specs=[pl.BlockSpec((m_tile, IN_FEATS), lambda i: (i, 0))]
                     + weight_specs,
            out_specs=pl.BlockSpec((m_tile, OUT_PAD), lambda i: (i, 0)),
        ),
        compiler_params=pltpu.CompilerParams(
            dimension_semantics=("parallel",),
            vmem_limit_bytes=32 * 1024 * 1024),
        cost_estimate=cost,
    )(x, *weight_args)

    # Slice away the batch padding and the padded sigmoid(0)=0.5 lanes; the
    # trailing f32 cast touches only (batch, 6) elements.
    return out[:batch, :OUT_FEATS].astype(jnp.float32)


def init_linear(key, fan_in, fan_out, pad_in, pad_out):
    # Mirrors torch.nn.Linear default init on the TRUE fan_in/fan_out, then
    # zero-pads to lane-dense shapes (zero rows/cols keep the math identical).
    kw, kb = jax.random.split(key)
    bound = 1.0 / jnp.sqrt(fan_in)
    w = jax.random.uniform(kw, (fan_in, fan_out), jnp.float32, -bound, bound)
    b = jax.random.uniform(kb, (1, fan_out), jnp.float32, -bound, bound)
    w = jnp.pad(w, ((0, pad_in - fan_in), (0, pad_out - fan_out)))
    b = jnp.pad(b, ((0, 0), (0, pad_out - fan_out)))
    # Stored as (in, out) so the kernel does x @ W; weights bf16 (MXU operand
    # dtype), biases f32 (added after the f32-accumulated dot).
    return w.astype(jnp.bfloat16), b


def init_params(key):
    keys = jax.random.split(key, len(DIMS))
    return [init_linear(k, fi, fo, pfi, pfo)
            for k, (fi, fo), (pfi, pfo) in zip(keys, DIMS, PADDED_DIMS)]


if __name__ == "__main__":
    key = jax.random.PRNGKey(0)
    k_params, k_x = jax.random.split(key)

    params = init_params(k_params)
    batch = 40
    x = jax.random.normal(k_x, (batch, 900), dtype=jnp.float32)

    # Default tiling: batch 40 -> 2 tiles of 24 rows (both v7x cores get work).
    out = net_forward(x, params)
    out = jax.block_until_ready(out)
    assert out.shape == (batch, 6)

    # Plain-JAX reference matching the kernel's mixed precision (bf16 MXU
    # operands, f32 accumulate / epilogue, bf16 inter-layer activations).
    ref = x.astype(jnp.bfloat16).astype(jnp.float32)
    for i, (w, b) in enumerate(params):
        ref = ref @ w.astype(jnp.float32) + b
        if i < len(params) - 1:
            ref = jnp.maximum(ref, 0.0).astype(jnp.bfloat16).astype(jnp.float32)
        else:
            ref = jax.nn.sigmoid(ref)
    ref = ref[:, :OUT_FEATS]

    max_diff = jnp.max(jnp.abs(out - ref))
    assert jnp.allclose(out, ref, atol=2e-2), f"mismatch vs reference: {max_diff}"

    print("KERNEL_OK")
</pallas_src>

<mosaic_0001>
module attributes {stable_mosaic.version = 11 : i64} {
  func.func @mlp_kernel(%arg0: i32, %arg1: memref<24x900xf32, #tpu.memory_space<vmem>>, %arg2: memref<900x640xbf16, #tpu.memory_space<vmem>>, %arg3: memref<1x640xf32, #tpu.memory_space<vmem>>, %arg4: memref<640x512xbf16, #tpu.memory_space<vmem>>, %arg5: memref<1x512xf32, #tpu.memory_space<vmem>>, %arg6: memref<512x256xbf16, #tpu.memory_space<vmem>>, %arg7: memref<1x256xf32, #tpu.memory_space<vmem>>, %arg8: memref<256x128xbf16, #tpu.memory_space<vmem>>, %arg9: memref<1x128xf32, #tpu.memory_space<vmem>>, %arg10: memref<24x128xbf16, #tpu.memory_space<vmem>>) attributes {dimension_semantics = [#tpu.dimension_semantics<parallel>], iteration_bounds = array<i64: 2>, scalar_prefetch = 0 : i64, scratch_operands = 0 : i64, tpu.core_type = #tpu.core_type<tc>, window_params = [{transform_indices = @transform_0, window_bounds = array<i64: 24, 900>}, {pipeline_mode = #tpu.pipeline_mode<synchronous>, transform_indices = @transform_1, window_bounds = array<i64: 900, 640>}, {pipeline_mode = #tpu.pipeline_mode<synchronous>, transform_indices = @transform_2, window_bounds = array<i64: 1, 640>}, {pipeline_mode = #tpu.pipeline_mode<synchronous>, transform_indices = @transform_3, window_bounds = array<i64: 640, 512>}, {pipeline_mode = #tpu.pipeline_mode<synchronous>, transform_indices = @transform_4, window_bounds = array<i64: 1, 512>}, {pipeline_mode = #tpu.pipeline_mode<synchronous>, transform_indices = @transform_5, window_bounds = array<i64: 512, 256>}, {pipeline_mode = #tpu.pipeline_mode<synchronous>, transform_indices = @transform_6, window_bounds = array<i64: 1, 256>}, {pipeline_mode = #tpu.pipeline_mode<synchronous>, transform_indices = @transform_7, window_bounds = array<i64: 256, 128>}, {pipeline_mode = #tpu.pipeline_mode<synchronous>, transform_indices = @transform_8, window_bounds = array<i64: 1, 128>}, {transform_indices = @transform_9, window_bounds = array<i64: 24, 128>}]} {
    %c0 = arith.constant 0 : index
    %c0_0 = arith.constant 0 : index
    %0 = vector.load %arg1[%c0, %c0_0] : memref<24x900xf32, #tpu.memory_space<vmem>>, vector<24x900xf32>
    %1 = arith.truncf %0 : vector<24x900xf32> to vector<24x900xbf16>
    %c0_1 = arith.constant 0 : index
    %c0_2 = arith.constant 0 : index
    %2 = vector.load %arg2[%c0_1, %c0_2] : memref<900x640xbf16, #tpu.memory_space<vmem>>, vector<900x640xbf16>
    %cst = arith.constant dense<0.000000e+00> : vector<24x640xf32>
    %3 = tpu.matmul %1, %2, %cst {dimension_numbers = #tpu.dot_dimension_numbers<[1], [0], [0], [1], [0, 0, 1, 1], [], []>} : vector<24x900xbf16>, vector<900x640xbf16>, vector<24x640xf32> -> vector<24x640xf32>
    %c0_3 = arith.constant 0 : index
    %c0_4 = arith.constant 0 : index
    %4 = vector.load %arg3[%c0_3, %c0_4] : memref<1x640xf32, #tpu.memory_space<vmem>>, vector<1x640xf32>
    %5 = vector.broadcast %4 : vector<1x640xf32> to vector<24x640xf32>
    %6 = arith.addf %3, %5 : vector<24x640xf32>
    %cst_5 = arith.constant 0.000000e+00 : f32
    %7 = vector.broadcast %cst_5 : f32 to vector<24x640xf32>
    %8 = arith.maximumf %6, %7 : vector<24x640xf32>
    %9 = arith.truncf %8 : vector<24x640xf32> to vector<24x640xbf16>
    %c0_6 = arith.constant 0 : index
    %c0_7 = arith.constant 0 : index
    %10 = vector.load %arg4[%c0_6, %c0_7] : memref<640x512xbf16, #tpu.memory_space<vmem>>, vector<640x512xbf16>
    %cst_8 = arith.constant dense<0.000000e+00> : vector<24x512xf32>
    %11 = tpu.matmul %9, %10, %cst_8 {dimension_numbers = #tpu.dot_dimension_numbers<[1], [0], [0], [1], [0, 0, 1, 1], [], []>} : vector<24x640xbf16>, vector<640x512xbf16>, vector<24x512xf32> -> vector<24x512xf32>
    %c0_9 = arith.constant 0 : index
    %c0_10 = arith.constant 0 : index
    %12 = vector.load %arg5[%c0_9, %c0_10] : memref<1x512xf32, #tpu.memory_space<vmem>>, vector<1x512xf32>
    %13 = vector.broadcast %12 : vector<1x512xf32> to vector<24x512xf32>
    %14 = arith.addf %11, %13 : vector<24x512xf32>
    %cst_11 = arith.constant 0.000000e+00 : f32
    %15 = vector.broadcast %cst_11 : f32 to vector<24x512xf32>
    %16 = arith.maximumf %14, %15 : vector<24x512xf32>
    %17 = arith.truncf %16 : vector<24x512xf32> to vector<24x512xbf16>
    %c0_12 = arith.constant 0 : index
    %c0_13 = arith.constant 0 : index
    %18 = vector.load %arg6[%c0_12, %c0_13] : memref<512x256xbf16, #tpu.memory_space<vmem>>, vector<512x256xbf16>
    %cst_14 = arith.constant dense<0.000000e+00> : vector<24x256xf32>
    %19 = tpu.matmul %17, %18, %cst_14 {dimension_numbers = #tpu.dot_dimension_numbers<[1], [0], [0], [1], [0, 0, 1, 1], [], []>} : vector<24x512xbf16>, vector<512x256xbf16>, vector<24x256xf32> -> vector<24x256xf32>
    %c0_15 = arith.constant 0 : index
    %c0_16 = arith.constant 0 : index
    %20 = vector.load %arg7[%c0_15, %c0_16] : memref<1x256xf32, #tpu.memory_space<vmem>>, vector<1x256xf32>
    %21 = vector.broadcast %20 : vector<1x256xf32> to vector<24x256xf32>
    %22 = arith.addf %19, %21 : vector<24x256xf32>
    %cst_17 = arith.constant 0.000000e+00 : f32
    %23 = vector.broadcast %cst_17 : f32 to vector<24x256xf32>
    %24 = arith.maximumf %22, %23 : vector<24x256xf32>
    %25 = arith.truncf %24 : vector<24x256xf32> to vector<24x256xbf16>
    %c0_18 = arith.constant 0 : index
    %c0_19 = arith.constant 0 : index
    %26 = vector.load %arg8[%c0_18, %c0_19] : memref<256x128xbf16, #tpu.memory_space<vmem>>, vector<256x128xbf16>
    %cst_20 = arith.constant dense<0.000000e+00> : vector<24x128xf32>
    %27 = tpu.matmul %25, %26, %cst_20 {dimension_numbers = #tpu.dot_dimension_numbers<[1], [0], [0], [1], [0, 0, 1, 1], [], []>} : vector<24x256xbf16>, vector<256x128xbf16>, vector<24x128xf32> -> vector<24x128xf32>
    %c0_21 = arith.constant 0 : index
    %c0_22 = arith.constant 0 : index
    %28 = vector.load %arg9[%c0_21, %c0_22] : memref<1x128xf32, #tpu.memory_space<vmem>>, vector<1x128xf32>
    %29 = vector.broadcast %28 : vector<1x128xf32> to vector<24x128xf32>
    %30 = arith.addf %27, %29 : vector<24x128xf32>
    %cst_23 = arith.constant 0.000000e+00 : f32
    %31 = vector.broadcast %cst_23 : f32 to vector<24x128xf32>
    %32 = arith.subf %31, %30 : vector<24x128xf32>
    %33 = math.exp %32 : vector<24x128xf32>
    %cst_24 = arith.constant 1.000000e+00 : f32
    %34 = vector.broadcast %cst_24 : f32 to vector<24x128xf32>
    %35 = arith.addf %34, %33 : vector<24x128xf32>
    %36 = tpu.reciprocal %35 {approx = true} : vector<24x128xf32> -> vector<24x128xf32>
    %37 = arith.truncf %36 : vector<24x128xf32> to vector<24x128xbf16>
    %c0_25 = arith.constant 0 : index
    %c0_26 = arith.constant 0 : index
    %38 = vector.load %arg10[%c0_25, %c0_26] : memref<24x128xbf16, #tpu.memory_space<vmem>>, vector<24x128xbf16>
    tpu.vector_store %arg10[%c0_25, %c0_26], %37 {strides = array<i32>} : memref<24x128xbf16, #tpu.memory_space<vmem>>, vector<24x128xbf16>,
    return
  }
  func.func @transform_0(%arg0: i32) -> (i32, i32) {
    %c0_i32 = arith.constant 0 : i32
    %c0_i32_0 = arith.constant 0 : i32
    return %arg0, %c0_i32 : i32, i32
  }
  func.func @transform_1(%arg0: i32) -> (i32, i32) {
    %c0_i32 = arith.constant 0 : i32
    %c0_i32_0 = arith.constant 0 : i32
    %c0_i32_1 = arith.constant 0 : i32
    return %c0_i32, %c0_i32_0 : i32, i32
  }
  func.func @transform_2(%arg0: i32) -> (i32, i32) {
    %c0_i32 = arith.constant 0 : i32
    %c0_i32_0 = arith.constant 0 : i32
    %c0_i32_1 = arith.constant 0 : i32
    return %c0_i32, %c0_i32_0 : i32, i32
  }
  func.func @transform_3(%arg0: i32) -> (i32, i32) {
    %c0_i32 = arith.constant 0 : i32
    %c0_i32_0 = arith.constant 0 : i32
    %c0_i32_1 = arith.constant 0 : i32
    return %c0_i32, %c0_i32_0 : i32, i32
  }
  func.func @transform_4(%arg0: i32) -> (i32, i32) {
    %c0_i32 = arith.constant 0 : i32
    %c0_i32_0 = arith.constant 0 : i32
    %c0_i32_1 = arith.constant 0 : i32
    return %c0_i32, %c0_i32_0 : i32, i32
  }
  func.func @transform_5(%arg0: i32) -> (i32, i32) {
    %c0_i32 = arith.constant 0 : i32
    %c0_i32_0 = arith.constant 0 : i32
    %c0_i32_1 = arith.constant 0 : i32
    return %c0_i32, %c0_i32_0 : i32, i32
  }
  func.func @transform_6(%arg0: i32) -> (i32, i32) {
    %c0_i32 = arith.constant 0 : i32
    %c0_i32_0 = arith.constant 0 : i32
    %c0_i32_1 = arith.constant 0 : i32
    return %c0_i32, %c0_i32_0 : i32, i32
  }
  func.func @transform_7(%arg0: i32) -> (i32, i32) {
    %c0_i32 = arith.constant 0 : i32
    %c0_i32_0 = arith.constant 0 : i32
    %c0_i32_1 = arith.constant 0 : i32
    return %c0_i32, %c0_i32_0 : i32, i32
  }
  func.func @transform_8(%arg0: i32) -> (i32, i32) {
    %c0_i32 = arith.constant 0 : i32
    %c0_i32_0 = arith.constant 0 : i32
    %c0_i32_1 = arith.constant 0 : i32
    return %c0_i32, %c0_i32_0 : i32, i32
  }
  func.func @transform_9(%arg0: i32) -> (i32, i32) {
    %c0_i32 = arith.constant 0 : i32
    %c0_i32_0 = arith.constant 0 : i32
    return %arg0, %c0_i32 : i32, i32
  }
}

</mosaic_0001>

<bundles_post_ra>
// kernel: tpu_custom_call.1
= control target key start
LH: loop header
LB: loop body
LE: loop exit
PB: predicated region body
PF: predicated region fallthrough
CT: control target
= control target key end

     0   :  { %s7695_s0 = inlined_call_operand.hbm [shape: f32[48,900], index: 0, kind: input, shape index: {}]   ;;  %s7696_s1 = inlined_call_operand.hbm [shape: bf16[900,640], index: 1, kind: input, shape index: {}]   ;;  %s7697_s2 = inlined_call_operand.hbm [shape: f32[1,640], index: 2, kind: input, shape index: {}]   ;;  %s7698_s3 = inlined_call_operand.hbm [shape: bf16[640,512], index: 3, kind: input, shape index: {}]   ;;  %s7699_s4 = inlined_call_operand.hbm [shape: f32[1,512], index: 4, kind: input, shape index: {}]   ;;  %s7700_s5 = inlined_call_operand.hbm [shape: bf16[512,256], index: 5, kind: input, shape index: {}]   ;;  %s7701_s6 = inlined_call_operand.hbm [shape: f32[1,256], index: 6, kind: input, shape index: {}]   ;;  %s7702_s7 = inlined_call_operand.hbm [shape: bf16[256,128], index: 7, kind: input, shape index: {}]   ;;  %s7703_s8 = inlined_call_operand.hbm [shape: f32[1,128], index: 8, kind: input, shape index: {}]   ;;  %s7704_s9 = inlined_call_operand.hbm [shape: bf16[48,128], index: 9, kind: output, shape index: {}]  }
   0x1   :  { %7710 = sst [smem:[#allocation24_spill]] %s7696_s1 }
   0x2   :  { %7711 = sst [smem:[#allocation25_spill]] %s7697_s2 }
   0x3   :  { %7712 = sst [smem:[#allocation26_spill]] %s7698_s3 }
   0x4   :  { %14 = vsyncpa [#allocation3], 0 }
   0x5   :  { %16 = vsyncpa [#allocation3 + $0x1], 0 }
   0x6   :  { %17 = vsyncpa [#allocation6], 0 }
   0x7   :  { %18 = vsyncpa [#allocation9], 0 }
   0x8   :  { %19 = vsyncpa [#allocation12], 0 }
   0x9   :  { %20 = vsyncpa [#allocation15], 0 }
   0xa   :  { %21 = vsyncpa [#allocation4], 0 }
   0xb   :  { %23 = vsyncpa [#allocation4 + $0x1], 0  ;;  %s7175_s30 = smov 0   ;;  %s7177_s10 = smov 0  }
   0xc   :  { %s7179_s11 = smov 0   ;;  %s7181_s12 = smov 0  }
   0xd LB: > { %s7103_s13 = smov [#allocation5]   ;;  %s7196_s15 = sadd.s32 4294967295, %s7101_s12   ;;  %s7101_s12 = sphi %s7181_s12, %s7741_s12   ;;  %s7097_s11 = sphi %s7179_s11, %s7740_s11   ;;  %s7093_s10 = sphi %s7177_s10, %s7739_s10   ;;  %s7089_s30 = sphi %s7175_s30, %s7738_s30  }
   0xe   : > { %s266_s14 = sshll.u32 %s7103_s13, 4  ;;  %p5180_p0 = scmp.ge.s32.totalorder %s7101_s12, 1  ;;  %s267_s14 = int_to_ptr.vmem [resolvable:$true] %s266_s14 }
   0xf   : > { %p7705_p1 = scmp.eq.s32.totalorder %s7196_s15, 0  ;;  %p254_p2 = scmp.lt.s32.totalorder %s7101_s12, 3 }
  0x10   : > { %s7104_s17 = smov [#allocation8]   ;;  %s7105_s20 = smov [#allocation11]  }
  0x11   : > { %p7201_p3 = pnand %p5180_p0, %p254_p2  ;;  %s290_s18 = sshll.u32 %s7104_s17, 4  ;;  %s7214_s18 = int_to_ptr.vmem [resolvable:$true] %s290_s18 }
  0x12   : > { %s7216_s21 = sshll.u32 %s7105_s20, 4  ;;  %s6796_s23 = scalar_lea.vmem %s267_s14, 36160  ;;  %s315_s21 = int_to_ptr.vmem [resolvable:$true] %s7216_s21 }
  0x13   : > { %s7713_s16 = scalar_select %p7201_p3, 1, 0 }
  0x14   : > { %p5920_p5 = pneg %p7201_p3  ;;  %p6797_p8 = scmp.ne.s32.totalorder %s267_s14, %s6796_s23 }
  0x15   : > { %p6804_p11 = scmp.lt.s32.totalorder %s267_s14, %s267_s14  ;;  %p6805_p12 = scmp.lt.s32.totalorder %s6796_s23, %s6796_s23 }
  0x16   : > { %p7210_p6 = pnand %p5920_p5, %p7705_p1 }
  0x17   : > { %p6806_p13 = por %p6805_p12, %p6804_p11 }
  0x18   : > { %p7220_p7 = pneg %p7210_p6 }
  0x1a   : > { %p6799_p9 = pnand %p6797_p8, %p7220_p7 }
  0x1c   : > { %p6800_p10 = pneg %p6799_p9 }
  0x1e   : > { %p6807_p0 = pnand %p6806_p13, %p6800_p10 }
  0x20   : > { %6810 = shalt.err (!%p6807_p0)
}
  0x21   : > { %s7106_s24 = smov 320   ;;  %s7107_s25 = smov 20  }
  0x22   : > { %s7716_s1 = sld [smem:[#allocation24_spill]]  ;;  %s6822_s28 = scalar_lea.vmem %s7214_s18, 20480 }
  0x23   : > { %p6823_p2 = scmp.ne.s32.totalorder %s7214_s18, %s6822_s28  ;;  %p6830_p9 = scmp.lt.s32.totalorder %s7214_s18, %s7214_s18 }
  0x24   : > { %p6831_p10 = scmp.lt.s32.totalorder %s6822_s28, %s6822_s28 }
  0x25   : > { %p6825_p5 = pnand %p6823_p2, %p7220_p7 }
  0x26   : > { %p6832_p11 = por %p6831_p10, %p6830_p9 }
  0x27   : > { %p6826_p8 = pneg %p6825_p5 }
  0x28   : > { %5923 = dma.hbm_to_vmem [thread:$0]  (!%p7210_p6), %s7716_s1, 36160, %s267_s14, [#allocation6], %s7106_s24, %s7106_s24, %s7107_s25  }
  0x29   : > { %p6833_p12 = pnand %p6832_p11, %p6826_p8 }
  0x2b   : > { %6836 = shalt.err (!%p6833_p12)
}
  0x2c   : > { %s7108_s29 = smov 256   ;;  %s7109_s13 = smov 16  }
  0x2d   : > { %s7717_s3 = sld [smem:[#allocation26_spill]]  ;;  %s6848_s20 = scalar_lea.vmem %s315_s21, 8192 }
  0x2e   : > { %p6849_p13 = scmp.ne.s32.totalorder %s315_s21, %s6848_s20  ;;  %p6856_p5 = scmp.lt.s32.totalorder %s315_s21, %s315_s21 }
  0x2f   : > { %p6857_p8 = scmp.lt.s32.totalorder %s6848_s20, %s6848_s20 }
  0x30   : > { %p6851_p0 = pnand %p6849_p13, %p7220_p7 }
  0x31   : > { %p6858_p9 = por %p6857_p8, %p6856_p5 }
  0x32   : > { %p6852_p2 = pneg %p6851_p0 }
  0x33   : > { %5929 = dma.hbm_to_vmem [thread:$0]  (!%p7210_p6), %s7717_s3, 20480, %s7214_s18, [#allocation9], %s7108_s29, %s7108_s29, %s7109_s13  }
  0x34   : > { %p6859_p10 = pnand %p6858_p9, %p6852_p2 }
  0x36   : > { %6862 = shalt.err (!%p6859_p10)
}
  0x37   : > { %s7110_s23 = smov 128   ;;  %s7111_s24 = smov 8  }
  0x38   : > { %5935 = dma.hbm_to_vmem [thread:$0]  (!%p7210_p6), %s7700_s5, 8192, %s315_s21, [#allocation12], %s7110_s23, %s7110_s23, %s7111_s24  }
  0x39   : > { %s7112_s18 = smov [#allocation14]  }
  0x3a   : > { %s338_s27 = sshll.u32 %s7112_s18, 4  ;;  %s339_s27 = int_to_ptr.vmem [resolvable:$true] %s338_s27 }
  0x3b   : > { %s6874_s28 = scalar_lea.vmem %s339_s27, 2048  ;;  %p6882_p0 = scmp.lt.s32.totalorder %s339_s27, %s339_s27 }
  0x3c   : > { %p6875_p11 = scmp.ne.s32.totalorder %s339_s27, %s6874_s28  ;;  %p6883_p2 = scmp.lt.s32.totalorder %s6874_s28, %s6874_s28 }
  0x3e   : > { %p6877_p12 = pnand %p6875_p11, %p7220_p7  ;;  %p6884_p5 = por %p6883_p2, %p6882_p0 }
  0x40   : > { %p6878_p13 = pneg %p6877_p12 }
  0x42   : > { %p6885_p8 = pnand %p6884_p5, %p6878_p13 }
  0x44   : > { %6888 = shalt.err (!%p6885_p8)
}
  0x45   : > { %s7707_s29 = smov 64   ;;  %s7114_s13 = smov 4  }
  0x46   : > { %5941 = dma.hbm_to_vmem [thread:$0]  (!%p7210_p6), %s7702_s7, 2048, %s339_s27, [#allocation15], %s7707_s29, %s7707_s29, %s7114_s13  }
  0x47   : > { %s7115_s14 = smov [#allocation7]   ;;  %s7116_s23 = smov [#allocation10]  }
  0x48   : > { %s280_s20 = sshll.u32 %s7115_s14, 4  ;;  %s304_s24 = sshll.u32 %s7116_s23, 4  ;;  %s281_s20 = int_to_ptr.vmem [resolvable:$true] %s280_s20  ;;  %s305_s24 = int_to_ptr.vmem [resolvable:$true] %s304_s24 }
  0x49   : > { %s6900_s25 = scalar_lea.vmem %s281_s20, 80  ;;  %s6907_s26 = scalar_lea.vmem %s281_s20, 96 }
  0x4a   : > { %p6901_p9 = scmp.ne.s32.totalorder %s281_s20, %s6900_s25  ;;  %p6908_p12 = scmp.lt.s32.totalorder %s281_s20, %s281_s20 }
  0x4b   : > { %p6909_p13 = scmp.lt.s32.totalorder %s6907_s26, %s6900_s25 }
  0x4c   : > { %p6903_p10 = pnand %p6901_p9, %p7220_p7 }
  0x4d   : > { %p6910_p0 = por %p6909_p13, %p6908_p12 }
  0x4e   : > { %p6904_p11 = pneg %p6903_p10 }
  0x50   : > { %p6911_p2 = pnand %p6910_p0, %p6904_p11 }
  0x52   : > { %6914 = shalt.err (!%p6911_p2)
}
  0x53   : > { %s7718_s2 = sld [smem:[#allocation25_spill]]  ;;  %s6926_s28 = scalar_lea.vmem %s305_s24, 64 }
  0x54   : > { %p6927_p5 = scmp.ne.s32.totalorder %s305_s24, %s6926_s28  ;;  %p6934_p9 = scmp.lt.s32.totalorder %s305_s24, %s305_s24 }
  0x55   : > { %p6935_p10 = scmp.lt.s32.totalorder %s6926_s28, %s6926_s28 }
  0x56   : > { %p6929_p8 = pnand %p6927_p5, %p7220_p7 }
  0x57   : > { %p6936_p1 = por %p6935_p10, %p6934_p9 }
  0x58   : > { %p6930_p4 = pneg %p6929_p8 }
  0x59   : > { %5926 = dma.hbm_to_vmem [thread:$0]  (!%p7210_p6), %s7718_s2, 80, %s281_s20, [#allocation6]  }
  0x5a   : > { %p6937_p3 = pnand %p6936_p1, %p6930_p4 }
  0x5c   : > { %6940 = shalt.err (!%p6937_p3)
}
  0x5d   : > { %5932 = dma.hbm_to_vmem [thread:$0]  (!%p7210_p6), %s7699_s4, 64, %s305_s24, [#allocation9]  }
  0x5e   : > { %s7117_s17 = smov [#allocation13]   ;;  %s7118_s20 = smov [#allocation16]  }
  0x5f   : > { %s328_s14 = sshll.u32 %s7117_s17, 4  ;;  %s352_s23 = sshll.u32 %s7118_s20, 4  ;;  %s329_s14 = int_to_ptr.vmem [resolvable:$true] %s328_s14  ;;  %s353_s23 = int_to_ptr.vmem [resolvable:$true] %s352_s23 }
  0x60   : > { %s6952_s25 = scalar_lea.vmem %s329_s14, 32  ;;  %p6960_p1 = scmp.lt.s32.totalorder %s329_s14, %s329_s14 }
  0x61   : > { %p6953_p11 = scmp.ne.s32.totalorder %s329_s14, %s6952_s25  ;;  %p6961_p3 = scmp.lt.s32.totalorder %s6952_s25, %s6952_s25 }
  0x63   : > { %p6955_p12 = pnand %p6953_p11, %p7220_p7  ;;  %p6962_p4 = por %p6961_p3, %p6960_p1 }
  0x65   : > { %p6956_p13 = pneg %p6955_p12 }
  0x67   : > { %p6963_p0 = pnand %p6962_p4, %p6956_p13 }
  0x69   : > { %6966 = shalt.err (!%p6963_p0)
}
  0x6a   : > { %5938 = dma.hbm_to_vmem [thread:$0]  (!%p7210_p6), %s7701_s6, 32, %s329_s14, [#allocation12]  }
  0x6b   : > { %s6978_s18 = scalar_lea.vmem %s353_s23, 16  ;;  %s6985_s27 = scalar_lea.vmem %s353_s23, 32 }
  0x6c   : > { %p6979_p2 = scmp.ne.s32.totalorder %s353_s23, %s6978_s18  ;;  %p6986_p9 = scmp.lt.s32.totalorder %s353_s23, %s353_s23 }
  0x6d   : > { %p6987_p10 = scmp.lt.s32.totalorder %s6985_s27, %s6978_s18 }
  0x6e   : > { %p6981_p5 = pnand %p6979_p2, %p7220_p7 }
  0x6f   : > { %p6988_p11 = por %p6987_p10, %p6986_p9 }
  0x70   : > { %p6982_p8 = pneg %p6981_p5 }
  0x72   : > { %p6989_p12 = pnand %p6988_p11, %p6982_p8 }
  0x74   : > { %6992 = shalt.err (!%p6989_p12)
}
  0x75   : > { %5944 = dma.hbm_to_vmem [thread:$0]  (!%p7210_p6), %s7703_s8, 16, %s353_s23, [#allocation15]  }
  0x76   : > { %s5179_s22 = sadd.s32 4294967294, %s7101_s12   ;;  %s7290_s19 = sadd.s32 1, %s7101_s12  }
  0x77   : > { %s33_s21 = ssub.s32 %s7101_s12, %s7290_s19  ;;  %s36_s17 = sadd.s32 1, %s7097_s11 }
  0x78   : > { %p34_p7 = scmp.eq.s32.totalorder %s33_s21, 0  ;;  %p43_p13 = scmp.ne.s32.totalorder %s7097_s11, %s7093_s10 }
  0x79   : > { %p44_p1 = scmp.eq.s32.totalorder %s7101_s12, 0  ;;  %p49_p3 = scmp.ne.s32.totalorder %s7093_s10, %s7089_s30 }
  0x7a   : > { %s7301_s14 = scalar_select %p34_p7, %s7097_s11, %s36_s17  }
  0x7b   : > { %p45_p4 = por %p44_p1, %p43_p13  ;;  %p7719_p0 = scmp.eq.s32.totalorder %s7196_s15, 0 }
  0x7c   : > { %p241_p6 = scmp.eq.s32.totalorder %s7196_s15, 1  ;;  %p247_p5 = scmp.eq.s32.totalorder %s5179_s22, 1 }
  0x7d   : > { %p7305_p2 = por %p7719_p0, %p49_p3  ;;  %p5961_p8 = scmp.lt.s32.totalorder %s7101_s12, 2 }
  0x7e   : > { %s363_s23 = sand.u32 1, %s7097_s11   ;;  %p7312_p9 = por %p241_p6, %p43_p13 }
  0x7f   : > { %s7720_s20 = scalar_select %p7305_p2, 1, 0 }
  0x80   : > { %s7721_s25 = scalar_select %p7312_p9, 1, 0 }
  0x81   : > { %p7316_p10 = por %p247_p5, %p49_p3  ;;  %s5881_s24 = smul.u32 192, %s363_s23 }
  0x82   : > { %s5752_s18 = smul.u32 3072, %s7101_s12  ;;  %p7321_p11 = pnand %p5961_p8, %p45_p4 }
  0x83   : > { %s7722_s26 = scalar_select %p7316_p10, 1, 0 }
  0x84   : > { %s7328_s22 = scalar_lea.hbm %s7695_s0, %s5752_s18  ;;  %s367_s21 = scalar_lea.vmem [#allocation2], %s5881_s24 }
  0x85   : > { %s375_s17 = sshll.u32 %s367_s21, 4  ;;  %s7332_s29 = scalar_lea.sflag [#allocation3], %s363_s23  ;;  %s7330_s17 = int_to_ptr.vmem [resolvable:$true] %s375_s17 }
  0x86   : > { %s6993_s1 = scalar_lea.hbm %s7328_s22, 3072  ;;  %p6995_p7 = pneg %p7321_p11 }
  0x87   : > { %p6994_p12 = scmp.ne.s32.totalorder %s7328_s22, %s6993_s1  ;;  %s6998_s18 = scalar_lea.hbm %s7695_s0, 6144 }
  0x88   : > { %p6999_p3 = scmp.lt.s32.totalorder %s7328_s22, %s7695_s0  ;;  %p7000_p4 = scmp.lt.s32.totalorder %s6998_s18, %s6993_s1 }
  0x89   : > { %p6996_p13 = pnand %p6995_p7, %p6994_p12 }
  0x8a   : > { %p7001_p0 = por %p7000_p4, %p6999_p3 }
  0x8b   : > { %p6997_p1 = pneg %p6996_p13 }
  0x8d   : > { %p7002_p6 = pnand %p7001_p0, %p6997_p1 }
  0x8f   : > { %7005 = shalt.err (!%p7002_p6)
}
  0x90   : > { %s7006_s23 = scalar_lea.vmem %s7330_s17, 3072  ;;  %s7119_s24 = smov [#allocation2]  }
  0x91   : > { %p7007_p5 = scmp.ne.s32.totalorder %s7330_s17, %s7006_s23  ;;  %s7011_s21 = sshll.u32 %s7119_s24, 4  ;;  %s7012_s21 = int_to_ptr.vmem [resolvable:$false] %s7011_s21 }
  0x92   : > { %s7013_s2 = scalar_lea.vmem %s7012_s21, 6144  ;;  %p7014_p13 = scmp.lt.s32.totalorder %s7330_s17, %s7012_s21 }
  0x93   : > { %p7009_p8 = pnand %p7007_p5, %p6995_p7  ;;  %p7015_p10 = scmp.lt.s32.totalorder %s7013_s2, %s7006_s23 }
  0x95   : > { %p7010_p12 = pneg %p7009_p8  ;;  %p7016_p9 = por %p7015_p10, %p7014_p13 }
  0x97   : > { %p7017_p2 = pnand %p7016_p9, %p7010_p12 }
  0x99   : > { %7020 = shalt.err (!%p7017_p2)
}
  0x9a   : > { %s7120_s1 = smov 1024   ;;  %s7724_s3 = smov 64  }
  0x9b   : > { %5948 = dma.hbm_to_vmem [thread:$0]  (!%p7321_p11), %s7328_s22, 3072, %s7330_s17, %s7332_s29, %s7120_s1, %s7120_s1, %s7724_s3  }
  0x9c   : > { %p7725_p7 = scmp.ne.s32.totalorder %s7713_s16, 0 }
  0x9d   : > { %s7357_s28 = sand.u32 (!%p7725_p7), 1, %s7093_s10   ;;  %p7726_p2 = scmp.ne.s32.totalorder (!%p7725_p7), %s7720_s20, 0 }
  0x9e   : > { %387 = sbr.rel (%p7725_p7) target bundleno = 1412 (0x584), region = 56  ;;  %s390_s13 = scalar_lea.sflag (!%p7725_p7), [#allocation3], %s7357_s28 }
  0x9f   : > { %s5882_s18 = smul.u32 (!%p7725_p7), 192, %s7357_s28 }
  0xa1   : > { %s7361_s23 = scalar_lea.vmem (!%p7725_p7), [#allocation2], %s5882_s18 }
  0xa3   : > { %7064 = dma.done.wait (%p7726_p2), %s390_s13, 3072  }
  0xa4   : > { %7066 = vsyncadd (%p7726_p2), %s390_s13, 4294964224  ;;  %p7727_p9 = scmp.eq.s32.totalorder %s7196_s15, 0 }
  0xa6   : > { %7068 = dma.done.wait (%p7727_p9), [#allocation6], 36240   ;;  %p7728_p10 = pmov %p7727_p9 }
  0xa7   : > { %p7729_p11 = pmov %p7727_p9 }
  0xa8   : > { %7070 = vsyncadd (%p7728_p10), [#allocation6], 4294931056 }
  0xa9   : > { %7072 = dma.done.wait (%p7729_p11), [#allocation9], 20544   ;;  %p7730_p1 = pmov %p7727_p9 }
  0xab   : > { %7074 = vsyncadd (%p7730_p1), [#allocation9], 4294946752  ;;  %p7731_p3 = pmov %p7730_p1 }
  0xac   : > { %p7732_p4 = pmov %p7730_p1 }
  0xad   : > { %7076 = dma.done.wait (%p7731_p3), [#allocation12], 8224  }
  0xae   : > { %7078 = vsyncadd (%p7732_p4), [#allocation12], 4294959072  ;;  %p7733_p0 = pmov %p7730_p1 }
  0xb0   : > { %7080 = dma.done.wait (%p7733_p0), [#allocation15], 2064   ;;  %p7734_p6 = pmov %p7733_p0 }
  0xb1   : > { %v6023_v0 = vld [vmem:[#allocation5 + $0x11c] ss:$20 sps:$4 sm:$0xff]   ;;  %v6027_v2 = vld [vmem:[#allocation5 + $0x118] ss:$20 sps:$4 sm:$0xff]   ;;  %v6029_v4 = vld [vmem:[#allocation5 + $0xf4] ss:$20 sps:$4 sm:$0xff]  }
  0xb2   : > { %7082 = vsyncadd (%p7734_p6), [#allocation15], 4294965232  ;;  %v6025_v1 = vld [vmem:[#allocation5 + $0x39c] ss:$20 sps:$4 sm:$0xff]   ;;  %2361 = vmatprep.subr.bf16.mxu0 %v6023_v0  ;;  %v6028_v3 = vld [vmem:[#allocation5 + $0x398] ss:$20 sps:$4 sm:$0xff]  }
  0xb3   : > { %2412 = vmatprep.subr.bf16.mxu1 %v6025_v1  ;;  %2362 = vmatpush1.bf16.msra.mxu0 %v6027_v2  ;;  %v6031_v5 = vld [vmem:[#allocation5 + $0x374] ss:$20 sps:$4 sm:$0xff]   ;;  %v6033_v6 = vld [vmem:[#allocation5 + $0xf0] ss:$20 sps:$4 sm:$0xff]   ;;  %v6035_v8 = vld [vmem:[#allocation5 + $0xcc] ss:$20 sps:$4 sm:$0xff]  }
  0xb4   : > { %2413 = vmatpush1.bf16.msra.mxu1 %v6028_v3  ;;  %2363 = vmatprep.subr.bf16.mxu0 %v6029_v4  ;;  %v6034_v7 = vld [vmem:[#allocation5 + $0x370] ss:$20 sps:$4 sm:$0xff]   ;;  %v6037_v9 = vld [vmem:[#allocation5 + $0x34c] ss:$20 sps:$4 sm:$0xff]   ;;  %v6039_v10 = vld [vmem:[#allocation5 + $0xc8] ss:$20 sps:$4 sm:$0xff]  }
  0xb5   : > { %2414 = vmatprep.subr.bf16.mxu1 %v6031_v5  ;;  %v6040_v11 = vld [vmem:[#allocation5 + $0x348] ss:$20 sps:$4 sm:$0xff]   ;;  %v6041_v12 = vld [vmem:[#allocation5 + $0xa4] ss:$20 sps:$4 sm:$0xff]   ;;  %v6045_v14 = vld [vmem:[#allocation5 + $0xa0] ss:$20 sps:$4 sm:$0xff]  }
  0xb6   : > { %v6043_v13 = vld [vmem:[#allocation5 + $0x324] ss:$20 sps:$4 sm:$0xff]   ;;  %v6046_v15 = vld [vmem:[#allocation5 + $0x320] ss:$20 sps:$4 sm:$0xff]   ;;  %v6047_v16 = vld [vmem:[#allocation5 + $0x7c] ss:$20 sps:$4 sm:$0xff]  }
  0xb7   : > { %2364 = vmatpush1.bf16.msra.mxu0 %v6033_v6  ;;  %v6049_v17 = vld [vmem:[#allocation5 + $0x2fc] ss:$20 sps:$4 sm:$0xff]   ;;  %v6051_v18 = vld [vmem:[#allocation5 + $0x78] ss:$20 sps:$4 sm:$0xff]   ;;  %v6053_v20 = vld [vmem:[#allocation5 + $0x54] ss:$20 sps:$4 sm:$0xff]  }
  0xb8   : > { %2415 = vmatpush1.bf16.msra.mxu1 %v6034_v7  ;;  %2365 = vmatprep.subr.bf16.mxu0 %v6035_v8  ;;  %v6052_v19 = vld [vmem:[#allocation5 + $0x2f8] ss:$20 sps:$4 sm:$0xff]   ;;  %v6055_v21 = vld [vmem:[#allocation5 + $0x2d4] ss:$20 sps:$4 sm:$0xff]   ;;  %v6057_v22 = vld [vmem:[#allocation5 + $0x50] ss:$20 sps:$4 sm:$0xff]  }
  0xb9   : > { %2416 = vmatprep.subr.bf16.mxu1 %v6037_v9  ;;  %v6058_v23 = vld [vmem:[#allocation5 + $0x2d0] ss:$20 sps:$4 sm:$0xff]   ;;  %v6059_v24 = vld [vmem:[#allocation5 + $0x2c] ss:$20 sps:$4 sm:$0xff]   ;;  %v6063_v26 = vld [vmem:[#allocation5 + $0x28] ss:$20 sps:$4 sm:$0xff]  }
  0xba   : > { %v6061_v25 = vld [vmem:[#allocation5 + $0x2ac] ss:$20 sps:$4 sm:$0xff]   ;;  %v6064_v27 = vld [vmem:[#allocation5 + $0x2a8] ss:$20 sps:$4 sm:$0xff]   ;;  %v6065_v28 = vld [vmem:[#allocation5 + $0x4] ss:$20 sps:$4 sm:$0xff]  }
  0xbb   : > { %2366 = vmatpush1.bf16.msra.mxu0 %v6039_v10  ;;  %v6067_v29 = vld [vmem:[#allocation5 + $0x284] ss:$20 sps:$4 sm:$0xff]   ;;  %v6069_v30 = vld [vmem:[#allocation5] ss:$20 sps:$4 sm:$0xff]   ;;  %v6071_v32 = vld [vmem:[#allocation5 + $0x25c] ss:$20 sps:$4 sm:$0xff]  }
  0xbc   : > { %2417 = vmatpush1.bf16.msra.mxu1 %v6040_v11  ;;  %2367 = vmatprep.subr.bf16.mxu0 %v6041_v12  ;;  %v6070_v31 = vld [vmem:[#allocation5 + $0x280] ss:$20 sps:$4 sm:$0xff]   ;;  %v6073_v33 = vld [vmem:[#allocation5 + $0x4dc] ss:$20 sps:$4 sm:$0xff]   ;;  %v6075_v34 = vld [vmem:[#allocation5 + $0x258] ss:$20 sps:$4 sm:$0xff]  }
  0xbd   : > { %2418 = vmatprep.subr.bf16.mxu1 %v6043_v13  ;;  %v6076_v35 = vld [vmem:[#allocation5 + $0x4d8] ss:$20 sps:$4 sm:$0xff]   ;;  %v6077_v36 = vld [vmem:[#allocation5 + $0x234] ss:$20 sps:$4 sm:$0xff]   ;;  %v6081_v38 = vld [vmem:[#allocation5 + $0x230] ss:$20 sps:$4 sm:$0xff]  }
  0xbe   : > { %v6079_v37 = vld [vmem:[#allocation5 + $0x4b4] ss:$20 sps:$4 sm:$0xff]   ;;  %v6082_v39 = vld [vmem:[#allocation5 + $0x4b0] ss:$20 sps:$4 sm:$0xff]   ;;  %v6083_v40 = vld [vmem:[#allocation5 + $0x20c] ss:$20 sps:$4 sm:$0xff]  }
  0xbf   : > { %2368 = vmatpush1.bf16.msra.mxu0 %v6045_v14  ;;  %v6085_v41 = vld [vmem:[#allocation5 + $0x48c] ss:$20 sps:$4 sm:$0xff]   ;;  %v6087_v42 = vld [vmem:[#allocation5 + $0x208] ss:$20 sps:$4 sm:$0xff]   ;;  %v6089_v44 = vld [vmem:[#allocation5 + $0x1e4] ss:$20 sps:$4 sm:$0xff]  }
  0xc0   : > { %2419 = vmatpush1.bf16.msra.mxu1 %v6046_v15  ;;  %2369 = vmatprep.subr.bf16.mxu0 %v6047_v16  ;;  %v6088_v43 = vld [vmem:[#allocation5 + $0x488] ss:$20 sps:$4 sm:$0xff]   ;;  %v6091_v45 = vld [vmem:[#allocation5 + $0x464] ss:$20 sps:$4 sm:$0xff]   ;;  %v6093_v50 = vld [vmem:[#allocation5 + $0x1e0] ss:$20 sps:$4 sm:$0xff]  }
  0xc1   : > { %2420 = vmatprep.subr.bf16.mxu1 %v6049_v17  ;;  %v464_v46 = vld [vmem:[%s7361_s23 + $0x8] sm:$0xff]  ;;  %v466_v48 = vld [vmem:[%s7361_s23 + $0x18] sm:$0xff]  ;;  %v6094_v51 = vld [vmem:[#allocation5 + $0x460] ss:$20 sps:$4 sm:$0xff]   ;;  %vm2338_vm0 = vcmask 31744   ;;  %vm2345_vm1 = vcmask 1041408  }
  0xc2   : > { %v472_v47 = vld [vmem:[%s7361_s23 + $0x48] sm:$0xff]  ;;  %v474_v49 = vld [vmem:[%s7361_s23 + $0x58] sm:$0xff]  ;;  %v6105_v60 = vld [vmem:[#allocation5 + $0x190] ss:$20 sps:$4 sm:$0xff]   ;;  %s5883_s16 = smul.u32 12, %s7357_s28  ;;  %p7735_p8 = scmp.ne.s32.totalorder %s7721_s25, 0 }
  0xc3   : > { %2370 = vmatpush1.bf16.msra.mxu0 %v6051_v18  ;;  %v6095_v52 = vld [vmem:[#allocation5 + $0x1bc] ss:$20 sps:$4 sm:$0xff]   ;;  %v7387_v53 = vpack.c.bf16 %v472_v47, %v464_v46  ;;  %v7389_v54 = vpack.c.bf16 %v474_v49, %v466_v48  ;;  %v6099_v56 = vld [vmem:[#allocation5 + $0x1b8] ss:$20 sps:$4 sm:$0xff]   ;;  %v6101_v58 = vld [vmem:[#allocation5 + $0x194] ss:$20 sps:$4 sm:$0xff]  }
  0xc4   : > { %2421 = vmatpush1.bf16.msra.mxu1 %v6052_v19  ;;  %2371 = vmatprep.subr.bf16.mxu0 %v6053_v20  ;;  %v6097_v55 = vld [vmem:[#allocation5 + $0x43c] ss:$20 sps:$4 sm:$0xff]   ;;  %v6100_v57 = vld [vmem:[#allocation5 + $0x438] ss:$20 sps:$4 sm:$0xff]   ;;  %v6103_v59 = vld [vmem:[#allocation5 + $0x414] ss:$20 sps:$4 sm:$0xff]  }
  0xc5   : > { %2422 = vmatprep.subr.bf16.mxu1 %v6055_v21  ;;  %2393 = vmatprep.mubr.bf16.mxu0 %v7387_v53  ;;  %v6106_v61 = vld [vmem:[#allocation5 + $0x410] ss:$20 sps:$4 sm:$0xff]   ;;  %v6107_v62 = vld [vmem:[#allocation5 + $0x16c] ss:$20 sps:$4 sm:$0xff]   ;;  %v6111_v0 = vld [vmem:[#allocation5 + $0x168] ss:$20 sps:$4 sm:$0xff]  }
  0xc6   : > { %2444 = vmatprep.mubr.bf16.mxu1 %v7389_v54  ;;  %v6109_v63 = vld [vmem:[#allocation5 + $0x3ec] ss:$20 sps:$4 sm:$0xff]   ;;  %v6112_v1 = vld [vmem:[#allocation5 + $0x3e8] ss:$20 sps:$4 sm:$0xff]   ;;  %v6113_v2 = vld [vmem:[#allocation5 + $0x144] ss:$20 sps:$4 sm:$0xff]  }
  0xc7   : > { %2372 = vmatpush1.bf16.msra.mxu0 %v6057_v22  ;;  %v6115_v3 = vld [vmem:[#allocation5 + $0x3c4] ss:$20 sps:$4 sm:$0xff]   ;;  %v6117_v4 = vld [vmem:[#allocation5 + $0x140] ss:$20 sps:$4 sm:$0xff]   ;;  %v6121_v10 = vld [vmem:[#allocation5 + $0x61c] ss:$20 sps:$4 sm:$0xff]  }
  0xc8   : > { %2423 = vmatpush1.bf16.msra.mxu1 %v6058_v23  ;;  %2373 = vmatprep.subr.bf16.mxu0 %v6059_v24  ;;  %v6118_v5 = vld [vmem:[#allocation5 + $0x3c0] ss:$20 sps:$4 sm:$0xff]   ;;  %v6124_v11 = vld [vmem:[#allocation5 + $0x89c] ss:$20 sps:$4 sm:$0xff]   ;;  %v6119_v12 = vld [vmem:[#allocation5 + $0x618] ss:$20 sps:$4 sm:$0xff]  }
  0xc9   : > { %2424 = vmatprep.subr.bf16.mxu1 %v6061_v25  ;;  %v463_v6 = vld [vmem:[%s7361_s23] sm:$0xff]  ;;  %v465_v8 = vld [vmem:[%s7361_s23 + $0x10] sm:$0xff]  ;;  %v482_v15 = vld [vmem:[%s7361_s23 + $0x98] sm:$0xff]  ;;  %s5746_s29 = smul.u32 192, %s7196_s15  ;;  %s459_s20 = scalar_lea.vmem [#allocation17], %s5883_s16 }
  0xca   : > { %v471_v7 = vld [vmem:[%s7361_s23 + $0x40] sm:$0xff]  ;;  %v473_v9 = vld [vmem:[%s7361_s23 + $0x50] sm:$0xff]  ;;  %v6122_v16 = vld [vmem:[#allocation5 + $0x898] ss:$20 sps:$4 sm:$0xff]   ;;  %v7403_v21 = vpack.c.bf16 %v482_v15, %v482_v15  ;;  %s5030_s27 = sshll.u32 %s459_s20, 4  ;;  %s5017_s15 = scalar_lea.sflag [#allocation4], %s7357_s28  ;;  %s7652_s27 = int_to_ptr.vmem [resolvable:$true] %s5030_s27 }
  0xcb   : > { %2374 = vmatpush1.bf16.msra.mxu0 %v6063_v26  ;;  %v7397_v13 = vpack.c.bf16 %v471_v7, %v463_v6  ;;  %v7399_v14 = vpack.c.bf16 %v473_v9, %v465_v8  ;;  %v6127_v17 = vld [vmem:[#allocation5 + $0x5f4] ss:$20 sps:$4 sm:$0xff]   ;;  %v6125_v20 = vld [vmem:[#allocation5 + $0x5f0] ss:$20 sps:$4 sm:$0xff]   ;;  %v6133_v26 = vld [vmem:[#allocation5 + $0x5cc] ss:$20 sps:$4 sm:$0xff]   ;;  %s7650_s24 = scalar_lea.hbm %s7704_s9, %s5746_s29 }
  0xcc   : > { %2425 = vmatpush1.bf16.msra.mxu1 %v6064_v27  ;;  %2375 = vmatprep.subr.bf16.mxu0 %v6065_v28  ;;  %v480_v18 = vld [vmem:[%s7361_s23 + $0x88] sm:$0xff]  ;;  %v6128_v23 = vld [vmem:[#allocation5 + $0x870] ss:$20 sps:$4 sm:$0xff]   ;;  %v486_v8 = vld [vmem:[%s7361_s23 + $0xb8] sm:$0xff]  ;;  %s7021_s21 = scalar_lea.vmem %s7652_s27, 192  ;;  %s7122_s2 = smov [#allocation17]  }
  0xcd   : > { %2426 = vmatprep.subr.bf16.mxu1 %v6067_v29  ;;  %v6130_v19 = vld [vmem:[#allocation5 + $0x874] ss:$20 sps:$4 sm:$0xff]   ;;  %v7405_v22 = vpack.c.bf16 %v480_v18, %v480_v18  ;;  %v479_v25 = vld [vmem:[%s7361_s23 + $0x80] sm:$0xff]  ;;  %v7437_v15 = vpack.c.bf16 %v486_v8, %v486_v8  ;;  %p7022_p5 = scmp.ne.s32.totalorder %s7652_s27, %s7021_s21  ;;  %s7025_s1 = sshll.u32 %s7122_s2, 4  ;;  %s7026_s1 = int_to_ptr.vmem [resolvable:$false] %s7025_s1 }
  0xce   : > { %v481_v24 = vld [vmem:[%s7361_s23 + $0x90] sm:$0xff]  ;;  %v6136_v27 = vld [vmem:[#allocation5 + $0x84c] ss:$20 sps:$4 sm:$0xff]   ;;  %v6131_v28 = vld [vmem:[#allocation5 + $0x5c8] ss:$20 sps:$4 sm:$0xff]   ;;  %s7027_s3 = scalar_lea.vmem %s7026_s1, 384  ;;  %p7028_p7 = scmp.lt.s32.totalorder %s7652_s27, %s7026_s1 }
  0xcf   : > { %2376 = vmatpush1.bf16.msra.mxu0 %v6069_v30  ;;  %v7413_v29 = vpack.c.bf16 %v481_v24, %v481_v24  ;;  %v7415_v30 = vpack.c.bf16 %v479_v25, %v479_v25  ;;  %v6152_v46 = vld [vmem:[#allocation5 + $0x7d0] ss:$20 sps:$4 sm:$0xff]   ;;  %v6157_v47 = vld [vmem:[#allocation5 + $0x52c] ss:$20 sps:$4 sm:$0xff]   ;;  %v6155_v49 = vld [vmem:[#allocation5 + $0x528] ss:$20 sps:$4 sm:$0xff]   ;;  %p7023_p12 = pnand %p7022_p5, %p7735_p8  ;;  %p7029_p2 = scmp.lt.s32.totalorder %s7027_s3, %s7021_s21 }
  0xd0   : > { %2427 = vmatpush1.bf16.msra.mxu1 %v6070_v31  ;;  %2377 = vmatprep.subr.bf16.mxu0 %v6071_v32  ;;  %v470_v31 = vld [vmem:[%s7361_s23 + $0x38] sm:$0xff]  ;;  %v6160_v48 = vld [vmem:[#allocation5 + $0x7ac] ss:$20 sps:$4 sm:$0xff]   ;;  %v6172_v6 = vld [vmem:[#allocation5 + $0x730] ss:$20 sps:$4 sm:$0xff]  }
  0xd1   : > { %2428 = vmatprep.subr.bf16.mxu1 %v6073_v33  ;;  %v478_v32 = vld [vmem:[%s7361_s23 + $0x78] sm:$0xff]  ;;  %v6175_v9 = vld [vmem:[#allocation5 + $0x120] ss:$20 sps:$4 sm:$0xff]   ;;  %v6187_v24 = vld [vmem:[#allocation5 + $0xd0] ss:$20 sps:$4 sm:$0xff]   ;;  %p7024_p13 = pneg %p7023_p12  ;;  %p7030_p9 = por %p7029_p2, %p7028_p7 }
  0xd2   : > { %v6134_v33 = vld [vmem:[#allocation5 + $0x848] ss:$20 sps:$4 sm:$0xff]   ;;  %v6186_v18 = vld [vmem:[#allocation5 + $0x6e4] ss:$20 sps:$4 sm:$0xff]  }
  0xd3   : > { %2378 = vmatpush2.bf16.msra.mxu0 %v6075_v34  ;;  %v6139_v34 = vld [vmem:[#allocation5 + $0x5a4] ss:$20 sps:$4 sm:$0xff]   ;;  %v6192_v25 = vld [vmem:[#allocation5 + $0x6bc] ss:$20 sps:$4 sm:$0xff]   ;;  %p7031_p10 = pnand %p7030_p9, %p7024_p13 }
  0xd4   : > { %2429 = vmatpush2.bf16.msra.mxu1 %v6076_v35  ;;  %2379 = vmatprep.subr.bf16.mxu0 %v6077_v36  ;;  %v6142_v35 = vld [vmem:[#allocation5 + $0x824] ss:$20 sps:$4 sm:$0xff]   ;;  %v7419_v36 = vpack.c.bf16 %v478_v32, %v470_v31  ;;  %v6198_v31 = vld [vmem:[#allocation5 + $0x694] ss:$20 sps:$4 sm:$0xff]  }
  0xd5   : > { %2430 = vmatprep.subr.bf16.mxu1 %v6079_v37  ;;  %v6137_v37 = vld [vmem:[#allocation5 + $0x5a0] ss:$20 sps:$4 sm:$0xff]   ;;  %v6201_v32 = vld [vmem:[#allocation5 + $0x84] ss:$20 sps:$4 sm:$0xff]  }
  0xd6   : > { %v6243_v8 = vld [vmem:[#allocation5 + $0x304] ss:$20 sps:$4 sm:$0xff]  }
  0xd7   : > { %2380 = vmatpush2.bf16.msra.mxu0 %v6081_v38  ;;  %v6140_v38 = vld [vmem:[#allocation5 + $0x820] ss:$20 sps:$4 sm:$0xff]  }
  0xd8   : > { %2431 = vmatpush2.bf16.msra.mxu1 %v6082_v39  ;;  %2381 = vmatprep.subr.bf16.mxu0 %v6083_v40  ;;  %v6145_v39 = vld [vmem:[#allocation5 + $0x57c] ss:$20 sps:$4 sm:$0xff]  }
  0xd9   : > { %2432 = vmatprep.subr.bf16.mxu1 %v6085_v41  ;;  %v6148_v40 = vld [vmem:[#allocation5 + $0x7fc] ss:$20 sps:$4 sm:$0xff]   ;;  %v6143_v41 = vld [vmem:[#allocation5 + $0x578] ss:$20 sps:$4 sm:$0xff]  }
  0xdb   : > { %2382 = vmatpush2.bf16.msra.mxu0 %v6087_v42  ;;  %v6146_v42 = vld [vmem:[#allocation5 + $0x7f8] ss:$20 sps:$4 sm:$0xff]  }
  0xdc   : > { %2433 = vmatpush2.bf16.msra.mxu1 %v6088_v43  ;;  %2383 = vmatprep.subr.bf16.mxu0 %v6089_v44  ;;  %v6151_v43 = vld [vmem:[#allocation5 + $0x554] ss:$20 sps:$4 sm:$0xff]  }
  0xdd   : > { %2434 = vmatprep.subr.bf16.mxu1 %v6091_v45  ;;  %v6154_v44 = vld [vmem:[#allocation5 + $0x7d4] ss:$20 sps:$4 sm:$0xff]   ;;  %v6149_v45 = vld [vmem:[#allocation5 + $0x550] ss:$20 sps:$4 sm:$0xff]  }
  0xdf   : > { %2384 = vmatpush2.bf16.msra.mxu0 %v6093_v50  ;;  %v6158_v50 = vld [vmem:[#allocation5 + $0x7a8] ss:$20 sps:$4 sm:$0xff]  }
  0xe0   : > { %2435 = vmatpush2.bf16.msra.mxu1 %v6094_v51  ;;  %2385 = vmatprep.subr.bf16.mxu0 %v6095_v52  ;;  %v6163_v51 = vld [vmem:[#allocation5 + $0x504] ss:$20 sps:$4 sm:$0xff]  }
  0xe1   : > { %2436 = vmatprep.subr.bf16.mxu1 %v6097_v55  ;;  %v6166_v52 = vld [vmem:[#allocation5 + $0x784] ss:$20 sps:$4 sm:$0xff]   ;;  %v468_v55 = vld [vmem:[%s7361_s23 + $0x28] sm:$0xff] }
  0xe3   : > { %2386 = vmatpush2.bf16.msra.mxu0 %v6099_v56  ;;  %v839_v56 = vld [vmem:[#allocation5 + $0x8c0] sm:$0x33] }
  0xe4   : > { %2437 = vmatpush2.bf16.msra.mxu1 %v6100_v57  ;;  %2387 = vmatprep.subr.bf16.mxu0 %v6101_v58  ;;  %v476_v57 = vld [vmem:[%s7361_s23 + $0x68] sm:$0xff]  ;;  %v6161_v58 = vld [vmem:[#allocation5 + $0x500] ss:$20 sps:$4 sm:$0xff]  }
  0xe5   : > { %2438 = vmatprep.subr.bf16.mxu1 %v6103_v59  ;;  %v7427_v59 = vpack.c.bf16 %v476_v57, %v468_v55  ;;  %v6225_v55 = vld [vmem:[#allocation5 + $0x37c] ss:$20 sps:$4 sm:$0xff]  }
  0xe7   : > { %2388 = vmatpush2.bf16.msra.mxu0 %v6105_v60  ;;  %v6164_v60 = vld [vmem:[#allocation5 + $0x780] ss:$20 sps:$4 sm:$0xff]  }
  0xe8   : > { %2439 = vmatpush2.bf16.msra.mxu1 %v6106_v61  ;;  %2389 = vmatprep.subr.bf16.mxu0 %v6107_v62  ;;  %v6169_v61 = vld [vmem:[#allocation5 + $0x75c] ss:$20 sps:$4 sm:$0xff]   ;;  %v5482_v62 = vcombine.high %v839_v56, %v839_v56 }
  0xe9   : > { %2440 = vmatprep.subr.bf16.mxu1 %v6109_v63  ;;  %v5481_v63 = vcombine.low %v839_v56, %v839_v56  ;;  %v6220_v56 = vld [vmem:[#allocation5 + $0x260] ss:$20 sps:$4 sm:$0xff]  }
  0xeb   : > { %2390 = vmatpush2.bf16.msra.mxu0 %v6111_v0  ;;  %v6167_v0 = vld [vmem:[#allocation5 + $0x758] ss:$20 sps:$4 sm:$0xff]  }
  0xec   : > { %2441 = vmatpush2.bf16.msra.mxu1 %v6112_v1  ;;  %2391 = vmatprep.subr.bf16.mxu0 %v6113_v2  ;;  %v6174_v1 = vld [vmem:[#allocation5 + $0x734] ss:$20 sps:$4 sm:$0xff]  }
  0xed   : > { %2442 = vmatprep.subr.bf16.mxu1 %v6115_v3  ;;  %v469_v2 = vld [vmem:[%s7361_s23 + $0x30] sm:$0xff] }
  0xee   : > { %v477_v3 = vld [vmem:[%s7361_s23 + $0x70] sm:$0xff] }
  0xef   : > { %2392 = vmatpush2.bf16.msra.mxu0 %v6117_v4  ;;  %v2347_v4 = vsel %vm2345_vm1, %v5481_v63, 0  ;;  %v7434_v7 = vpack.c.bf16 %v477_v3, %v469_v2  ;;  %v6234_v2 = vld [vmem:[#allocation5 + $0x214] ss:$20 sps:$4 sm:$0xff]   ;;  %v6237_v3 = vld [vmem:[#allocation5 + $0x32c] ss:$20 sps:$4 sm:$0xff]  }
  0xf0   : > { %2443 = vmatpush2.bf16.msra.mxu1 %v6118_v5  ;;  %2463 = vmatprep.subr.bf16.mxu0 %v6121_v10  ;;  %v6177_v5 = vld [vmem:[#allocation5 + $0x124] ss:$20 sps:$4 sm:$0xff]   ;;  %v6180_v10 = vld [vmem:[#allocation5 + $0x70c] ss:$20 sps:$4 sm:$0xff]  }
  0xf1   : > { %2514 = vmatprep.subr.bf16.mxu1 %v6124_v11  ;;  %v6183_v11 = vld [vmem:[#allocation5 + $0xfc] ss:$20 sps:$4 sm:$0xff]  }
  0xf2   : > { %2394 = vmatmul.mubr.bf16.vlgmr.msra.gmra.mxu0 %v7397_v13 }
  0xf3   : > { %2445 = vmatmul.mubr.bf16.vlgmr.msra.gmra.mxu1 %v7399_v14  ;;  %2464 = vmatpush1.bf16.msra.mxu0 %v6119_v12  ;;  %v6178_v12 = vld [vmem:[#allocation5 + $0x708] ss:$20 sps:$4 sm:$0xff]  }
  0xf4   : > { %2515 = vmatpush1.bf16.msra.mxu1 %v6122_v16  ;;  %2465 = vmatprep.subr.bf16.mxu0 %v6127_v17  ;;  %v6181_v16 = vld [vmem:[#allocation5 + $0xf8] ss:$20 sps:$4 sm:$0xff]   ;;  %v485_v17 = vld [vmem:[%s7361_s23 + $0xb0] sm:$0xff] }
  0xf5   : > { %2516 = vmatprep.subr.bf16.mxu1 %v6130_v19  ;;  %2454 = vmatprep.mubr.bf16.mxu1 %v7403_v21  ;;  %v6189_v19 = vld [vmem:[#allocation5 + $0xd4] ss:$20 sps:$4 sm:$0xff]  }
  0xf6   : > { %2403 = vmatprep.mubr.bf16.mxu0 %v7405_v22 }
  0xf7   : > { %2466 = vmatpush1.bf16.msra.mxu0 %v6125_v20  ;;  %v6184_v20 = vld [vmem:[#allocation5 + $0x6e0] ss:$20 sps:$4 sm:$0xff]  }
  0xf8   : > { %2517 = vmatpush1.bf16.msra.mxu1 %v6128_v23  ;;  %2467 = vmatprep.subr.bf16.mxu0 %v6133_v26  ;;  %v7443_v23 = vpack.c.bf16 %v485_v17, %v485_v17  ;;  %v6195_v26 = vld [vmem:[#allocation5 + $0xac] ss:$20 sps:$4 sm:$0xff]  }
  0xf9   : > { %2518 = vmatprep.subr.bf16.mxu1 %v6136_v27  ;;  %v6190_v27 = vld [vmem:[#allocation5 + $0x6b8] ss:$20 sps:$4 sm:$0xff]  }
  0xfa   : > { %2404 = vmatmul.mubr.bf16.gmra.mxu0 %v7415_v30  ;;  %v6247_v17 = vld [vmem:[#allocation5 + $0x2d8] ss:$20 sps:$4 sm:$0xff]  }
  0xfb   : > { %2455 = vmatmul.mubr.bf16.gmra.mxu1 %v7413_v29  ;;  %2468 = vmatpush1.bf16.msra.mxu0 %v6131_v28  ;;  %v6193_v28 = vld [vmem:[#allocation5 + $0xa8] ss:$20 sps:$4 sm:$0xff]  }
  0xfc   : > { %2519 = vmatpush1.bf16.msra.mxu1 %v6134_v33  ;;  %2469 = vmatprep.subr.bf16.mxu0 %v6139_v34  ;;  %v6196_v33 = vld [vmem:[#allocation5 + $0x690] ss:$20 sps:$4 sm:$0xff]   ;;  %v6199_v34 = vld [vmem:[#allocation5 + $0x80] ss:$20 sps:$4 sm:$0xff]  }
  0xfd   : > { %2520 = vmatprep.subr.bf16.mxu1 %v6142_v35  ;;  %5487 = vmatprep.mubr.msk.bf16.mxu1 %vm2338_vm0, %v7419_v36  ;;  %v6204_v35 = vld [vmem:[#allocation5 + $0x66c] ss:$20 sps:$4 sm:$0xff]  }
  0xfe   : > { %2495 = vmatprep.mubr.bf16.mxu0 %v7427_v59 }
  0xff   : > { %2470 = vmatpush1.bf16.msra.mxu0 %v6137_v37  ;;  %v6207_v37 = vld [vmem:[#allocation5 + $0x5c] ss:$20 sps:$4 sm:$0xff]  }
 0x100   : > { %2521 = vmatpush1.bf16.msra.mxu1 %v6140_v38  ;;  %2471 = vmatprep.subr.bf16.mxu0 %v6145_v39  ;;  %v6202_v38 = vld [vmem:[#allocation5 + $0x668] ss:$20 sps:$4 sm:$0xff]   ;;  %v6205_v39 = vld [vmem:[#allocation5 + $0x58] ss:$20 sps:$4 sm:$0xff]  }
 0x101   : > { %2522 = vmatprep.subr.bf16.mxu1 %v6148_v40  ;;  %v6210_v40 = vld [vmem:[#allocation5 + $0x644] ss:$20 sps:$4 sm:$0xff]  }
 0x103   : > { %2472 = vmatpush1.bf16.msra.mxu0 %v6143_v41  ;;  %v6213_v41 = vld [vmem:[#allocation5 + $0x34] ss:$20 sps:$4 sm:$0xff]  }
 0x104   : > { %2523 = vmatpush1.bf16.msra.mxu1 %v6146_v42  ;;  %2473 = vmatprep.subr.bf16.mxu0 %v6151_v43  ;;  %v6208_v42 = vld [vmem:[#allocation5 + $0x640] ss:$20 sps:$4 sm:$0xff]   ;;  %v6211_v43 = vld [vmem:[#allocation5 + $0x30] ss:$20 sps:$4 sm:$0xff]  }
 0x105   : > { %2524 = vmatprep.subr.bf16.mxu1 %v6154_v44  ;;  %v467_v44 = vld [vmem:[%s7361_s23 + $0x20] sm:$0xff] }
 0x107   : > { %2474 = vmatpush1.bf16.msra.mxu0 %v6149_v45  ;;  %v475_v45 = vld [vmem:[%s7361_s23 + $0x60] sm:$0xff] }
 0x108   : > { %2525 = vmatpush1.bf16.msra.mxu1 %v6152_v46  ;;  %2475 = vmatprep.subr.bf16.mxu0 %v6157_v47  ;;  %v6216_v46 = vld [vmem:[#allocation5 + $0xc] ss:$20 sps:$4 sm:$0xff]   ;;  %v6219_v47 = vld [vmem:[#allocation5 + $0x3a4] ss:$20 sps:$4 sm:$0xff]  }
 0x109   : > { %2526 = vmatprep.subr.bf16.mxu1 %v6160_v48  ;;  %v6214_v48 = vld [vmem:[#allocation5 + $0x8] ss:$20 sps:$4 sm:$0xff]  }
 0x10b   : > { %2476 = vmatpush1.bf16.msra.mxu0 %v6155_v49  ;;  %v7449_v49 = vpack.c.bf16 %v475_v45, %v467_v44  ;;  %v6282_v44 = vld [vmem:[#allocation5 + $0x46c] ss:$20 sps:$4 sm:$0xff]   ;;  %v6285_v45 = vld [vmem:[#allocation5 + $0x5d4] ss:$20 sps:$4 sm:$0xff]  }
 0x10c   : > { %2527 = vmatpush1.bf16.msra.mxu1 %v6158_v50  ;;  %2477 = vmatprep.subr.bf16.mxu0 %v6163_v51  ;;  %v484_v50 = vld [vmem:[%s7361_s23 + $0xa8] sm:$0xff]  ;;  %v6217_v51 = vld [vmem:[#allocation5 + $0x3a0] ss:$20 sps:$4 sm:$0xff]  }
 0x10d   : > { %2528 = vmatprep.subr.bf16.mxu1 %v6166_v52  ;;  %v6222_v52 = vld [vmem:[#allocation5 + $0x264] ss:$20 sps:$4 sm:$0xff]   ;;  %v7452_v57 = vpack.c.bf16 %v484_v50, %v484_v50  ;;  %v6291_v50 = vld [vmem:[#allocation5 + $0x5ac] ss:$20 sps:$4 sm:$0xff]  }
 0x10f   : > { %2478 = vmatpush1.bf16.msra.mxu0 %v6161_v58  ;;  %v6223_v58 = vld [vmem:[#allocation5 + $0x378] ss:$20 sps:$4 sm:$0xff]  }
 0x110   : > { %2529 = vmatpush1.bf16.msra.mxu1 %v6164_v60  ;;  %2479 = vmatprep.subr.bf16.mxu0 %v6169_v61  ;;  %v483_v60 = vld [vmem:[%s7361_s23 + $0xa0] sm:$0xff]  ;;  %v6228_v61 = vld [vmem:[#allocation5 + $0x23c] ss:$20 sps:$4 sm:$0xff]  }
 0x111   : > { %5486 = vmatprep.subr.msk.bf16.mxu1 %vm2345_vm1, %v5482_v62  ;;  %v6231_v62 = vld [vmem:[#allocation5 + $0x354] ss:$20 sps:$4 sm:$0xff]   ;;  %v7457_v63 = vpack.c.bf16 %v483_v60, %v483_v60 }
 0x112   : > { %v6295_v60 = vld [vmem:[#allocation5 + $0x580] ss:$20 sps:$4 sm:$0xff]  }
 0x113   : > { %2480 = vmatpush2.bf16.msra.mxu0 %v6167_v0  ;;  %v6226_v0 = vld [vmem:[#allocation5 + $0x238] ss:$20 sps:$4 sm:$0xff]  }
 0x114   : > { %2545 = vmatpush2.bf16.msra.mxu1 %v2347_v4  ;;  %2481 = vmatprep.subr.bf16.mxu0 %v6174_v1  ;;  %v6229_v1 = vld [vmem:[#allocation5 + $0x350] ss:$20 sps:$4 sm:$0xff]  }
 0x115   : > { %2565 = vmatprep.subr.bf16.mxu1 %v6177_v5  ;;  %v6232_v4 = vld [vmem:[#allocation5 + $0x210] ss:$20 sps:$4 sm:$0xff]   ;;  %v6235_v5 = vld [vmem:[#allocation5 + $0x328] ss:$20 sps:$4 sm:$0xff]  }
 0x117   : > { %2547 = vmatmul.mubr.bf16.vlgmr.msra.gmra.mxu1 %v7434_v7  ;;  %2482 = vmatpush2.bf16.msra.mxu0 %v6172_v6  ;;  %v6240_v6 = vld [vmem:[#allocation5 + $0x1ec] ss:$20 sps:$4 sm:$0xff]  }
 0x118   : > { %2566 = vmatpush1.bf16.msra.mxu1 %v6175_v9  ;;  %2483 = vmatprep.subr.bf16.mxu0 %v6180_v10  ;;  %v6238_v9 = vld [vmem:[#allocation5 + $0x1e8] ss:$20 sps:$4 sm:$0xff]   ;;  %v6241_v10 = vld [vmem:[#allocation5 + $0x300] ss:$20 sps:$4 sm:$0xff]  }
 0x119   : > { %2567 = vmatprep.subr.bf16.mxu1 %v6183_v11  ;;  %5488 = vmatprep.mubr.msk.bf16.mxu1 %vm2338_vm0, %v7437_v15  ;;  %v6246_v11 = vld [vmem:[#allocation5 + $0x1c4] ss:$20 sps:$4 sm:$0xff]  }
 0x11b   : > { %2484 = vmatpush2.bf16.msra.mxu0 %v6178_v12  ;;  %v6249_v12 = vld [vmem:[#allocation5 + $0x2dc] ss:$20 sps:$4 sm:$0xff]  }
 0x11c   : > { %2568 = vmatpush1.bf16.msra.mxu1 %v6181_v16  ;;  %2485 = vmatprep.subr.bf16.mxu0 %v6186_v18  ;;  %v6244_v16 = vld [vmem:[#allocation5 + $0x1c0] ss:$20 sps:$4 sm:$0xff]   ;;  %v6252_v18 = vld [vmem:[#allocation5 + $0x19c] ss:$20 sps:$4 sm:$0xff]  }
 0x11d   : > { %2569 = vmatprep.subr.bf16.mxu1 %v6189_v19  ;;  %v6255_v19 = vld [vmem:[#allocation5 + $0x2b4] ss:$20 sps:$4 sm:$0xff]  }
 0x11f   : > { %2557 = vmatmul.mubr.bf16.gmra.mxu1 %v7443_v23  ;;  %2486 = vmatpush2.bf16.msra.mxu0 %v6184_v20  ;;  %v6250_v20 = vld [vmem:[#allocation5 + $0x198] ss:$20 sps:$4 sm:$0xff]  }
 0x120   : > { %2570 = vmatpush1.bf16.msra.mxu1 %v6187_v24  ;;  %2487 = vmatprep.subr.bf16.mxu0 %v6192_v25  ;;  %v6253_v24 = vld [vmem:[#allocation5 + $0x2b0] ss:$20 sps:$4 sm:$0xff]   ;;  %v6258_v25 = vld [vmem:[#allocation5 + $0x174] ss:$20 sps:$4 sm:$0xff]  }
 0x121   : > { %2571 = vmatprep.subr.bf16.mxu1 %v6195_v26  ;;  %2597 = vmatprep.mubr.bf16.mxu1 %v7387_v53  ;;  %v6261_v26 = vld [vmem:[#allocation5 + $0x28c] ss:$20 sps:$4 sm:$0xff]  }
 0x123   : > { %2488 = vmatpush2.bf16.msra.mxu0 %v6190_v27  ;;  %v6256_v27 = vld [vmem:[#allocation5 + $0x170] ss:$20 sps:$4 sm:$0xff]  }
 0x124   : > { %2572 = vmatpush1.bf16.msra.mxu1 %v6193_v28  ;;  %2489 = vmatprep.subr.bf16.mxu0 %v6198_v31  ;;  %v6259_v28 = vld [vmem:[#allocation5 + $0x288] ss:$20 sps:$4 sm:$0xff]   ;;  %v6264_v31 = vld [vmem:[#allocation5 + $0x14c] ss:$20 sps:$4 sm:$0xff]  }
 0x125   : > { %2573 = vmatprep.subr.bf16.mxu1 %v6201_v32  ;;  %v6267_v32 = vld [vmem:[#allocation5 + $0x4e4] ss:$20 sps:$4 sm:$0xff]  }
 0x127   : > { %2490 = vmatpush2.bf16.msra.mxu0 %v6196_v33  ;;  %v6262_v33 = vld [vmem:[#allocation5 + $0x148] ss:$20 sps:$4 sm:$0xff]  }
 0x128   : > { %2574 = vmatpush1.bf16.msra.mxu1 %v6199_v34  ;;  %2491 = vmatprep.subr.bf16.mxu0 %v6204_v35  ;;  %v6265_v34 = vld [vmem:[#allocation5 + $0x4e0] ss:$20 sps:$4 sm:$0xff]   ;;  %v6270_v35 = vld [vmem:[#allocation5 + $0x4bc] ss:$20 sps:$4 sm:$0xff]  }
 0x129   : > { %2575 = vmatprep.subr.bf16.mxu1 %v6207_v37  ;;  %v6273_v37 = vld [vmem:[#allocation5 + $0x624] ss:$20 sps:$4 sm:$0xff]  }
 0x12b   : > { %2492 = vmatpush2.bf16.msra.mxu0 %v6202_v38  ;;  %v6268_v38 = vld [vmem:[#allocation5 + $0x4b8] ss:$20 sps:$4 sm:$0xff]  }
 0x12c   : > { %2576 = vmatpush1.bf16.msra.mxu1 %v6205_v39  ;;  %2493 = vmatprep.subr.bf16.mxu0 %v6210_v40  ;;  %v6271_v39 = vld [vmem:[#allocation5 + $0x620] ss:$20 sps:$4 sm:$0xff]  }
 0x12d   : > { %2577 = vmatprep.subr.bf16.mxu1 %v6213_v41  ;;  %v6276_v40 = vld [vmem:[#allocation5 + $0x494] ss:$20 sps:$4 sm:$0xff]   ;;  %v6279_v41 = vld [vmem:[#allocation5 + $0x5fc] ss:$20 sps:$4 sm:$0xff]  }
 0x12f   : > { %2494 = vmatpush2.bf16.msra.mxu0 %v6208_v42  ;;  %v6274_v42 = vld [vmem:[#allocation5 + $0x490] ss:$20 sps:$4 sm:$0xff]  }
 0x130   : > { %2578 = vmatpush1.bf16.msra.mxu1 %v6211_v43  ;;  %2616 = vmatprep.subr.bf16.mxu0 %v6219_v47  ;;  %v6277_v43 = vld [vmem:[#allocation5 + $0x5f8] ss:$20 sps:$4 sm:$0xff]   ;;  %v6283_v47 = vld [vmem:[#allocation5 + $0x5d0] ss:$20 sps:$4 sm:$0xff]  }
 0x131   : > { %2579 = vmatprep.subr.bf16.mxu1 %v6216_v46  ;;  %v6280_v46 = vld [vmem:[#allocation5 + $0x468] ss:$20 sps:$4 sm:$0xff]  }
 0x132   : > { %2496 = vmatmul.mubr.bf16.vlgmr.msra.gmra.mxu0 %v7449_v49 }
 0x133   : > { %2617 = vmatpush1.bf16.msra.mxu0 %v6217_v51  ;;  %2505 = vmatprep.mubr.bf16.mxu0 %v7452_v57  ;;  %v6286_v51 = vld [vmem:[#allocation5 + $0x440] ss:$20 sps:$4 sm:$0xff]  }
 0x134   : > { %2580 = vmatpush1.bf16.msra.mxu1 %v6214_v48  ;;  %2618 = vmatprep.subr.bf16.mxu0 %v6225_v55  ;;  %v6288_v48 = vld [vmem:[#allocation5 + $0x444] ss:$20 sps:$4 sm:$0xff]   ;;  %v6294_v55 = vld [vmem:[#allocation5 + $0x41c] ss:$20 sps:$4 sm:$0xff]  }
 0x135   : > { %2581 = vmatprep.subr.bf16.mxu1 %v6222_v52  ;;  %v6289_v52 = vld [vmem:[#allocation5 + $0x5a8] ss:$20 sps:$4 sm:$0xff]  }
 0x137   : > { %2619 = vmatpush1.bf16.msra.mxu0 %v6223_v58  ;;  %v6292_v58 = vld [vmem:[#allocation5 + $0x418] ss:$20 sps:$4 sm:$0xff]  }
 0x138   : > { %2582 = vmatpush2.bf16.msra.mxu1 %v6220_v56  ;;  %2620 = vmatprep.subr.bf16.mxu0 %v6231_v62  ;;  %v6297_v56 = vld [vmem:[#allocation5 + $0x584] ss:$20 sps:$4 sm:$0xff]   ;;  %v6303_v62 = vld [vmem:[#allocation5 + $0x55c] ss:$20 sps:$4 sm:$0xff]  }
 0x139   : > { %2583 = vmatprep.subr.bf16.mxu1 %v6228_v61  ;;  %v6300_v61 = vld [vmem:[#allocation5 + $0x3f4] ss:$20 sps:$4 sm:$0xff]  }
 0x13a   : > { %2506 = vmatmul.mubr.bf16.gmra.mxu0 %v7457_v63 }
 0x13b   : > { %2621 = vmatpush1.bf16.msra.mxu0 %v6229_v1  ;;  %2648 = vmatprep.mubr.bf16.mxu0 %v7389_v54  ;;  %v6301_v1 = vld [vmem:[#allocation5 + $0x558] ss:$20 sps:$4 sm:$0xff]  }
 0x13c   : > { %2584 = vmatpush2.bf16.msra.mxu1 %v6226_v0  ;;  %2622 = vmatprep.subr.bf16.mxu0 %v6237_v3  ;;  %v6298_v0 = vld [vmem:[#allocation5 + $0x3f0] ss:$20 sps:$4 sm:$0xff]   ;;  %v6309_v3 = vld [vmem:[#allocation5 + $0x534] ss:$20 sps:$4 sm:$0xff]  }
 0x13d   : > { %2585 = vmatprep.subr.bf16.mxu1 %v6234_v2  ;;  %v6306_v2 = vld [vmem:[#allocation5 + $0x3cc] ss:$20 sps:$4 sm:$0xff]  }
 0x13f   : > { %2623 = vmatpush1.bf16.msra.mxu0 %v6235_v5  ;;  %v6307_v5 = vld [vmem:[#allocation5 + $0x530] ss:$20 sps:$4 sm:$0xff]  }
 0x140   : > { %2586 = vmatpush2.bf16.msra.mxu1 %v6232_v4  ;;  %2624 = vmatprep.subr.bf16.mxu0 %v6243_v8  ;;  %v6304_v4 = vld [vmem:[#allocation5 + $0x3c8] ss:$20 sps:$4 sm:$0xff]   ;;  %v6315_v8 = vld [vmem:[#allocation5 + $0x8a4] ss:$20 sps:$4 sm:$0xff]  }
 0x141   : > { %2587 = vmatprep.subr.bf16.mxu1 %v6240_v6  ;;  %v6312_v6 = vld [vmem:[#allocation5 + $0x50c] ss:$20 sps:$4 sm:$0xff]  }
 0x143   : > { %2625 = vmatpush1.bf16.msra.mxu0 %v6241_v10  ;;  %v6313_v10 = vld [vmem:[#allocation5 + $0x8a0] ss:$20 sps:$4 sm:$0xff]  }
 0x144   : > { %2588 = vmatpush2.bf16.msra.mxu1 %v6238_v9  ;;  %2626 = vmatprep.subr.bf16.mxu0 %v6249_v12  ;;  %v6310_v9 = vld [vmem:[#allocation5 + $0x508] ss:$20 sps:$4 sm:$0xff]  }
 0x145   : > { %2589 = vmatprep.subr.bf16.mxu1 %v6246_v11  ;;  %v6318_v11 = vld [vmem:[#allocation5 + $0x764] ss:$20 sps:$4 sm:$0xff]   ;;  %v6321_v12 = vld [vmem:[#allocation5 + $0x87c] ss:$20 sps:$4 sm:$0xff]  }
 0x147   : > { %2627 = vmatpush1.bf16.msra.mxu0 %v6247_v17  ;;  %v6319_v17 = vld [vmem:[#allocation5 + $0x878] ss:$20 sps:$4 sm:$0xff]  }
 0x148   : > { %2590 = vmatpush2.bf16.msra.mxu1 %v6244_v16  ;;  %2628 = vmatprep.subr.bf16.mxu0 %v6255_v19  ;;  %v6316_v16 = vld [vmem:[#allocation5 + $0x760] ss:$20 sps:$4 sm:$0xff]  }
 0x149   : > { %2591 = vmatprep.subr.bf16.mxu1 %v6252_v18  ;;  %v6324_v18 = vld [vmem:[#allocation5 + $0x73c] ss:$20 sps:$4 sm:$0xff]   ;;  %v6327_v19 = vld [vmem:[#allocation5 + $0x854] ss:$20 sps:$4 sm:$0xff]  }
 0x14b   : > { %2629 = vmatpush1.bf16.msra.mxu0 %v6253_v24  ;;  %v6325_v24 = vld [vmem:[#allocation5 + $0x850] ss:$20 sps:$4 sm:$0xff]  }
 0x14c   : > { %2592 = vmatpush2.bf16.msra.mxu1 %v6250_v20  ;;  %2630 = vmatprep.subr.bf16.mxu0 %v6261_v26  ;;  %v6322_v20 = vld [vmem:[#allocation5 + $0x738] ss:$20 sps:$4 sm:$0xff]  }
 0x14d   : > { %2593 = vmatprep.subr.bf16.mxu1 %v6258_v25  ;;  %v6330_v25 = vld [vmem:[#allocation5 + $0x714] ss:$20 sps:$4 sm:$0xff]   ;;  %v6333_v26 = vld [vmem:[#allocation5 + $0x82c] ss:$20 sps:$4 sm:$0xff]  }
 0x14f   : > { %2631 = vmatpush1.bf16.msra.mxu0 %v6259_v28  ;;  %v6331_v28 = vld [vmem:[#allocation5 + $0x828] ss:$20 sps:$4 sm:$0xff]  }
 0x150   : > { %2594 = vmatpush2.bf16.msra.mxu1 %v6256_v27  ;;  %2632 = vmatprep.subr.bf16.mxu0 %v6267_v32  ;;  %v6328_v27 = vld [vmem:[#allocation5 + $0x710] ss:$20 sps:$4 sm:$0xff]  }
 0x151   : > { %2595 = vmatprep.subr.bf16.mxu1 %v6264_v31  ;;  %v6336_v31 = vld [vmem:[#allocation5 + $0x6ec] ss:$20 sps:$4 sm:$0xff]   ;;  %v6339_v32 = vld [vmem:[#allocation5 + $0x804] ss:$20 sps:$4 sm:$0xff]  }
 0x153   : > { %2633 = vmatpush2.bf16.msra.mxu0 %v6265_v34  ;;  %v6337_v34 = vld [vmem:[#allocation5 + $0x800] ss:$20 sps:$4 sm:$0xff]  }
 0x154   : > { %2596 = vmatpush2.bf16.msra.mxu1 %v6262_v33  ;;  %2634 = vmatprep.subr.bf16.mxu0 %v6270_v35  ;;  %v6334_v33 = vld [vmem:[#allocation5 + $0x6e8] ss:$20 sps:$4 sm:$0xff]   ;;  %v6342_v35 = vld [vmem:[#allocation5 + $0x6c4] ss:$20 sps:$4 sm:$0xff]  }
 0x155   : > { %2667 = vmatprep.subr.bf16.mxu1 %v6273_v37  ;;  %v6345_v37 = vld [vmem:[#allocation5 + $0x7dc] ss:$20 sps:$4 sm:$0xff]  }
 0x157   : > { %2598 = vmatmul.mubr.bf16.vlgmr.msra.gmra.mxu1 %v7397_v13  ;;  %2635 = vmatpush2.bf16.msra.mxu0 %v6268_v38  ;;  %v6340_v38 = vld [vmem:[#allocation5 + $0x6c0] ss:$20 sps:$4 sm:$0xff]  }
 0x158   : > { %2668 = vmatpush1.bf16.msra.mxu1 %v6271_v39  ;;  %2636 = vmatprep.subr.bf16.mxu0 %v6276_v40  ;;  %v6343_v39 = vld [vmem:[#allocation5 + $0x7d8] ss:$20 sps:$4 sm:$0xff]   ;;  %v6348_v40 = vld [vmem:[#allocation5 + $0x69c] ss:$20 sps:$4 sm:$0xff]  }
 0x159   : > { %2669 = vmatprep.subr.bf16.mxu1 %v6279_v41  ;;  %2607 = vmatprep.mubr.bf16.mxu1 %v7405_v22  ;;  %v6351_v41 = vld [vmem:[#allocation5 + $0x7b4] ss:$20 sps:$4 sm:$0xff]  }
 0x15b   : > { %2637 = vmatpush2.bf16.msra.mxu0 %v6274_v42  ;;  %v6346_v42 = vld [vmem:[#allocation5 + $0x698] ss:$20 sps:$4 sm:$0xff]  }
 0x15c   : > { %2670 = vmatpush1.bf16.msra.mxu1 %v6277_v43  ;;  %2638 = vmatprep.subr.bf16.mxu0 %v6282_v44  ;;  %v6349_v43 = vld [vmem:[#allocation5 + $0x7b0] ss:$20 sps:$4 sm:$0xff]   ;;  %v6354_v44 = vld [vmem:[#allocation5 + $0x674] ss:$20 sps:$4 sm:$0xff]  }
 0x15d   : > { %2671 = vmatprep.subr.bf16.mxu1 %v6285_v45  ;;  %v6357_v45 = vld [vmem:[#allocation5 + $0x78c] ss:$20 sps:$4 sm:$0xff]  }
 0x15f   : > { %2608 = vmatmul.mubr.bf16.gmra.mxu1 %v7415_v30  ;;  %2639 = vmatpush2.bf16.msra.mxu0 %v6280_v46  ;;  %v840_v46 = vld [vmem:[#allocation5 + $0x8c8] sm:$0x33] }
 0x160   : > { %2672 = vmatpush1.bf16.msra.mxu1 %v6283_v47  ;;  %2640 = vmatprep.subr.bf16.mxu0 %v6288_v48  ;;  %v6352_v47 = vld [vmem:[#allocation5 + $0x670] ss:$20 sps:$4 sm:$0xff]   ;;  %v6355_v48 = vld [vmem:[#allocation5 + $0x788] ss:$20 sps:$4 sm:$0xff]  }
 0x161   : > { %2673 = vmatprep.subr.bf16.mxu1 %v6291_v50  ;;  %2699 = vmatprep.mubr.bf16.mxu1 %v7427_v59  ;;  %v6360_v50 = vld [vmem:[#allocation5 + $0x64c] ss:$20 sps:$4 sm:$0xff]  }
 0x163   : > { %2641 = vmatpush2.bf16.msra.mxu0 %v6286_v51  ;;  %v5484_v51 = vcombine.high %v840_v46, %v840_v46 }
 0x164   : > { %2674 = vmatpush1.bf16.msra.mxu1 %v6289_v52  ;;  %2642 = vmatprep.subr.bf16.mxu0 %v6294_v55  ;;  %v5483_v52 = vcombine.low %v840_v46, %v840_v46  ;;  %v6358_v55 = vld [vmem:[#allocation5 + $0x648] ss:$20 sps:$4 sm:$0xff]  }
 0x165   : > { %2675 = vmatprep.subr.bf16.mxu1 %v6297_v56 }
 0x166   : > { %v2353_v56 = vsel %vm2345_vm1, %v5483_v52, 0  ;;  %v7121_v52 = vmov 0  }
 0x167   : > { %2643 = vmatpush2.bf16.msra.mxu0 %v6292_v58  ;;  %v6363_v58 = vld [vmem:[#allocation5 + $0x268] ss:$20 sps:$4 sm:$0xff]  }
 0x168   : > { %2676 = vmatpush1.bf16.msra.mxu1 %v6295_v60  ;;  %2644 = vmatprep.subr.bf16.mxu0 %v6300_v61  ;;  %v6364_v60 = vld [vmem:[#allocation5 + $0x4e8] ss:$20 sps:$4 sm:$0xff]  }
 0x169   : > { %2677 = vmatprep.subr.bf16.mxu1 %v6303_v62  ;;  %v6365_v61 = vld [vmem:[#allocation5 + $0x128] ss:$20 sps:$4 sm:$0xff]  }
 0x16a   : > { %v6366_v62 = vld [vmem:[#allocation5 + $0x3a8] ss:$20 sps:$4 sm:$0xff]  }
 0x16b   : > { %2645 = vmatpush2.bf16.msra.mxu0 %v6298_v0  ;;  %v6367_v0 = vld [vmem:[#allocation5 + $0x240] ss:$20 sps:$4 sm:$0xff]  }
 0x16c   : > { %2678 = vmatpush1.bf16.msra.mxu1 %v6301_v1  ;;  %2646 = vmatprep.subr.bf16.mxu0 %v6306_v2  ;;  %v6368_v1 = vld [vmem:[#allocation5 + $0x4c0] ss:$20 sps:$4 sm:$0xff]  }
 0x16d   : > { %2679 = vmatprep.subr.bf16.mxu1 %v6309_v3  ;;  %v6369_v2 = vld [vmem:[#allocation5 + $0x100] ss:$20 sps:$4 sm:$0xff]  }
 0x16e   : > { %v6370_v3 = vld [vmem:[#allocation5 + $0x380] ss:$20 sps:$4 sm:$0xff]  }
 0x16f   : > { %2647 = vmatpush2.bf16.msra.mxu0 %v6304_v4  ;;  %v6371_v4 = vld [vmem:[#allocation5 + $0x218] ss:$20 sps:$4 sm:$0xff]  }
 0x170   : > { %2680 = vmatpush1.bf16.msra.mxu1 %v6307_v5  ;;  %2718 = vmatprep.subr.bf16.mxu0 %v6315_v8  ;;  %v6372_v5 = vld [vmem:[#allocation5 + $0x498] ss:$20 sps:$4 sm:$0xff]  }
 0x171   : > { %2681 = vmatprep.subr.bf16.mxu1 %v6312_v6  ;;  %v6373_v6 = vld [vmem:[#allocation5 + $0xd8] ss:$20 sps:$4 sm:$0xff]  }
 0x172   : > { %2649 = vmatmul.mubr.bf16.vlgmr.msra.gmra.mxu0 %v7399_v14  ;;  %v6374_v8 = vld [vmem:[#allocation5 + $0x358] ss:$20 sps:$4 sm:$0xff]  }
 0x173   : > { %2719 = vmatpush1.bf16.msra.mxu0 %v6313_v10  ;;  %2658 = vmatprep.mubr.bf16.mxu0 %v7403_v21  ;;  %v6376_v10 = vld [vmem:[#allocation5 + $0x470] ss:$20 sps:$4 sm:$0xff]  }
 0x174   : > { %2682 = vmatpush1.bf16.msra.mxu1 %v6310_v9  ;;  %2720 = vmatprep.subr.bf16.mxu0 %v6321_v12  ;;  %v6375_v9 = vld [vmem:[#allocation5 + $0x1f0] ss:$20 sps:$4 sm:$0xff]  }
 0x175   : > { %2683 = vmatprep.subr.bf16.mxu1 %v6318_v11  ;;  %v6377_v11 = vld [vmem:[#allocation5 + $0xb0] ss:$20 sps:$4 sm:$0xff]  }
 0x176   : > { %v6378_v12 = vld [vmem:[#allocation5 + $0x330] ss:$20 sps:$4 sm:$0xff]  }
 0x177   : > { %2721 = vmatpush1.bf16.msra.mxu0 %v6319_v17  ;;  %v6380_v17 = vld [vmem:[#allocation5 + $0x448] ss:$20 sps:$4 sm:$0xff]  }
 0x178   : > { %2684 = vmatpush2.bf16.msra.mxu1 %v6316_v16  ;;  %2722 = vmatprep.subr.bf16.mxu0 %v6327_v19  ;;  %v6379_v16 = vld [vmem:[#allocation5 + $0x1c8] ss:$20 sps:$4 sm:$0xff]  }
 0x179   : > { %2685 = vmatprep.subr.bf16.mxu1 %v6324_v18  ;;  %v6381_v18 = vld [vmem:[#allocation5 + $0x88] ss:$20 sps:$4 sm:$0xff]  }
 0x17a   : > { %2659 = vmatmul.mubr.bf16.gmra.mxu0 %v7413_v29  ;;  %v6382_v19 = vld [vmem:[#allocation5 + $0x308] ss:$20 sps:$4 sm:$0xff]  }
 0x17b   : > { %2723 = vmatpush1.bf16.msra.mxu0 %v6325_v24  ;;  %5490 = vmatprep.mubr.msk.bf16.mxu0 %vm2338_vm0, %v7419_v36  ;;  %v6384_v24 = vld [vmem:[#allocation5 + $0x420] ss:$20 sps:$4 sm:$0xff]  }
 0x17c   : > { %2686 = vmatpush2.bf16.msra.mxu1 %v6322_v20  ;;  %2724 = vmatprep.subr.bf16.mxu0 %v6333_v26  ;;  %v6383_v20 = vld [vmem:[#allocation5 + $0x1a0] ss:$20 sps:$4 sm:$0xff]  }
 0x17d   : > { %2687 = vmatprep.subr.bf16.mxu1 %v6330_v25  ;;  %v844_v25 = vlaneseq  ;;  %v6385_v26 = vld [vmem:[#allocation5 + $0x60] ss:$20 sps:$4 sm:$0xff]  }
 0x17f   : > { %2725 = vmatpush1.bf16.msra.mxu0 %v6331_v28  ;;  %v6387_v28 = vld [vmem:[#allocation5 + $0x178] ss:$20 sps:$4 sm:$0xff]  }
 0x180   : > { %2688 = vmatpush2.bf16.msra.mxu1 %v6328_v27  ;;  %2726 = vmatprep.subr.bf16.mxu0 %v6339_v32  ;;  %v6386_v27 = vld [vmem:[#allocation5 + $0x2e0] ss:$20 sps:$4 sm:$0xff]   ;;  %v7481_v32 = vshrl.u32 %v844_v25, 7  ;;  %v6407_v25 = vld [vmem:[#allocation5 + $0x6c8] ss:$20 sps:$4 sm:$0xff]  }
 0x181   : > { %2689 = vmatprep.subr.bf16.mxu1 %v6336_v31  ;;  %v6388_v31 = vld [vmem:[#allocation5 + $0x3f8] ss:$20 sps:$4 sm:$0xff]  }
 0x183   : > { %2727 = vmatpush1.bf16.msra.mxu0 %v6337_v34  ;;  %v6391_v34 = vld [vmem:[#allocation5 + $0x150] ss:$20 sps:$4 sm:$0xff]  }
 0x184   : > { %2690 = vmatpush2.bf16.msra.mxu1 %v6334_v33  ;;  %2728 = vmatprep.subr.bf16.mxu0 %v6345_v37  ;;  %v6390_v33 = vld [vmem:[#allocation5 + $0x2b8] ss:$20 sps:$4 sm:$0xff]   ;;  %v7484_v37 = vsub.s32 0, %v7481_v32 }
 0x185   : > { %2691 = vmatprep.subr.bf16.mxu1 %v6342_v35  ;;  %v6392_v35 = vld [vmem:[#allocation5 + $0x3d0] ss:$20 sps:$4 sm:$0xff]  }
 0x187   : > { %2729 = vmatpush1.bf16.msra.mxu0 %v6343_v39  ;;  %v6394_v39 = vld [vmem:[#allocation5 + $0x290] ss:$20 sps:$4 sm:$0xff]  }
 0x188   : > { %2692 = vmatpush2.bf16.msra.mxu1 %v6340_v38  ;;  %2730 = vmatprep.subr.bf16.mxu0 %v6351_v41  ;;  %v6393_v38 = vld [vmem:[#allocation5 + $0x10] ss:$20 sps:$4 sm:$0xff]   ;;  %v6395_v41 = vld [vmem:[#allocation5 + $0x768] ss:$20 sps:$4 sm:$0xff]  }
 0x189   : > { %2693 = vmatprep.subr.bf16.mxu1 %v6348_v40  ;;  %v7487_v40 = vsub.s32 1, %v7481_v32 }
 0x18b   : > { %2731 = vmatpush1.bf16.msra.mxu0 %v6349_v43 }
 0x18c   : > { %2694 = vmatpush2.bf16.msra.mxu1 %v6346_v42  ;;  %2732 = vmatprep.subr.bf16.mxu0 %v6357_v45 }
 0x18d   : > { %2695 = vmatprep.subr.bf16.mxu1 %v6354_v44  ;;  %v6396_v44 = vld [vmem:[#allocation5 + $0x628] ss:$20 sps:$4 sm:$0xff]  }
 0x18f   : > { %2733 = vmatpush1.bf16.msra.mxu0 %v6355_v48  ;;  %v6397_v48 = vld [vmem:[#allocation5 + $0x8a8] ss:$20 sps:$4 sm:$0xff]  }
 0x190   : > { %2696 = vmatpush2.bf16.msra.mxu1 %v6352_v47  ;;  %5489 = vmatprep.subr.msk.bf16.mxu0 %vm2345_vm1, %v5484_v51 }
 0x191   : > { %2697 = vmatprep.subr.bf16.mxu1 %v6360_v50 }
 0x193   : > { %2749 = vmatpush2.bf16.msra.mxu0 %v2353_v56 }
 0x194   : > { %2698 = vmatpush2.bf16.msra.mxu1 %v6358_v55  ;;  %5753 = vmatprep.subr.bf16.mxu0 %v6363_v58  ;;  %v6398_v55 = vld [vmem:[#allocation5 + $0x740] ss:$20 sps:$4 sm:$0xff]  }
 0x195   : > { %5781 = vmatprep.subr.bf16.mxu1 %v6364_v60  ;;  %v6399_v60 = vld [vmem:[#allocation5 + $0x600] ss:$20 sps:$4 sm:$0xff]  }
 0x196   : > { %2751 = vmatmul.mubr.bf16.vlgmr.msra.gmra.mxu0 %v7434_v7 }
 0x197   : > { %2700 = vmatmul.mubr.bf16.vlgmr.msra.gmra.mxu1 %v7449_v49  ;;  %5754 = vmatpush3.bf16.msra.mxu0 %v6365_v61 }
 0x198   : > { %5782 = vmatpush3.bf16.msra.mxu1 %v6366_v62  ;;  %5755 = vmatprep.subr.bf16.mxu0 %v6367_v0 }
 0x199   : > { %5783 = vmatprep.subr.bf16.mxu1 %v6368_v1  ;;  %2709 = vmatprep.mubr.bf16.mxu1 %v7452_v57 }
 0x19a   : > { %5491 = vmatprep.mubr.msk.bf16.mxu0 %vm2338_vm0, %v7437_v15 }
 0x19b   : > { %5756 = vmatpush3.bf16.msra.mxu0 %v6369_v2  ;;  %v6400_v2 = vld [vmem:[#allocation5 + $0x880] ss:$20 sps:$4 sm:$0xff]  }
 0x19c   : > { %5784 = vmatpush3.bf16.msra.mxu1 %v6370_v3  ;;  %5757 = vmatprep.subr.bf16.mxu0 %v6371_v4 }
 0x19d   : > { %5785 = vmatprep.subr.bf16.mxu1 %v6372_v5  ;;  %v6401_v5 = vld [vmem:[#allocation5 + $0x718] ss:$20 sps:$4 sm:$0xff]  }
 0x19e   : > { %2761 = vmatmul.mubr.bf16.gmra.mxu0 %v7443_v23 }
 0x19f   : > { %2710 = vmatmul.mubr.bf16.gmra.mxu1 %v7457_v63  ;;  %5758 = vmatpush3.bf16.msra.mxu0 %v6373_v6 }
 0x1a0   : > { %5786 = vmatpush3.bf16.msra.mxu1 %v6374_v8  ;;  %5759 = vmatprep.subr.bf16.mxu0 %v6375_v9  ;;  %v6403_v9 = vld [vmem:[#allocation5 + $0x858] ss:$20 sps:$4 sm:$0xff]  }
 0x1a1   : > { %5787 = vmatprep.subr.bf16.mxu1 %v6376_v10  ;;  %2801 = vmatprep.mubr.bf16.mxu0 %v7387_v53  ;;  %v6389_v53 = vld [vmem:[#allocation5 + $0x38] ss:$20 sps:$4 sm:$0xff]   ;;  %v6404_v10 = vld [vmem:[#allocation5 + $0x6f0] ss:$20 sps:$4 sm:$0xff]  }
 0x1a2   : > { %2849 = vmatprep.mubr.bf16.mxu1 %v7389_v54  ;;  %v842_v54 = vld [vmem:[#allocation7] sm:$0x1f] }
 0x1a3   : > { %5760 = vmatpush3.bf16.msra.mxu0 %v6377_v11  ;;  %v847_v42 = vrot.slane %v842_v54, %v7484_v37  ;;  %v7491_v43 = vrot.slane %v842_v54, %v7487_v40  ;;  %v6414_v54 = vld [vmem:[#allocation5 + $0x538] ss:$20 sps:$4 sm:$0xff]  }
 0x1a4   : > { %5788 = vmatpush3.bf16.msra.mxu1 %v6378_v12  ;;  %5761 = vmatprep.subr.bf16.mxu0 %v6379_v16 }
 0x1a5   : > { %5789 = vmatprep.subr.bf16.mxu1 %v6380_v17 }
 0x1a7   : > { %5762 = vmatpush3.bf16.msra.mxu0 %v6381_v18 }
 0x1a8   : > { %5790 = vmatpush3.bf16.msra.mxu1 %v6382_v19  ;;  %5763 = vmatprep.subr.bf16.mxu0 %v6383_v20  ;;  %v6406_v19 = vld [vmem:[#allocation5 + $0x830] ss:$20 sps:$4 sm:$0xff]  }
 0x1a9   : > { %5791 = vmatprep.subr.bf16.mxu1 %v6384_v24 }
 0x1ab   : > { %5764 = vmatpush3.bf16.msra.mxu0 %v6385_v26 }
 0x1ac   : > { %5792 = vmatpush3.bf16.msra.mxu1 %v6386_v27  ;;  %5765 = vmatprep.subr.bf16.mxu0 %v6387_v28  ;;  %v6408_v28 = vld [vmem:[#allocation5 + $0x588] ss:$20 sps:$4 sm:$0xff]  }
 0x1ad   : > { %5793 = vmatprep.subr.bf16.mxu1 %v6388_v31  ;;  %v6409_v31 = vld [vmem:[#allocation5 + $0x808] ss:$20 sps:$4 sm:$0xff]  }
 0x1af   : > { %5766 = vmatpush3.bf16.msra.mxu0 %v6389_v53  ;;  %v6412_v53 = vld [vmem:[#allocation5 + $0x7e0] ss:$20 sps:$4 sm:$0xff]  }
 0x1b0   : > { %5794 = vmatpush3.bf16.msra.mxu1 %v6390_v33  ;;  %5767 = vmatprep.subr.bf16.mxu0 %v6391_v34  ;;  %v6413_v33 = vld [vmem:[#allocation5 + $0x678] ss:$20 sps:$4 sm:$0xff]  }
 0x1b1   : > { %5795 = vmatprep.subr.bf16.mxu1 %v6392_v35  ;;  %v6415_v34 = vld [vmem:[#allocation5 + $0x7b8] ss:$20 sps:$4 sm:$0xff]   ;;  %v6418_v35 = vld [vmem:[#allocation5 + $0x790] ss:$20 sps:$4 sm:$0xff]  }
 0x1b2   : > { %v2395_v45 = vpop.f32.mrf.mxu0 }
 0x1b3   : > { %v2446_v46 = vpop.f32.mrf.mxu1  ;;  %v2396_v47 = vadd.f32 %v2395_v45, %v847_v42  ;;  %5768 = vmatpush3.bf16.msra.mxu0 %v6393_v38  ;;  %v6421_v38 = vld [vmem:[#allocation8 + $0xe4] ss:$16 sps:$4 sm:$0xff]  }
 0x1b4   : > { %5796 = vmatpush3.bf16.msra.mxu1 %v6394_v39  ;;  %v2397_v50 = vpop.f32.mrf.mxu0  ;;  %5809 = vmatprep.subr.bf16.mxu0 %v6395_v41  ;;  %v6422_v39 = vld [vmem:[#allocation5 + $0x8d0] ss:$0 sps:$4 sm:$0x33]   ;;  %v6419_v41 = vld [vmem:[#allocation8 + $0xe0] ss:$16 sps:$4 sm:$0xff]  }
 0x1b5   : > { %v2448_v51 = vpop.f32.mrf.mxu1  ;;  %2913 = vmatprep.subr.bf16.mxu1 %v7121_v52  ;;  %v7494_v56 = vadd.f32 %v2446_v46, %v2396_v47  ;;  %v2398_v58 = vadd.f32 %v2397_v50, %v7491_v43  ;;  %v2359_v45 = vsel %vm2345_vm1, %v6422_v39, 0  ;;  %v6423_v46 = vld [vmem:[#allocation8 + $0xc0] ss:$16 sps:$4 sm:$0xff]  }
 0x1b6   : > { %v2399_v61 = vpop.f32.mrf.mxu0  ;;  %2802 = vmatmul.mubr.bf16.vlgmr.msra.gmra.mxu0 %v7397_v13  ;;  %v6402_v13 = vld [vmem:[#allocation5 + $0x5d8] ss:$20 sps:$4 sm:$0xff]  }
 0x1b7   : > { %v2450_v62 = vpop.f32.mrf.mxu1  ;;  %2850 = vmatmul.mubr.bf16.vlgmr.msra.gmra.mxu1 %v7399_v14  ;;  %v7499_v0 = vadd.f32 %v2448_v51, %v2398_v58  ;;  %v2400_v1 = vadd.f32 %v2399_v61, %v847_v42  ;;  %5810 = vmatpush3.bf16.msra.mxu0 %v6396_v44  ;;  %v6470_v44 = vld [vmem:[#allocation8 + $0x2e4] ss:$16 sps:$4 sm:$0xff]   ;;  %v6468_v50 = vld [vmem:[#allocation8 + $0x2e0] ss:$16 sps:$4 sm:$0xff]  }
 0x1b8   : > { %2914 = vmatpush1.bf16.msra.mxu1 %v6397_v48  ;;  %v7501_v3 = vpop.f32.mrf.mxu0  ;;  %5811 = vmatprep.subr.bf16.mxu0 %v6398_v55  ;;  %v6428_v48 = vld [vmem:[#allocation8 + $0xa4] ss:$16 sps:$4 sm:$0xff]   ;;  %v6426_v58 = vld [vmem:[#allocation8 + $0xa0] ss:$16 sps:$4 sm:$0xff]  }
 0x1b9   : > { %v7503_v4 = vpop.f32.mrf.mxu1  ;;  %2915 = vmatprep.subr.bf16.mxu1 %v7121_v52  ;;  %v7506_v6 = vadd.f32 %v2450_v62, %v2400_v1  ;;  %2809 = vmatprep.mubr.bf16.mxu0 %v7405_v22  ;;  %v6405_v22 = vld [vmem:[#allocation5 + $0x5b0] ss:$20 sps:$4 sm:$0xff]  }
 0x1ba   : > { %2857 = vmatprep.mubr.bf16.mxu1 %v7403_v21  ;;  %v2405_v8 = vpop.f32.mrf.mxu0  ;;  %v6473_v55 = vld [vmem:[#allocation8 + $0x2c4] ss:$16 sps:$4 sm:$0xff]  }
 0x1bb   : > { %v2456_v14 = vpop.f32.mrf.mxu1  ;;  %5812 = vmatpush3.bf16.msra.mxu0 %v6399_v60  ;;  %v2406_v11 = vadd.f32 %v2405_v8, %v847_v42  ;;  %v6425_v42 = vld [vmem:[#allocation8 + $0xc4] ss:$16 sps:$4 sm:$0xff]  }
 0x1bc   : > { %2916 = vmatpush1.bf16.msra.mxu1 %v6400_v2  ;;  %5813 = vmatprep.subr.bf16.mxu0 %v6401_v5  ;;  %v2407_v16 = vpop.f32.mrf.mxu0  ;;  %v6431_v61 = vld [vmem:[#allocation8 + $0x84] ss:$16 sps:$4 sm:$0xff]   ;;  %v6429_v2 = vld [vmem:[#allocation8 + $0x80] ss:$16 sps:$4 sm:$0xff]  }
 0x1bd   : > { %2917 = vmatprep.subr.bf16.mxu1 %v7121_v52  ;;  %v2458_v12 = vpop.f32.mrf.mxu1  ;;  %v2408_v17 = vadd.f32 %v2407_v16, %v7491_v43  ;;  %v7512_v18 = vadd.f32 %v2456_v14, %v2406_v11  ;;  %v6476_v1 = vld [vmem:[#allocation8 + $0x2a4] ss:$16 sps:$4 sm:$0xff]   ;;  %v6432_v14 = vld [vmem:[#allocation8 + $0x60] ss:$16 sps:$4 sm:$0xff]  }
 0x1be   : > { %2810 = vmatmul.mubr.bf16.gmra.mxu0 %v7415_v30  ;;  %v2409_v20 = vpop.f32.mrf.mxu0  ;;  %v6411_v30 = vld [vmem:[#allocation5 + $0x560] ss:$20 sps:$4 sm:$0xff]  }
 0x1bf   : > { %2858 = vmatmul.mubr.bf16.gmra.mxu1 %v7413_v29  ;;  %v2460_v21 = vpop.f32.mrf.mxu1  ;;  %5814 = vmatpush3.bf16.msra.mxu0 %v6402_v13  ;;  %v7516_v24 = vadd.f32 %v2458_v12, %v2408_v17  ;;  %v6410_v29 = vld [vmem:[#allocation5 + $0x6a0] ss:$20 sps:$4 sm:$0xff]   ;;  %v6435_v12 = vld [vmem:[#allocation8 + $0x40] ss:$16 sps:$4 sm:$0xff]  }
 0x1c0   : > { %2918 = vmatpush1.bf16.msra.mxu1 %v6403_v9  ;;  %5815 = vmatprep.subr.bf16.mxu0 %v6404_v10  ;;  %v2410_v27 = vpop.f32.mrf.mxu0  ;;  %v6437_v8 = vld [vmem:[#allocation8 + $0x44] ss:$16 sps:$4 sm:$0xff]   ;;  %v6477_v10 = vld [vmem:[#allocation8 + $0x280] ss:$16 sps:$4 sm:$0xff]  }
 0x1c1   : > { %2919 = vmatprep.subr.bf16.mxu1 %v7121_v52  ;;  %v2461_v26 = vpop.f32.mrf.mxu1  ;;  %2897 = vmatprep.mubr.bf16.mxu0 %v7427_v59  ;;  %v6416_v59 = vld [vmem:[#allocation5 + $0x650] ss:$20 sps:$4 sm:$0xff]   ;;  %v6480_v17 = vld [vmem:[#allocation8 + $0x260] ss:$16 sps:$4 sm:$0xff]  }
 0x1c2   : > { %5492 = vmatprep.mubr.msk.bf16.mxu1 %vm2338_vm0, %v7419_v36  ;;  %v6417_v36 = vld [vmem:[#allocation5 + $0x510] ss:$20 sps:$4 sm:$0xff]   ;;  %v6486_v27 = vld [vmem:[#allocation8 + $0x220] ss:$16 sps:$4 sm:$0xff]  }
 0x1c3   : > { %5816 = vmatpush3.bf16.msra.mxu0 %v6405_v22  ;;  %v6482_v11 = vld [vmem:[#allocation8 + $0x264] ss:$16 sps:$4 sm:$0xff]   ;;  %v6438_v22 = vld [vmem:[#allocation8 + $0x20] ss:$16 sps:$4 sm:$0xff]  }
 0x1c4   : > { %2920 = vmatpush1.bf16.msra.mxu1 %v6406_v19  ;;  %5817 = vmatprep.subr.bf16.mxu0 %v6407_v25  ;;  %v6440_v16 = vld [vmem:[#allocation8 + $0x24] ss:$16 sps:$4 sm:$0xff]   ;;  %v6441_v25 = vld [vmem:[#allocation8] ss:$16 sps:$4 sm:$0xff]  }
 0x1c5   : > { %2921 = vmatprep.subr.bf16.mxu1 %v7121_v52  ;;  %v6485_v19 = vld [vmem:[#allocation8 + $0x244] ss:$16 sps:$4 sm:$0xff]  }
 0x1c6   : > { %v6443_v21 = vld [vmem:[#allocation8 + $0x4] ss:$16 sps:$4 sm:$0xff]  }
 0x1c7   : > { %5818 = vmatpush3.bf16.msra.mxu0 %v6408_v28  ;;  %v6488_v20 = vld [vmem:[#allocation8 + $0x224] ss:$16 sps:$4 sm:$0xff]  }
 0x1c8   : > { %2922 = vmatpush1.bf16.msra.mxu1 %v6409_v31  ;;  %5819 = vmatprep.subr.bf16.mxu0 %v6410_v29  ;;  %v6446_v26 = vld [vmem:[#allocation8 + $0x1e4] ss:$16 sps:$4 sm:$0xff]   ;;  %v2402_v29 = vadd.f32 %v7501_v3, %v7491_v43 }
 0x1c9   : > { %2923 = vmatprep.subr.bf16.mxu1 %v7121_v52  ;;  %v6491_v28 = vld [vmem:[#allocation8 + $0x204] ss:$16 sps:$4 sm:$0xff]  }
 0x1cb   : > { %5820 = vmatpush3.bf16.msra.mxu0 %v6411_v30 }
 0x1cc   : > { %2924 = vmatpush1.bf16.msra.mxu1 %v6412_v53  ;;  %5821 = vmatprep.subr.bf16.mxu0 %v6413_v33  ;;  %v6444_v53 = vld [vmem:[#allocation8 + $0x1e0] ss:$16 sps:$4 sm:$0xff]  }
 0x1cd   : > { %2925 = vmatprep.subr.bf16.mxu1 %v7121_v52 }
 0x1cf   : > { %5822 = vmatpush3.bf16.msra.mxu0 %v6414_v54  ;;  %v6449_v54 = vld [vmem:[#allocation8 + $0x1c4] ss:$16 sps:$4 sm:$0xff]  }
 0x1d0   : > { %2926 = vmatpush1.bf16.msra.mxu1 %v6415_v34  ;;  %5823 = vmatprep.subr.bf16.mxu0 %v6416_v59  ;;  %v6489_v34 = vld [vmem:[#allocation8 + $0x200] ss:$16 sps:$4 sm:$0xff]  }
 0x1d1   : > { %2927 = vmatprep.subr.bf16.mxu1 %v7121_v52 }
 0x1d3   : > { %5824 = vmatpush3.bf16.msra.mxu0 %v6417_v36  ;;  %v6494_v36 = vld [vmem:[#allocation8 + $0x3e4] ss:$16 sps:$4 sm:$0xff]  }
 0x1d4   : > { %2928 = vmatpush1.bf16.msra.mxu1 %v6418_v35  ;;  %3968 = vmatprep.subr.bf16.mxu0 %v6421_v38  ;;  %v2453_v38 = vadd.f32 %v7503_v4, %v2402_v29 }
 0x1d5   : > { %2943 = vmatprep.subr.bf16.mxu1 %v7121_v52 }
 0x1d6   : > { %2898 = vmatmul.mubr.bf16.vlgmr.msra.gmra.mxu0 %v7449_v49  ;;  %v6471_v49 = vld [vmem:[#allocation8 + $0x2c0] ss:$16 sps:$4 sm:$0xff]  }
 0x1d7   : > { %v7528_v47 = vpop.f32.mrf.mxu1  ;;  %3969 = vmatpush1.bf16.msra.mxu0 %v6419_v41  ;;  %2905 = vmatprep.mubr.bf16.mxu0 %v7452_v57  ;;  %v6434_v57 = vld [vmem:[#allocation8 + $0x64] ss:$16 sps:$4 sm:$0xff]  }
 0x1d8   : > { %2944 = vmatpush2.bf16.msra.mxu1 %v2359_v45  ;;  %3970 = vmatprep.subr.bf16.mxu0 %v6425_v42  ;;  %v6452_v41 = vld [vmem:[#allocation8 + $0x1a4] ss:$16 sps:$4 sm:$0xff]   ;;  %v6492_v42 = vld [vmem:[#allocation8 + $0x3e0] ss:$16 sps:$4 sm:$0xff]  }
 0x1d9   : > { %v7531_v51 = vpop.f32.mrf.mxu1  ;;  %4019 = vmatprep.subr.bf16.mxu1 %v6470_v44 }
 0x1db   : > { %v7534_v60 = vpop.f32.mrf.mxu1  ;;  %2946 = vmatmul.mubr.bf16.vlgmr.msra.gmra.mxu1 %v7434_v7  ;;  %3971 = vmatpush1.bf16.msra.mxu0 %v6423_v46  ;;  %v6474_v7 = vld [vmem:[#allocation8 + $0x2a0] ss:$16 sps:$4 sm:$0xff]   ;;  %v6497_v46 = vld [vmem:[#allocation8 + $0x3c4] ss:$16 sps:$4 sm:$0xff]  }
 0x1dc   : > { %5493 = vmatprep.mubr.msk.bf16.mxu1 %vm2338_vm0, %v7437_v15  ;;  %3972 = vmatprep.subr.bf16.mxu0 %v6428_v48  ;;  %v6479_v15 = vld [vmem:[#allocation8 + $0x284] ss:$16 sps:$4 sm:$0xff]  }
 0x1dd   : > { %v7539_v62 = vpop.f32.mrf.mxu1  ;;  %4020 = vmatpush1.bf16.msra.mxu1 %v6468_v50 }
 0x1de   : > { %4021 = vmatprep.subr.bf16.mxu1 %v6473_v55  ;;  %2906 = vmatmul.mubr.bf16.gmra.mxu0 %v7457_v63 }
 0x1df   : > { %v7542_v5 = vpop.f32.mrf.mxu1  ;;  %3973 = vmatpush1.bf16.msra.mxu0 %v6426_v58  ;;  %v6455_v58 = vld [vmem:[#allocation8 + $0x184] ss:$16 sps:$4 sm:$0xff]  }
 0x1e0   : > { %3974 = vmatprep.subr.bf16.mxu0 %v6431_v61  ;;  %v6495_v61 = vld [vmem:[#allocation8 + $0x3c0] ss:$16 sps:$4 sm:$0xff]  }
 0x1e1   : > { %v7544_v13 = vpop.f32.mrf.mxu1  ;;  %4022 = vmatpush1.bf16.msra.mxu1 %v6471_v49 }
 0x1e2   : > { %4023 = vmatprep.subr.bf16.mxu1 %v6476_v1 }
 0x1e3   : > { %2954 = vmatmul.mubr.bf16.gmra.mxu1 %v7443_v23  ;;  %v2562_v9 = vpop.f32.mrf.mxu1  ;;  %3975 = vmatpush1.bf16.msra.mxu0 %v6429_v2  ;;  %v6483_v23 = vld [vmem:[#allocation8 + $0x240] ss:$16 sps:$4 sm:$0xff]  }
 0x1e4   : > { %3976 = vmatprep.subr.bf16.mxu0 %v6434_v57  ;;  %v6456_v9 = vld [vmem:[#allocation8 + $0x160] ss:$16 sps:$4 sm:$0xff]  }
 0x1e5   : > { %v2563_v63 = vpop.f32.mrf.mxu1  ;;  %4024 = vmatpush1.bf16.msra.mxu1 %v6474_v7  ;;  %v6453_v7 = vld [vmem:[#allocation8 + $0x180] ss:$16 sps:$4 sm:$0xff]  }
 0x1e6   : > { %4025 = vmatprep.subr.bf16.mxu1 %v6479_v15  ;;  %v6501_v63 = vld [vmem:[#allocation8 + $0x380] ss:$16 sps:$4 sm:$0xff]  }
 0x1e7   : > { %3977 = vmatpush1.bf16.msra.mxu0 %v6432_v14  ;;  %v6498_v14 = vld [vmem:[#allocation8 + $0x3a0] ss:$16 sps:$4 sm:$0xff]  }
 0x1e8   : > { %3978 = vmatprep.subr.bf16.mxu0 %v6437_v8  ;;  %v6503_v8 = vld [vmem:[#allocation8 + $0x384] ss:$16 sps:$4 sm:$0xff]  }
 0x1e9   : > { %4026 = vmatpush1.bf16.msra.mxu1 %v6477_v10  ;;  %v6461_v10 = vld [vmem:[#allocation8 + $0x144] ss:$16 sps:$4 sm:$0xff]  }
 0x1ea   : > { %4027 = vmatprep.subr.bf16.mxu1 %v6482_v11  ;;  %v6506_v11 = vld [vmem:[#allocation8 + $0x364] ss:$16 sps:$4 sm:$0xff]  }
 0x1eb   : > { %3979 = vmatpush1.bf16.msra.mxu0 %v6435_v12  ;;  %v6459_v12 = vld [vmem:[#allocation8 + $0x140] ss:$16 sps:$4 sm:$0xff]  }
 0x1ec   : > { %3980 = vmatprep.subr.bf16.mxu0 %v6440_v16  ;;  %v6464_v16 = vld [vmem:[#allocation8 + $0x124] ss:$16 sps:$4 sm:$0xff]  }
 0x1ed   : > { %4028 = vmatpush1.bf16.msra.mxu1 %v6480_v17  ;;  %v6504_v17 = vld [vmem:[#allocation8 + $0x360] ss:$16 sps:$4 sm:$0xff]  }
 0x1ee   : > { %4029 = vmatprep.subr.bf16.mxu1 %v6485_v19  ;;  %v6509_v19 = vld [vmem:[#allocation8 + $0x344] ss:$16 sps:$4 sm:$0xff]  }
 0x1ef   : > { %3981 = vmatpush1.bf16.msra.mxu0 %v6438_v22 }
 0x1f0   : > { %3982 = vmatprep.subr.bf16.mxu0 %v6443_v21  ;;  %v6462_v21 = vld [vmem:[#allocation8 + $0x120] ss:$16 sps:$4 sm:$0xff]  }
 0x1f1   : > { %4030 = vmatpush1.bf16.msra.mxu1 %v6483_v23  ;;  %v6467_v23 = vld [vmem:[#allocation8 + $0x104] ss:$16 sps:$4 sm:$0xff]  }
 0x1f2   : > { %4031 = vmatprep.subr.bf16.mxu1 %v6488_v20  ;;  %v2497_v31 = vpop.f32.mrf.mxu0  ;;  %v6507_v20 = vld [vmem:[#allocation8 + $0x340] ss:$16 sps:$4 sm:$0xff]  }
 0x1f3   : > { %v2498_v30 = vadd.f32 %v2497_v31, %v7494_v56  ;;  %3983 = vmatpush1.bf16.msra.mxu0 %v6441_v25  ;;  %v6447_v56 = vld [vmem:[#allocation8 + $0x1c0] ss:$16 sps:$4 sm:$0xff]  }
 0x1f4   : > { %v2499_v33 = vpop.f32.mrf.mxu0  ;;  %3984 = vmatprep.subr.bf16.mxu0 %v6446_v26  ;;  %v6512_v26 = vld [vmem:[#allocation8 + $0x324] ss:$16 sps:$4 sm:$0xff]   ;;  %v6510_v31 = vld [vmem:[#allocation8 + $0x320] ss:$16 sps:$4 sm:$0xff]  }
 0x1f5   : > { %4032 = vmatpush1.bf16.msra.mxu1 %v6486_v27  ;;  %v2500_v59 = vadd.f32 %v2499_v33, %v7499_v0  ;;  %v2549_v39 = vadd.f32 %v7528_v47, %v2498_v30  ;;  %v6465_v27 = vld [vmem:[#allocation8 + $0x100] ss:$16 sps:$4 sm:$0xff]   ;;  %v6515_v30 = vld [vmem:[#allocation8 + $0x304] ss:$16 sps:$4 sm:$0xff]  }
 0x1f6   : > { %4033 = vmatprep.subr.bf16.mxu1 %v6491_v28  ;;  %v2501_v35 = vpop.f32.mrf.mxu0 }
 0x1f7   : > { %v2502_v43 = vadd.f32 %v2501_v35, %v7506_v6  ;;  %3985 = vmatpush2.bf16.msra.mxu0 %v6444_v53  ;;  %v2551_v44 = vadd.f32 %v7531_v51, %v2500_v59  ;;  %v2961_v4 = vmax.f32 %v2549_v39, 0.0  ;;  %v6450_v6 = vld [vmem:[#allocation8 + $0x1a0] ss:$16 sps:$4 sm:$0xff]   ;;  %v6518_v59 = vld [vmem:[#allocation8 + $0xec] ss:$16 sps:$4 sm:$0xff]  }
 0x1f8   : > { %v2503_v3 = vpop.f32.mrf.mxu0  ;;  %3986 = vmatprep.subr.bf16.mxu0 %v6449_v54  ;;  %v6543_v53 = vld [vmem:[#allocation8 + $0x4e0] ss:$16 sps:$4 sm:$0xff]  }
 0x1f9   : > { %4034 = vmatpush1.bf16.msra.mxu1 %v6489_v34  ;;  %v2553_v0 = vadd.f32 %v7534_v60, %v2502_v43  ;;  %v2504_v45 = vadd.f32 %v2503_v3, %v2453_v38  ;;  %v2962_v49 = vmax.f32 %v2551_v44, 0.0  ;;  %v6500_v60 = vld [vmem:[#allocation8 + $0x3a4] ss:$16 sps:$4 sm:$0xff]   ;;  %v6513_v54 = vld [vmem:[#allocation8 + $0x300] ss:$16 sps:$4 sm:$0xff]  }
 0x1fa   : > { %4035 = vmatprep.subr.bf16.mxu1 %v6494_v36  ;;  %v2507_v48 = vpop.f32.mrf.mxu0  ;;  %v6549_v36 = vld [vmem:[#allocation8 + $0x4c0] ss:$16 sps:$4 sm:$0xff]  }
 0x1fb   : > { %v2966_v50 = vmax.f32 %v2553_v0, 0.0  ;;  %v2555_v47 = vadd.f32 %v7539_v62, %v2504_v45  ;;  %3987 = vmatpush2.bf16.msra.mxu0 %v6447_v56  ;;  %v6458_v62 = vld [vmem:[#allocation8 + $0x164] ss:$16 sps:$4 sm:$0xff]   ;;  %v2508_v28 = vadd.f32 %v2507_v48, %v7512_v18  ;;  %v6555_v43 = vld [vmem:[#allocation8 + $0x4a0] ss:$16 sps:$4 sm:$0xff]  }
 0x1fc   : > { %v2509_v55 = vpop.f32.mrf.mxu0  ;;  %3988 = vmatprep.subr.bf16.mxu0 %v6452_v41  ;;  %v6563_v41 = vld [vmem:[#allocation8 + $0x484] ss:$16 sps:$4 sm:$0xff]   ;;  %v6561_v44 = vld [vmem:[#allocation8 + $0x480] ss:$16 sps:$4 sm:$0xff]  }
 0x1fd   : > { %4036 = vmatpush2.bf16.msra.mxu1 %v6492_v42  ;;  %v7557_v1 = vpack.c.bf16 %v2966_v50, %v2961_v4  ;;  %v2967_v51 = vmax.f32 %v2555_v47, 0.0  ;;  %v2510_v22 = vadd.f32 %v2509_v55, %v7516_v24  ;;  %v6545_v24 = vld [vmem:[#allocation8 + $0x4e4] ss:$16 sps:$4 sm:$0xff]   ;;  %v2559_v33 = vadd.f32 %v7542_v5, %v2508_v28  ;;  %v6567_v48 = vld [vmem:[#allocation8 + $0x460] ss:$16 sps:$4 sm:$0xff]  }
 0x1fe   : > { %4037 = vmatprep.subr.bf16.mxu1 %v6497_v46  ;;  %v2511_v2 = vpop.f32.mrf.mxu0  ;;  %v6557_v5 = vld [vmem:[#allocation8 + $0x4a4] ss:$16 sps:$4 sm:$0xff]   ;;  %v6573_v47 = vld [vmem:[#allocation8 + $0x440] ss:$16 sps:$4 sm:$0xff]  }
 0x1ff   : > { %3989 = vmatpush2.bf16.msra.mxu0 %v6450_v6  ;;  %v7559_v57 = vpack.c.bf16 %v2967_v51, %v2962_v49  ;;  %v2561_v25 = vadd.f32 %v7544_v13, %v2510_v22  ;;  %v6551_v13 = vld [vmem:[#allocation8 + $0x4c4] ss:$16 sps:$4 sm:$0xff]   ;;  %v2971_v35 = vmax.f32 %v2559_v33, 0.0  ;;  %v6579_v55 = vld [vmem:[#allocation8 + $0x420] ss:$16 sps:$4 sm:$0xff]  }
 0x200   : > { %3990 = vmatprep.subr.bf16.mxu0 %v6455_v58  ;;  %v2512_v15 = vpop.f32.mrf.mxu0  ;;  %v6569_v45 = vld [vmem:[#allocation8 + $0x464] ss:$16 sps:$4 sm:$0xff]   ;;  %v6593_v49 = vld [vmem:[#allocation8 + $0x2ec] ss:$16 sps:$4 sm:$0xff]  }
 0x201   : > { %4038 = vmatpush2.bf16.msra.mxu1 %v6495_v61  ;;  %4000 = vmatprep.mubr.bf16.mxu0 %v7559_v57  ;;  %v2972_v29 = vmax.f32 %v2561_v25, 0.0  ;;  %v7570_v56 = vpack.c.bf16 %v2971_v35, %v2971_v35  ;;  %v6575_v50 = vld [vmem:[#allocation8 + $0x444] ss:$16 sps:$4 sm:$0xff]   ;;  %v6585_v61 = vld [vmem:[#allocation8 + $0x400] ss:$16 sps:$4 sm:$0xff]  }
 0x202   : > { %4039 = vmatprep.subr.bf16.mxu1 %v6500_v60  ;;  %v6581_v6 = vld [vmem:[#allocation8 + $0x424] ss:$16 sps:$4 sm:$0xff]  }
 0x203   : > { %3991 = vmatpush2.bf16.msra.mxu0 %v6453_v7  ;;  %v7566_v34 = vpack.c.bf16 %v2972_v29, %v2972_v29  ;;  %v6587_v58 = vld [vmem:[#allocation8 + $0x404] ss:$16 sps:$4 sm:$0xff]  }
 0x204   : > { %3992 = vmatprep.subr.bf16.mxu0 %v6458_v62 }
 0x205   : > { %4040 = vmatpush2.bf16.msra.mxu1 %v6498_v14 }
 0x206   : > { %4041 = vmatprep.subr.bf16.mxu1 %v6503_v8 }
 0x207   : > { %3993 = vmatpush2.bf16.msra.mxu0 %v6456_v9  ;;  %v858_v9 = vsub.s32 3, %v7481_v32 }
 0x208   : > { %3994 = vmatprep.subr.bf16.mxu0 %v6461_v10  ;;  %v854_v10 = vsub.s32 2, %v7481_v32 }
 0x209   : > { %4042 = vmatpush2.bf16.msra.mxu1 %v6501_v63  ;;  %v7576_v63 = vld [vmem:[#allocation7] sm:$0x1f] }
 0x20a   : > { %4043 = vmatprep.subr.bf16.mxu1 %v6506_v11  ;;  %v859_v11 = vrot.slane %v7576_v63, %v858_v9 }
 0x20b   : > { %3995 = vmatpush2.bf16.msra.mxu0 %v6459_v12  ;;  %v855_v12 = vrot.slane %v7576_v63, %v854_v10 }
 0x20c   : > { %3996 = vmatprep.subr.bf16.mxu0 %v6464_v16 }
 0x20d   : > { %4044 = vmatpush2.bf16.msra.mxu1 %v6504_v17 }
 0x20e   : > { %4045 = vmatprep.subr.bf16.mxu1 %v6509_v19 }
 0x20f   : > { %3997 = vmatpush2.bf16.msra.mxu0 %v6462_v21 }
 0x210   : > { %3998 = vmatprep.subr.bf16.mxu0 %v6467_v23 }
 0x211   : > { %4046 = vmatpush2.bf16.msra.mxu1 %v6507_v20 }
 0x212   : > { %4047 = vmatprep.subr.bf16.mxu1 %v6512_v26 }
 0x213   : > { %3999 = vmatpush2.bf16.msra.mxu0 %v6465_v27 }
 0x214   : > { %4070 = vmatprep.subr.bf16.mxu0 %v6545_v24 }
 0x215   : > { %4048 = vmatpush2.bf16.msra.mxu1 %v6510_v31 }
 0x216   : > { %4049 = vmatprep.subr.bf16.mxu1 %v6515_v30  ;;  %4001 = vmatmul.mubr.bf16.vlgmr.msra.gmra.mxu0 %v7557_v1 }
 0x217   : > { %v2599_v18 = vpop.f32.mrf.mxu1  ;;  %4010 = vmatprep.mubr.bf16.mxu0 %v7566_v34  ;;  %4071 = vmatpush1.bf16.msra.mxu0 %v6543_v53 }
 0x218   : > { %4072 = vmatprep.subr.bf16.mxu0 %v6551_v13  ;;  %v2600_v17 = vadd.f32 %v2599_v18, %v855_v12 }
 0x219   : > { %v2601_v38 = vpop.f32.mrf.mxu1  ;;  %4050 = vmatpush2.bf16.msra.mxu1 %v6513_v54 }
 0x21a   : > { %4121 = vmatprep.subr.bf16.mxu1 %v6518_v59  ;;  %v2602_v16 = vadd.f32 %v2601_v38, %v859_v11 }
 0x21b   : > { %v2603_v39 = vpop.f32.mrf.mxu1  ;;  %4073 = vmatpush1.bf16.msra.mxu0 %v6549_v36 }
 0x21c   : > { %4074 = vmatprep.subr.bf16.mxu0 %v6557_v5  ;;  %v2604_v21 = vadd.f32 %v2603_v39, %v855_v12 }
 0x21d   : > { %v2605_v3 = vpop.f32.mrf.mxu1 }
 0x21e   : > { %4011 = vmatmul.mubr.bf16.gmra.mxu0 %v7570_v56  ;;  %v2606_v27 = vadd.f32 %v2605_v3, %v859_v11 }
 0x21f   : > { %v2609_v42 = vpop.f32.mrf.mxu1  ;;  %4075 = vmatpush1.bf16.msra.mxu0 %v6555_v43  ;;  %4102 = vmatprep.mubr.bf16.mxu0 %v7121_v52 }
 0x220   : > { %4076 = vmatprep.subr.bf16.mxu0 %v6563_v41  ;;  %v2610_v24 = vadd.f32 %v2609_v42, %v855_v12  ;;  %v6524_v12 = vld [vmem:[#allocation8 + $0xac] ss:$16 sps:$4 sm:$0xff]  }
 0x221   : > { %v2611_v0 = vpop.f32.mrf.mxu1 }
 0x222   : > { %v2612_v54 = vadd.f32 %v2611_v0, %v859_v11 }
 0x223   : > { %v2613_v46 = vpop.f32.mrf.mxu1  ;;  %4077 = vmatpush1.bf16.msra.mxu0 %v6561_v44 }
 0x224   : > { %4078 = vmatprep.subr.bf16.mxu0 %v6569_v45 }
 0x225   : > { %v2614_v4 = vpop.f32.mrf.mxu1 }
 0x227   : > { %4079 = vmatpush1.bf16.msra.mxu0 %v6567_v48 }
 0x228   : > { %4080 = vmatprep.subr.bf16.mxu0 %v6575_v50 }
 0x22b   : > { %4081 = vmatpush1.bf16.msra.mxu0 %v6573_v47 }
 0x22c   : > { %4082 = vmatprep.subr.bf16.mxu0 %v6581_v6 }
 0x22f   : > { %4083 = vmatpush1.bf16.msra.mxu0 %v6579_v55 }
 0x230   : > { %4084 = vmatprep.subr.bf16.mxu0 %v6587_v58 }
 0x232   : > { %v2650_v51 = vpop.f32.mrf.mxu0 }
 0x233   : > { %4085 = vmatpush1.bf16.msra.mxu0 %v6585_v61  ;;  %v2651_v20 = vadd.f32 %v2650_v51, %v2600_v17 }
 0x234   : > { %v2652_v60 = vpop.f32.mrf.mxu0  ;;  %4172 = vmatprep.subr.bf16.mxu0 %v6593_v49  ;;  %v6516_v49 = vld [vmem:[#allocation8 + $0xe8] ss:$16 sps:$4 sm:$0xff]  }
 0x235   : > { %v2653_v23 = vadd.f32 %v2652_v60, %v2602_v16  ;;  %v6522_v16 = vld [vmem:[#allocation8 + $0xa8] ss:$16 sps:$4 sm:$0xff]  }
 0x236   : > { %v2654_v2 = vpop.f32.mrf.mxu0 }
 0x237   : > { %v2655_v28 = vadd.f32 %v2654_v2, %v2604_v21  ;;  %v6521_v2 = vld [vmem:[#allocation8 + $0xcc] ss:$16 sps:$4 sm:$0xff]  }
 0x238   : > { %v2656_v7 = vpop.f32.mrf.mxu0  ;;  %v6530_v21 = vld [vmem:[#allocation8 + $0x6c] ss:$16 sps:$4 sm:$0xff]  }
 0x239   : > { %v2657_v33 = vadd.f32 %v2656_v7, %v2606_v27  ;;  %v6531_v27 = vld [vmem:[#allocation8 + $0x48] ss:$16 sps:$4 sm:$0xff]  }
 0x23a   : > { %v2660_v62 = vpop.f32.mrf.mxu0 }
 0x23b   : > { %v2661_v39 = vadd.f32 %v2660_v62, %v2610_v24  ;;  %v6536_v24 = vld [vmem:[#allocation8 + $0x2c] ss:$16 sps:$4 sm:$0xff]  }
 0x23c   : > { %v2662_v15 = vpop.f32.mrf.mxu0 }
 0x23d   : > { %v2663_v3 = vadd.f32 %v2662_v15, %v2612_v54  ;;  %v6539_v54 = vld [vmem:[#allocation8 + $0xc] ss:$16 sps:$4 sm:$0xff]  }
 0x23e   : > { %v2664_v14 = vpop.f32.mrf.mxu0 }
 0x240   : > { %v2665_v8 = vpop.f32.mrf.mxu0 }
 0x241   : > { %v6519_v8 = vld [vmem:[#allocation8 + $0xc8] ss:$16 sps:$4 sm:$0xff]  }
 0x256   : > { %v2752_v19 = vpop.f32.mrf.mxu0 }
 0x257   : > { %v2701_v22 = vpop.f32.mrf.mxu1 }
 0x258   : > { %v2754_v26 = vpop.f32.mrf.mxu0  ;;  %v2702_v29 = vadd.f32 %v2701_v22, %v2651_v20  ;;  %v6527_v22 = vld [vmem:[#allocation8 + $0x8c] ss:$16 sps:$4 sm:$0xff]  }
 0x259   : > { %v2703_v25 = vpop.f32.mrf.mxu1  ;;  %v6533_v20 = vld [vmem:[#allocation8 + $0x4c] ss:$16 sps:$4 sm:$0xff]  }
 0x25a   : > { %v2704_v31 = vadd.f32 %v2703_v25, %v2653_v23  ;;  %v2756_v53 = vpop.f32.mrf.mxu0  ;;  %v2753_v5 = vadd.f32 %v2752_v19, %v2702_v29  ;;  %v6525_v19 = vld [vmem:[#allocation8 + $0x88] ss:$16 sps:$4 sm:$0xff]  }
 0x25b   : > { %v2705_v30 = vpop.f32.mrf.mxu1  ;;  %v6528_v23 = vld [vmem:[#allocation8 + $0x68] ss:$16 sps:$4 sm:$0xff]  }
 0x25c   : > { %v2706_v13 = vadd.f32 %v2705_v30, %v2655_v28  ;;  %v2758_v36 = vpop.f32.mrf.mxu0  ;;  %v2755_v18 = vadd.f32 %v2754_v26, %v2704_v31  ;;  %v2963_v0 = vmax.f32 %v2753_v5, 0.0 }
 0x25d   : > { %v2707_v59 = vpop.f32.mrf.mxu1 }
 0x25e   : > { %v2757_v35 = vadd.f32 %v2756_v53, %v2706_v13  ;;  %v2708_v38 = vadd.f32 %v2707_v59, %v2657_v33  ;;  %v2762_v41 = vpop.f32.mrf.mxu0  ;;  %v2964_v4 = vmax.f32 %v2755_v18, 0.0  ;;  %v6534_v53 = vld [vmem:[#allocation8 + $0x28] ss:$16 sps:$4 sm:$0xff]   ;;  %v6542_v18 = vld [vmem:[#allocation8 + $0x1ec] ss:$16 sps:$4 sm:$0xff]  }
 0x25f   : > { %v2711_v43 = vpop.f32.mrf.mxu1 }
 0x260   : > { %v2759_v44 = vadd.f32 %v2758_v36, %v2708_v38  ;;  %v2968_v45 = vmax.f32 %v2757_v35, 0.0  ;;  %v2712_v46 = vadd.f32 %v2711_v43, %v2661_v39  ;;  %v2764_v48 = vpop.f32.mrf.mxu0  ;;  %v6537_v36 = vld [vmem:[#allocation8 + $0x8] ss:$16 sps:$4 sm:$0xff]  }
 0x261   : > { %v2713_v42 = vpop.f32.mrf.mxu1  ;;  %v6540_v43 = vld [vmem:[#allocation8 + $0x1e8] ss:$16 sps:$4 sm:$0xff]  }
 0x262   : > { %v2969_v50 = vmax.f32 %v2759_v44, 0.0  ;;  %v2714_v47 = vadd.f32 %v2713_v42, %v2663_v3  ;;  %v2766_v6 = vpop.f32.mrf.mxu0  ;;  %v7586_v51 = vpack.c.bf16 %v2968_v45, %v2963_v0  ;;  %v2763_v60 = vadd.f32 %v2762_v41, %v2712_v46  ;;  %v6548_v41 = vld [vmem:[#allocation8 + $0x1cc] ss:$16 sps:$4 sm:$0xff]   ;;  %v6546_v45 = vld [vmem:[#allocation8 + $0x1c8] ss:$16 sps:$4 sm:$0xff]  }
 0x263   : > { %v2715_v55 = vpop.f32.mrf.mxu1  ;;  %v6554_v46 = vld [vmem:[#allocation8 + $0x1ac] ss:$16 sps:$4 sm:$0xff]   ;;  %v6552_v42 = vld [vmem:[#allocation8 + $0x1a8] ss:$16 sps:$4 sm:$0xff]  }
 0x264   : > { %v7584_v58 = vpack.c.bf16 %v2969_v50, %v2964_v4  ;;  %v2765_v61 = vadd.f32 %v2764_v48, %v2714_v47  ;;  %v2767_v7 = vpop.f32.mrf.mxu0  ;;  %v2973_v11 = vmax.f32 %v2763_v60, 0.0  ;;  %v6560_v48 = vld [vmem:[#allocation8 + $0x18c] ss:$16 sps:$4 sm:$0xff]   ;;  %v862_v4 = vsub.s32 4, %v7481_v32  ;;  %v6558_v50 = vld [vmem:[#allocation8 + $0x188] ss:$16 sps:$4 sm:$0xff]  }
 0x265   : > { %v2716_v62 = vpop.f32.mrf.mxu1  ;;  %v6566_v47 = vld [vmem:[#allocation8 + $0x16c] ss:$16 sps:$4 sm:$0xff]   ;;  %v6564_v55 = vld [vmem:[#allocation8 + $0x168] ss:$16 sps:$4 sm:$0xff]  }
 0x266   : > { %v2974_v15 = vmax.f32 %v2765_v61, 0.0  ;;  %4051 = vmatprep.mubr.bf16.mxu1 %v7584_v58  ;;  %v7593_v17 = vpack.c.bf16 %v2973_v11, %v2973_v11  ;;  %v863_v0 = vrot.slane %v7576_v63, %v862_v4  ;;  %v6572_v61 = vld [vmem:[#allocation8 + $0x14c] ss:$16 sps:$4 sm:$0xff]   ;;  %v6570_v62 = vld [vmem:[#allocation8 + $0x148] ss:$16 sps:$4 sm:$0xff]  }
 0x267   : > { %4052 = vmatmul.mubr.bf16.vlgmr.msra.gmra.mxu1 %v7586_v51  ;;  %v6591_v4 = vld [vmem:[#allocation8 + $0x2e8] ss:$16 sps:$4 sm:$0xff]  }
 0x268   : > { %v7590_v14 = vpack.c.bf16 %v2974_v15, %v2974_v15  ;;  %4122 = vmatpush1.bf16.msra.mxu1 %v6516_v49 }
 0x269   : > { %4123 = vmatprep.subr.bf16.mxu1 %v6521_v2 }
 0x26a   : > { %4061 = vmatprep.mubr.bf16.mxu1 %v7590_v14 }
 0x26c   : > { %4124 = vmatpush1.bf16.msra.mxu1 %v6519_v8  ;;  %v6578_v8 = vld [vmem:[#allocation8 + $0x12c] ss:$16 sps:$4 sm:$0xff]  }
 0x26d   : > { %4125 = vmatprep.subr.bf16.mxu1 %v6524_v12 }
 0x26f   : > { %4062 = vmatmul.mubr.bf16.gmra.mxu1 %v7593_v17 }
 0x270   : > { %4126 = vmatpush1.bf16.msra.mxu1 %v6522_v16  ;;  %4153 = vmatprep.mubr.bf16.mxu1 %v7559_v57 }
 0x271   : > { %4127 = vmatprep.subr.bf16.mxu1 %v6527_v22 }
 0x274   : > { %4128 = vmatpush1.bf16.msra.mxu1 %v6525_v19 }
 0x275   : > { %4129 = vmatprep.subr.bf16.mxu1 %v6530_v21 }
 0x276   : > { %v5769_v25 = vpop.f32.mrf.mxu0 }
 0x277   : > { %v5797_v26 = vpop.f32.mrf.mxu1 }
 0x278   : > { %4130 = vmatpush1.bf16.msra.mxu1 %v6528_v23  ;;  %v5770_v28 = vpop.f32.mrf.mxu0 }
 0x279   : > { %v5798_v31 = vpop.f32.mrf.mxu1  ;;  %4131 = vmatprep.subr.bf16.mxu1 %v6533_v20  ;;  %v5771_v6 = vadd.f32 %v5770_v28, %v5769_v25  ;;  %v6576_v20 = vld [vmem:[#allocation8 + $0x128] ss:$16 sps:$4 sm:$0xff]  }
 0x27a   : > { %v5772_v29 = vpop.f32.mrf.mxu0  ;;  %v5799_v60 = vadd.f32 %v5798_v31, %v5797_v26  ;;  %v6584_v26 = vld [vmem:[#allocation8 + $0x10c] ss:$16 sps:$4 sm:$0xff]  }
 0x27b   : > { %v5800_v30 = vpop.f32.mrf.mxu1  ;;  %v2804_v49 = vadd.f32 %v5771_v6, %v863_v0  ;;  %v6594_v6 = vld [vmem:[#allocation8 + $0x4c8] ss:$16 sps:$4 sm:$0xff]  }
 0x27c   : > { %4132 = vmatpush1.bf16.msra.mxu1 %v6531_v27  ;;  %v5773_v57 = vpop.f32.mrf.mxu0 }
 0x27d   : > { %v5801_v33 = vpop.f32.mrf.mxu1  ;;  %4133 = vmatprep.subr.bf16.mxu1 %v6536_v24  ;;  %v5774_v2 = vadd.f32 %v5773_v57, %v5772_v29  ;;  %v2852_v11 = vadd.f32 %v5799_v60, %v2804_v49  ;;  %v6597_v49 = vld [vmem:[#allocation8 + $0x2c8] ss:$16 sps:$4 sm:$0xff]  }
 0x27e   : > { %v5775_v13 = vpop.f32.mrf.mxu0  ;;  %v5802_v21 = vadd.f32 %v5801_v33, %v5800_v30  ;;  %v6590_v30 = vld [vmem:[#allocation8 + $0x4ec] ss:$16 sps:$4 sm:$0xff]  }
 0x27f   : > { %v5803_v59 = vpop.f32.mrf.mxu1  ;;  %v2807_v12 = vadd.f32 %v5774_v2, %v863_v0  ;;  %v6605_v2 = vld [vmem:[#allocation8 + $0x2ac] ss:$16 sps:$4 sm:$0xff]  }
 0x280   : > { %4134 = vmatpush1.bf16.msra.mxu1 %v6534_v53  ;;  %v5776_v35 = vpop.f32.mrf.mxu0 }
 0x281   : > { %4135 = vmatprep.subr.bf16.mxu1 %v6539_v54  ;;  %v5804_v38 = vpop.f32.mrf.mxu1  ;;  %v5777_v16 = vadd.f32 %v5776_v35, %v5775_v13  ;;  %v2855_v28 = vadd.f32 %v5802_v21, %v2807_v12  ;;  %v6582_v13 = vld [vmem:[#allocation8 + $0x108] ss:$16 sps:$4 sm:$0xff]  }
 0x282   : > { %v5778_v5 = vpop.f32.mrf.mxu0  ;;  %v5805_v24 = vadd.f32 %v5804_v38, %v5803_v59  ;;  %v6588_v38 = vld [vmem:[#allocation8 + $0x4e8] ss:$16 sps:$4 sm:$0xff]  }
 0x283   : > { %v5806_v39 = vpop.f32.mrf.mxu1  ;;  %v2812_v31 = vadd.f32 %v5777_v16, %v863_v0  ;;  %v6609_v12 = vld [vmem:[#allocation8 + $0x288] ss:$16 sps:$4 sm:$0xff]   ;;  %v6617_v16 = vld [vmem:[#allocation8 + $0x26c] ss:$16 sps:$4 sm:$0xff]  }
 0x284   : > { %4136 = vmatpush1.bf16.msra.mxu1 %v6537_v36  ;;  %v5779_v44 = vpop.f32.mrf.mxu0  ;;  %v6618_v21 = vld [vmem:[#allocation8 + $0x448] ss:$16 sps:$4 sm:$0xff]  }
 0x285   : > { %4137 = vmatprep.subr.bf16.mxu1 %v6542_v18  ;;  %v5807_v3 = vpop.f32.mrf.mxu1  ;;  %v2860_v33 = vadd.f32 %v5805_v24, %v2812_v31  ;;  %v6630_v31 = vld [vmem:[#allocation8 + $0x408] ss:$16 sps:$4 sm:$0xff]  }
 0x286   : > { %v6633_v24 = vld [vmem:[#allocation8 + $0x208] ss:$16 sps:$4 sm:$0xff]  }
 0x288   : > { %4138 = vmatpush2.bf16.msra.mxu1 %v6540_v43 }
 0x289   : > { %4139 = vmatprep.subr.bf16.mxu1 %v6548_v41 }
 0x28c   : > { %4140 = vmatpush2.bf16.msra.mxu1 %v6546_v45  ;;  %v6596_v45 = vld [vmem:[#allocation8 + $0x4cc] ss:$16 sps:$4 sm:$0xff]  }
 0x28d   : > { %4141 = vmatprep.subr.bf16.mxu1 %v6554_v46 }
 0x290   : > { %4142 = vmatpush2.bf16.msra.mxu1 %v6552_v42 }
 0x291   : > { %4143 = vmatprep.subr.bf16.mxu1 %v6560_v48 }
 0x294   : > { %4144 = vmatpush2.bf16.msra.mxu1 %v6558_v50 }
 0x295   : > { %4145 = vmatprep.subr.bf16.mxu1 %v6566_v47  ;;  %v6599_v47 = vld [vmem:[#allocation8 + $0x2cc] ss:$16 sps:$4 sm:$0xff]  }
 0x296   : > { %v5825_v7 = vpop.f32.mrf.mxu0 }
 0x298   : > { %4146 = vmatpush2.bf16.msra.mxu1 %v6564_v55  ;;  %v5826_v15 = vpop.f32.mrf.mxu0  ;;  %v6602_v55 = vld [vmem:[#allocation8 + $0x4ac] ss:$16 sps:$4 sm:$0xff]  }
 0x299   : > { %4147 = vmatprep.subr.bf16.mxu1 %v6572_v61  ;;  %v5827_v22 = vadd.f32 %v5826_v15, %v5825_v7  ;;  %v6608_v7 = vld [vmem:[#allocation8 + $0x48c] ss:$16 sps:$4 sm:$0xff]  }
 0x29a   : > { %v5828_v19 = vpop.f32.mrf.mxu0  ;;  %v6611_v15 = vld [vmem:[#allocation8 + $0x28c] ss:$16 sps:$4 sm:$0xff]  }
 0x29b   : > { %v2947_v63 = vpop.f32.mrf.mxu1  ;;  %v2900_v23 = vadd.f32 %v5827_v22, %v2852_v11  ;;  %v6614_v11 = vld [vmem:[#allocation8 + $0x46c] ss:$16 sps:$4 sm:$0xff]   ;;  %v6612_v22 = vld [vmem:[#allocation8 + $0x468] ss:$16 sps:$4 sm:$0xff]  }
 0x29c   : > { %4148 = vmatpush2.bf16.msra.mxu1 %v6570_v62  ;;  %v5829_v25 = vpop.f32.mrf.mxu0 }
 0x29d   : > { %v2949_v27 = vpop.f32.mrf.mxu1  ;;  %4149 = vmatprep.subr.bf16.mxu1 %v6578_v8  ;;  %v5830_v29 = vadd.f32 %v5829_v25, %v5828_v19  ;;  %v2948_v54 = vadd.f32 %v2947_v63, %v2900_v23  ;;  %v6606_v8 = vld [vmem:[#allocation8 + $0x488] ss:$16 sps:$4 sm:$0xff]   ;;  %v6620_v19 = vld [vmem:[#allocation8 + $0x44c] ss:$16 sps:$4 sm:$0xff]  }
 0x29e   : > { %v5831_v53 = vpop.f32.mrf.mxu0  ;;  %v6623_v63 = vld [vmem:[#allocation8 + $0x24c] ss:$16 sps:$4 sm:$0xff]  }
 0x29f   : > { %v2950_v57 = vpop.f32.mrf.mxu1  ;;  %v2903_v36 = vadd.f32 %v5830_v29, %v2855_v28  ;;  %v2965_v44 = vmax.f32 %v2948_v54, 0.0  ;;  %v6626_v23 = vld [vmem:[#allocation8 + $0x42c] ss:$16 sps:$4 sm:$0xff]   ;;  %v6639_v54 = vld [vmem:[#allocation8 + $0x3c8] ss:$16 sps:$4 sm:$0xff]  }
 0x2a0   : > { %4150 = vmatpush2.bf16.msra.mxu1 %v6576_v20  ;;  %v5832_v18 = vpop.f32.mrf.mxu0  ;;  %v6621_v20 = vld [vmem:[#allocation8 + $0x248] ss:$16 sps:$4 sm:$0xff]   ;;  %v6629_v25 = vld [vmem:[#allocation8 + $0x22c] ss:$16 sps:$4 sm:$0xff]  }
 0x2a1   : > { %v2952_v35 = vpop.f32.mrf.mxu1  ;;  %4151 = vmatprep.subr.bf16.mxu1 %v6584_v26  ;;  %v2951_v5 = vadd.f32 %v2950_v57, %v2903_v36  ;;  %v5833_v39 = vadd.f32 %v5832_v18, %v5831_v53  ;;  %v6632_v27 = vld [vmem:[#allocation8 + $0x40c] ss:$16 sps:$4 sm:$0xff]   ;;  %v6627_v26 = vld [vmem:[#allocation8 + $0x228] ss:$16 sps:$4 sm:$0xff]  }
 0x2a2   : > { %v5834_v41 = vpop.f32.mrf.mxu0  ;;  %v6635_v28 = vld [vmem:[#allocation8 + $0x20c] ss:$16 sps:$4 sm:$0xff]   ;;  %v6636_v53 = vld [vmem:[#allocation8 + $0x3e8] ss:$16 sps:$4 sm:$0xff]  }
 0x2a3   : > { %v2955_v43 = vpop.f32.mrf.mxu1  ;;  %v2970_v3 = vmax.f32 %v2951_v5, 0.0  ;;  %v2908_v59 = vadd.f32 %v5833_v39, %v2860_v33  ;;  %v6638_v29 = vld [vmem:[#allocation8 + $0x3ec] ss:$16 sps:$4 sm:$0xff]   ;;  %v6645_v35 = vld [vmem:[#allocation8 + $0x388] ss:$16 sps:$4 sm:$0xff]  }
 0x2a4   : > { %4152 = vmatpush2.bf16.msra.mxu1 %v6582_v13  ;;  %v5835_v46 = vpop.f32.mrf.mxu0  ;;  %v6641_v57 = vld [vmem:[#allocation8 + $0x3cc] ss:$16 sps:$4 sm:$0xff]   ;;  %v6642_v13 = vld [vmem:[#allocation8 + $0x3a8] ss:$16 sps:$4 sm:$0xff]  }
 0x2a5   : > { %4223 = vmatprep.subr.bf16.mxu1 %v6590_v30  ;;  %v2957_v42 = vpop.f32.mrf.mxu1  ;;  %v7599_v48 = vpack.c.bf16 %v2970_v3, %v2965_v44  ;;  %v2956_v50 = vadd.f32 %v2955_v43, %v2908_v59  ;;  %v6644_v36 = vld [vmem:[#allocation8 + $0x3ac] ss:$16 sps:$4 sm:$0xff]   ;;  %v6648_v33 = vld [vmem:[#allocation8 + $0x368] ss:$16 sps:$4 sm:$0xff]  }
 0x2a6   : > { %v6647_v18 = vld [vmem:[#allocation8 + $0x38c] ss:$16 sps:$4 sm:$0xff]   ;;  %v6651_v43 = vld [vmem:[#allocation8 + $0x348] ss:$16 sps:$4 sm:$0xff]  }
 0x2a7   : > { %4154 = vmatmul.mubr.bf16.vlgmr.msra.gmra.mxu1 %v7557_v1  ;;  %v2958_v0 = vpop.f32.mrf.mxu1  ;;  %4103 = vmatmul.mubr.bf16.vlgmr.msra.gmra.mxu0 %v7599_v48  ;;  %v2975_v60 = vmax.f32 %v2956_v50, 0.0  ;;  %v6600_v1 = vld [vmem:[#allocation8 + $0x4a8] ss:$16 sps:$4 sm:$0xff]   ;;  %v6650_v30 = vld [vmem:[#allocation8 + $0x36c] ss:$16 sps:$4 sm:$0xff]  }
 0x2a8   : > { %4163 = vmatprep.mubr.bf16.mxu1 %v7566_v34  ;;  %4224 = vmatpush1.bf16.msra.mxu1 %v6588_v38  ;;  %v6603_v34 = vld [vmem:[#allocation8 + $0x2a8] ss:$16 sps:$4 sm:$0xff]   ;;  %v6653_v39 = vld [vmem:[#allocation8 + $0x34c] ss:$16 sps:$4 sm:$0xff]  }
 0x2a9   : > { %4225 = vmatprep.subr.bf16.mxu1 %v6596_v45  ;;  %v2959_v61 = vpop.f32.mrf.mxu1  ;;  %4173 = vmatpush1.bf16.msra.mxu0 %v6591_v4  ;;  %v2985_v62 = vpack.c.bf16 %v2975_v60, %v2975_v60  ;;  %v6656_v44 = vld [vmem:[#allocation8 + $0x32c] ss:$16 sps:$4 sm:$0xff]   ;;  %v6654_v59 = vld [vmem:[#allocation8 + $0x328] ss:$16 sps:$4 sm:$0xff]  }
 0x2aa   : > { %4112 = vmatprep.mubr.bf16.mxu0 %v7121_v52  ;;  %4174 = vmatprep.subr.bf16.mxu0 %v6599_v47  ;;  %v6659_v45 = vld [vmem:[#allocation8 + $0x30c] ss:$16 sps:$4 sm:$0xff]   ;;  %v6657_v42 = vld [vmem:[#allocation8 + $0x308] ss:$16 sps:$4 sm:$0xff]  }
 0x2ab   : > { %v6662_v4 = vld [vmem:[#allocation11 + $0x74] ss:$8 sps:$4 sm:$0xff]   ;;  %v6660_v47 = vld [vmem:[#allocation11 + $0x70] ss:$8 sps:$4 sm:$0xff]   ;;  %v6665_v0 = vld [vmem:[#allocation11 + $0x64] ss:$8 sps:$4 sm:$0xff]  }
 0x2ac   : > { %4226 = vmatpush1.bf16.msra.mxu1 %v6594_v6  ;;  %v6663_v6 = vld [vmem:[#allocation11 + $0x60] ss:$8 sps:$4 sm:$0xff]   ;;  %v6666_v61 = vld [vmem:[#allocation11 + $0x50] ss:$8 sps:$4 sm:$0xff]  }
 0x2ad   : > { %4227 = vmatprep.subr.bf16.mxu1 %v6602_v55  ;;  %4175 = vmatpush1.bf16.msra.mxu0 %v6597_v49  ;;  %v6668_v55 = vld [vmem:[#allocation11 + $0x54] ss:$8 sps:$4 sm:$0xff]   ;;  %v6671_v49 = vld [vmem:[#allocation11 + $0x44] ss:$8 sps:$4 sm:$0xff]   ;;  %v6669_v60 = vld [vmem:[#allocation11 + $0x40] ss:$8 sps:$4 sm:$0xff]  }
 0x2ae   : > { %4176 = vmatprep.subr.bf16.mxu0 %v6605_v2  ;;  %v6674_v2 = vld [vmem:[#allocation11 + $0x34] ss:$8 sps:$4 sm:$0xff]  }
 0x2af   : > { %4164 = vmatmul.mubr.bf16.gmra.mxu1 %v7570_v56  ;;  %4113 = vmatmul.mubr.bf16.gmra.mxu0 %v2985_v62  ;;  %v6615_v56 = vld [vmem:[#allocation8 + $0x268] ss:$16 sps:$4 sm:$0xff]  }
 0x2b0   : > { %4228 = vmatpush1.bf16.msra.mxu1 %v6600_v1  ;;  %4255 = vmatprep.mubr.bf16.mxu1 %v7121_v52  ;;  %v6672_v1 = vld [vmem:[#allocation11 + $0x30] ss:$8 sps:$4 sm:$0xff]  }
 0x2b1   : > { %4229 = vmatprep.subr.bf16.mxu1 %v6608_v7  ;;  %4177 = vmatpush1.bf16.msra.mxu0 %v6603_v34  ;;  %v6710_v7 = vld [vmem:[#allocation11 + $0x174] ss:$8 sps:$4 sm:$0xff]   ;;  %v6675_v34 = vld [vmem:[#allocation11 + $0x20] ss:$8 sps:$4 sm:$0xff]  }
 0x2b2   : > { %4204 = vmatprep.mubr.bf16.mxu0 %v7584_v58  ;;  %4178 = vmatprep.subr.bf16.mxu0 %v6611_v15  ;;  %v6624_v58 = vld [vmem:[#allocation8 + $0x428] ss:$16 sps:$4 sm:$0xff]  }
 0x2b3   : > { %v6713_v15 = vld [vmem:[#allocation11 + $0x164] ss:$8 sps:$4 sm:$0xff]  }
 0x2b4   : > { %4230 = vmatpush1.bf16.msra.mxu1 %v6606_v8  ;;  %v6680_v8 = vld [vmem:[#allocation11 + $0x14] ss:$8 sps:$4 sm:$0xff]  }
 0x2b5   : > { %4231 = vmatprep.subr.bf16.mxu1 %v6614_v11  ;;  %4179 = vmatpush1.bf16.msra.mxu0 %v6609_v12  ;;  %v6683_v11 = vld [vmem:[#allocation11 + $0x4] ss:$8 sps:$4 sm:$0xff]   ;;  %v6714_v12 = vld [vmem:[#allocation11 + $0x150] ss:$8 sps:$4 sm:$0xff]  }
 0x2b6   : > { %4180 = vmatprep.subr.bf16.mxu0 %v6617_v16  ;;  %v6716_v16 = vld [vmem:[#allocation11 + $0x154] ss:$8 sps:$4 sm:$0xff]  }
 0x2b8   : > { %4232 = vmatpush1.bf16.msra.mxu1 %v6612_v22  ;;  %v6719_v22 = vld [vmem:[#allocation11 + $0x144] ss:$8 sps:$4 sm:$0xff]  }
 0x2b9   : > { %4233 = vmatprep.subr.bf16.mxu1 %v6620_v19  ;;  %4181 = vmatpush1.bf16.msra.mxu0 %v6615_v56  ;;  %v6681_v19 = vld [vmem:[#allocation11] ss:$8 sps:$4 sm:$0xff]  }
 0x2ba   : > { %4182 = vmatprep.subr.bf16.mxu0 %v6623_v63  ;;  %v6717_v56 = vld [vmem:[#allocation11 + $0x140] ss:$8 sps:$4 sm:$0xff]   ;;  %v6686_v63 = vld [vmem:[#allocation11 + $0xf4] ss:$8 sps:$4 sm:$0xff]  }
 0x2bc   : > { %4234 = vmatpush1.bf16.msra.mxu1 %v6618_v21  ;;  %v6684_v21 = vld [vmem:[#allocation11 + $0xf0] ss:$8 sps:$4 sm:$0xff]  }
 0x2bd   : > { %4235 = vmatprep.subr.bf16.mxu1 %v6626_v23  ;;  %4183 = vmatpush1.bf16.msra.mxu0 %v6621_v20  ;;  %v6689_v23 = vld [vmem:[#allocation11 + $0xe4] ss:$8 sps:$4 sm:$0xff]   ;;  %v6720_v20 = vld [vmem:[#allocation11 + $0x130] ss:$8 sps:$4 sm:$0xff]  }
 0x2be   : > { %4184 = vmatprep.subr.bf16.mxu0 %v6629_v25  ;;  %v6722_v25 = vld [vmem:[#allocation11 + $0x134] ss:$8 sps:$4 sm:$0xff]  }
 0x2c0   : > { %4236 = vmatpush1.bf16.msra.mxu1 %v6624_v58  ;;  %v6687_v58 = vld [vmem:[#allocation11 + $0xe0] ss:$8 sps:$4 sm:$0xff]  }
 0x2c1   : > { %4237 = vmatprep.subr.bf16.mxu1 %v6632_v27  ;;  %4185 = vmatpush1.bf16.msra.mxu0 %v6627_v26  ;;  %v6692_v27 = vld [vmem:[#allocation11 + $0xd4] ss:$8 sps:$4 sm:$0xff]   ;;  %v6723_v26 = vld [vmem:[#allocation11 + $0x120] ss:$8 sps:$4 sm:$0xff]  }
 0x2c2   : > { %4186 = vmatprep.subr.bf16.mxu0 %v6635_v28  ;;  %v6725_v28 = vld [vmem:[#allocation11 + $0x124] ss:$8 sps:$4 sm:$0xff]  }
 0x2c4   : > { %4238 = vmatpush1.bf16.msra.mxu1 %v6630_v31  ;;  %v6690_v31 = vld [vmem:[#allocation11 + $0xd0] ss:$8 sps:$4 sm:$0xff]  }
 0x2c5   : > { %4187 = vmatpush1.bf16.msra.mxu0 %v6633_v24  ;;  %4741 = vmatprep.subr.bf16.mxu1 %v6710_v7  ;;  %v6695_v24 = vld [vmem:[#allocation11 + $0xc4] ss:$8 sps:$4 sm:$0xff]   ;;  %v6744_v7 = vld [vmem:[#allocation11 + $0x1b0] ss:$8 sps:$4 sm:$0xff]  }
 0x2c6   : > { %4188 = vmatprep.subr.bf16.mxu0 %v6638_v29  ;;  %v6726_v29 = vld [vmem:[#allocation11 + $0x110] ss:$8 sps:$4 sm:$0xff]  }
 0x2c7   : > { %4256 = vmatmul.mubr.bf16.vlgmr.msra.gmra.mxu1 %v7599_v48 }
 0x2c8   : > { %4265 = vmatprep.mubr.bf16.mxu1 %v7121_v52 }
 0x2c9   : > { %4189 = vmatpush2.bf16.msra.mxu0 %v6636_v53  ;;  %v6728_v53 = vld [vmem:[#allocation11 + $0x114] ss:$8 sps:$4 sm:$0xff]  }
 0x2ca   : > { %4190 = vmatprep.subr.bf16.mxu0 %v6641_v57  ;;  %v6693_v57 = vld [vmem:[#allocation11 + $0xc0] ss:$8 sps:$4 sm:$0xff]  }
 0x2cd   : > { %4191 = vmatpush2.bf16.msra.mxu0 %v6639_v54  ;;  %v6698_v54 = vld [vmem:[#allocation11 + $0xb4] ss:$8 sps:$4 sm:$0xff]  }
 0x2ce   : > { %4192 = vmatprep.subr.bf16.mxu0 %v6644_v36  ;;  %v6729_v36 = vld [vmem:[#allocation11 + $0x100] ss:$8 sps:$4 sm:$0xff]  }
 0x2cf   : > { %4266 = vmatmul.mubr.bf16.gmra.mxu1 %v2985_v62  ;;  %v6711_v62 = vld [vmem:[#allocation11 + $0x160] ss:$8 sps:$4 sm:$0xff]  }
 0x2d1   : > { %4193 = vmatpush2.bf16.msra.mxu0 %v6642_v13  ;;  %v6731_v13 = vld [vmem:[#allocation11 + $0x104] ss:$8 sps:$4 sm:$0xff]  }
 0x2d2   : > { %4194 = vmatprep.subr.bf16.mxu0 %v6647_v18  ;;  %v6734_v18 = vld [vmem:[#allocation11 + $0x1f4] ss:$8 sps:$4 sm:$0xff]  }
 0x2d5   : > { %4195 = vmatpush2.bf16.msra.mxu0 %v6645_v35  ;;  %v6696_v35 = vld [vmem:[#allocation11 + $0xb0] ss:$8 sps:$4 sm:$0xff]  }
 0x2d6   : > { %v7610_v5 = vpop.f32.mrf.mxu0  ;;  %4196 = vmatprep.subr.bf16.mxu0 %v6650_v30  ;;  %v6732_v30 = vld [vmem:[#allocation11 + $0x1f0] ss:$8 sps:$4 sm:$0xff]  }
 0x2d8   : > { %v7612_v52 = vpop.f32.mrf.mxu0 }
 0x2d9   : > { %4197 = vmatpush2.bf16.msra.mxu0 %v6648_v33  ;;  %v6701_v33 = vld [vmem:[#allocation11 + $0xa4] ss:$8 sps:$4 sm:$0xff]  }
 0x2da   : > { %v7614_v41 = vpop.f32.mrf.mxu0  ;;  %4198 = vmatprep.subr.bf16.mxu0 %v6653_v39  ;;  %v6737_v39 = vld [vmem:[#allocation11 + $0x1e4] ss:$8 sps:$4 sm:$0xff]  }
 0x2dc   : > { %v7616_v3 = vpop.f32.mrf.mxu0 }
 0x2dd   : > { %4199 = vmatpush2.bf16.msra.mxu0 %v6651_v43  ;;  %v6699_v43 = vld [vmem:[#allocation11 + $0xa0] ss:$8 sps:$4 sm:$0xff]  }
 0x2de   : > { %v7618_v38 = vpop.f32.mrf.mxu0  ;;  %4200 = vmatprep.subr.bf16.mxu0 %v6656_v44  ;;  %v6735_v44 = vld [vmem:[#allocation11 + $0x1e0] ss:$8 sps:$4 sm:$0xff]  }
 0x2e0   : > { %v7620_v46 = vpop.f32.mrf.mxu0 }
 0x2e1   : > { %4201 = vmatpush2.bf16.msra.mxu0 %v6654_v59  ;;  %v6704_v59 = vld [vmem:[#allocation11 + $0x94] ss:$8 sps:$4 sm:$0xff]  }
 0x2e2   : > { %v4016_v48 = vpop.f32.mrf.mxu0  ;;  %4202 = vmatprep.subr.bf16.mxu0 %v6659_v45  ;;  %v6740_v45 = vld [vmem:[#allocation11 + $0x1d4] ss:$8 sps:$4 sm:$0xff]  }
 0x2e3   : > { %v6738_v48 = vld [vmem:[#allocation11 + $0x1d0] ss:$8 sps:$4 sm:$0xff]  }
 0x2e4   : > { %v4017_v50 = vpop.f32.mrf.mxu0 }
 0x2e5   : > { %4203 = vmatpush2.bf16.msra.mxu0 %v6657_v42  ;;  %v6702_v42 = vld [vmem:[#allocation11 + $0x90] ss:$8 sps:$4 sm:$0xff]   ;;  %v6707_v50 = vld [vmem:[#allocation11 + $0x84] ss:$8 sps:$4 sm:$0xff]  }
 0x2e6   : > { %4690 = vmatprep.subr.bf16.mxu0 %v6662_v4  ;;  %v7625_v4 = vld [vmem:[#allocation10] sm:$0xf] }
 0x2e8   : > { %4205 = vmatmul.mubr.bf16.vlgmr.msra.gmra.mxu0 %v7586_v51  ;;  %v6677_v51 = vld [vmem:[#allocation11 + $0x24] ss:$8 sps:$4 sm:$0xff]  }
 0x2e9   : > { %4214 = vmatprep.mubr.bf16.mxu0 %v7590_v14  ;;  %4691 = vmatpush1.bf16.msra.mxu0 %v6660_v47  ;;  %v6708_v14 = vld [vmem:[#allocation11 + $0x170] ss:$8 sps:$4 sm:$0xff]   ;;  %v6743_v47 = vld [vmem:[#allocation11 + $0x1c4] ss:$8 sps:$4 sm:$0xff]  }
 0x2ea   : > { %4692 = vmatprep.subr.bf16.mxu0 %v6665_v0  ;;  %4742 = vmatpush1.bf16.msra.mxu1 %v6708_v14  ;;  %v3151_v0 = vrot.slane %v7625_v4, %v7484_v37 }
 0x2eb   : > { %4743 = vmatprep.subr.bf16.mxu1 %v6713_v15 }
 0x2ed   : > { %4693 = vmatpush1.bf16.msra.mxu0 %v6663_v6  ;;  %v6705_v6 = vld [vmem:[#allocation11 + $0x80] ss:$8 sps:$4 sm:$0xff]  }
 0x2ee   : > { %4694 = vmatprep.subr.bf16.mxu0 %v6668_v55  ;;  %4744 = vmatpush1.bf16.msra.mxu1 %v6711_v62  ;;  %v6741_v55 = vld [vmem:[#allocation11 + $0x1c0] ss:$8 sps:$4 sm:$0xff]  }
 0x2ef   : > { %4745 = vmatprep.subr.bf16.mxu1 %v6716_v16  ;;  %v4013_v16 = vadd.f32 %v7618_v38, %v3151_v0 }
 0x2f0   : > { %4215 = vmatmul.mubr.bf16.gmra.mxu0 %v7593_v17  ;;  %v6678_v17 = vld [vmem:[#allocation11 + $0x10] ss:$8 sps:$4 sm:$0xff]  }
 0x2f1   : > { %4695 = vmatpush1.bf16.msra.mxu0 %v6666_v61  ;;  %v3155_v61 = vrot.slane %v7625_v4, %v7487_v40 }
 0x2f2   : > { %4696 = vmatprep.subr.bf16.mxu0 %v6671_v49  ;;  %4746 = vmatpush1.bf16.msra.mxu1 %v6714_v12  ;;  %v4003_v49 = vadd.f32 %v7610_v5, %v3151_v0  ;;  %v6747_v5 = vld [vmem:[#allocation11 + $0x1a0] ss:$8 sps:$4 sm:$0xff]  }
 0x2f3   : > { %4747 = vmatprep.subr.bf16.mxu1 %v6719_v22 }
 0x2f5   : > { %4697 = vmatpush1.bf16.msra.mxu0 %v6669_v60 }
 0x2f6   : > { %4698 = vmatprep.subr.bf16.mxu0 %v6674_v2  ;;  %4748 = vmatpush1.bf16.msra.mxu1 %v6717_v56  ;;  %v6746_v2 = vld [vmem:[#allocation11 + $0x1b4] ss:$8 sps:$4 sm:$0xff]   ;;  %v4015_v56 = vadd.f32 %v7620_v46, %v3155_v61 }
 0x2f7   : > { %4749 = vmatprep.subr.bf16.mxu1 %v6722_v25  ;;  %v6753_v25 = vld [vmem:[#allocation11 + $0x180] ss:$8 sps:$4 sm:$0xff]  }
 0x2f9   : > { %4699 = vmatpush1.bf16.msra.mxu0 %v6672_v1  ;;  %v4005_v1 = vadd.f32 %v7612_v52, %v3155_v61 }
 0x2fa   : > { %4700 = vmatprep.subr.bf16.mxu0 %v6677_v51  ;;  %4750 = vmatpush1.bf16.msra.mxu1 %v6720_v20 }
 0x2fb   : > { %4751 = vmatprep.subr.bf16.mxu1 %v6725_v28 }
 0x2fd   : > { %4701 = vmatpush1.bf16.msra.mxu0 %v6675_v34  ;;  %v4007_v34 = vadd.f32 %v7614_v41, %v3151_v0  ;;  %v6750_v41 = vld [vmem:[#allocation11 + $0x190] ss:$8 sps:$4 sm:$0xff]  }
 0x2fe   : > { %4702 = vmatprep.subr.bf16.mxu0 %v6680_v8  ;;  %4752 = vmatpush1.bf16.msra.mxu1 %v6723_v26  ;;  %v6749_v8 = vld [vmem:[#allocation11 + $0x1a4] ss:$8 sps:$4 sm:$0xff]  }
 0x2ff   : > { %4753 = vmatprep.subr.bf16.mxu1 %v6728_v53 }
 0x301   : > { %4703 = vmatpush1.bf16.msra.mxu0 %v6678_v17  ;;  %v4009_v17 = vadd.f32 %v7616_v3, %v3155_v61  ;;  %v6755_v3 = vld [vmem:[#allocation11 + $0x184] ss:$8 sps:$4 sm:$0xff]  }
 0x302   : > { %4704 = vmatprep.subr.bf16.mxu0 %v6683_v11  ;;  %4754 = vmatpush1.bf16.msra.mxu1 %v6726_v29 }
 0x303   : > { %4755 = vmatprep.subr.bf16.mxu1 %v6731_v13 }
 0x305   : > { %4705 = vmatpush1.bf16.msra.mxu0 %v6681_v19  ;;  %v6752_v19 = vld [vmem:[#allocation11 + $0x194] ss:$8 sps:$4 sm:$0xff]  }
 0x306   : > { %4706 = vmatprep.subr.bf16.mxu0 %v6686_v63  ;;  %4756 = vmatpush1.bf16.msra.mxu1 %v6729_v36 }
 0x307   : > { %4757 = vmatprep.subr.bf16.mxu1 %v6734_v18 }
 0x309   : > { %4707 = vmatpush2.bf16.msra.mxu0 %v6684_v21 }
 0x30a   : > { %4708 = vmatprep.subr.bf16.mxu0 %v6689_v23  ;;  %4758 = vmatpush2.bf16.msra.mxu1 %v6732_v30 }
 0x30b   : > { %4759 = vmatprep.subr.bf16.mxu1 %v6737_v39 }
 0x30d   : > { %4709 = vmatpush2.bf16.msra.mxu0 %v6687_v58 }
 0x30e   : > { %4710 = vmatprep.subr.bf16.mxu0 %v6692_v27  ;;  %4760 = vmatpush2.bf16.msra.mxu1 %v6735_v44 }
 0x30f   : > { %4761 = vmatprep.subr.bf16.mxu1 %v6740_v45 }
 0x311   : > { %4711 = vmatpush2.bf16.msra.mxu0 %v6690_v31 }
 0x312   : > { %4712 = vmatprep.subr.bf16.mxu0 %v6695_v24  ;;  %4762 = vmatpush2.bf16.msra.mxu1 %v6738_v48 }
 0x313   : > { %4763 = vmatprep.subr.bf16.mxu1 %v6743_v47 }
 0x315   : > { %4713 = vmatpush2.bf16.msra.mxu0 %v6693_v57 }
 0x316   : > { %4714 = vmatprep.subr.bf16.mxu0 %v6698_v54  ;;  %4764 = vmatpush2.bf16.msra.mxu1 %v6741_v55 }
 0x317   : > { %4765 = vmatprep.subr.bf16.mxu1 %v6746_v2 }
 0x319   : > { %4715 = vmatpush2.bf16.msra.mxu0 %v6696_v35 }
 0x31a   : > { %4716 = vmatprep.subr.bf16.mxu0 %v6701_v33  ;;  %4766 = vmatpush2.bf16.msra.mxu1 %v6744_v7 }
 0x31b   : > { %4767 = vmatprep.subr.bf16.mxu1 %v6749_v8  ;;  %v3159_v8 = vrot.slane %v7625_v4, %v854_v10 }
 0x31d   : > { %4717 = vmatpush2.bf16.msra.mxu0 %v6699_v43 }
 0x31e   : > { %4718 = vmatprep.subr.bf16.mxu0 %v6704_v59  ;;  %4768 = vmatpush2.bf16.msra.mxu1 %v6747_v5 }
 0x31f   : > { %4769 = vmatprep.subr.bf16.mxu1 %v6752_v19 }
 0x321   : > { %4719 = vmatpush2.bf16.msra.mxu0 %v6702_v42 }
 0x322   : > { %4720 = vmatprep.subr.bf16.mxu0 %v6707_v50  ;;  %4770 = vmatpush2.bf16.msra.mxu1 %v6750_v41 }
 0x323   : > { %4771 = vmatprep.subr.bf16.mxu1 %v6755_v3 }
 0x325   : > { %4721 = vmatpush2.bf16.msra.mxu0 %v6705_v6 }
 0x326   : > { %4772 = vmatpush2.bf16.msra.mxu1 %v6753_v25 }
 0x327   : > { %v4053_v60 = vpop.f32.mrf.mxu1 }
 0x328   : > { %v4054_v51 = vadd.f32 %v4053_v60, %v4003_v49 }
 0x329   : > { %v4055_v14 = vpop.f32.mrf.mxu1 }
 0x32a   : > { %v4056_v62 = vadd.f32 %v4055_v14, %v4005_v1 }
 0x32b   : > { %v4057_v15 = vpop.f32.mrf.mxu1 }
 0x32c   : > { %v4058_v11 = vadd.f32 %v4057_v15, %v4007_v34 }
 0x32d   : > { %v4059_v12 = vpop.f32.mrf.mxu1 }
 0x32e   : > { %v4060_v22 = vadd.f32 %v4059_v12, %v4009_v17  ;;  %v3163_v17 = vrot.slane %v7625_v4, %v858_v9 }
 0x32f   : > { %v4063_v52 = vpop.f32.mrf.mxu1 }
 0x330   : > { %v4064_v63 = vadd.f32 %v4063_v52, %v4013_v16 }
 0x331   : > { %v4065_v21 = vpop.f32.mrf.mxu1 }
 0x332   : > { %v4066_v23 = vadd.f32 %v4065_v21, %v4015_v56 }
 0x333   : > { %v4067_v20 = vpop.f32.mrf.mxu1 }
 0x335   : > { %v4068_v58 = vpop.f32.mrf.mxu1 }
 0x367   : > { %v4155_v27 = vpop.f32.mrf.mxu1  ;;  %v4104_v38 = vpop.f32.mrf.mxu0 }
 0x368   : > { %v4105_v24 = vadd.f32 %v4104_v38, %v4054_v51 }
 0x369   : > { %v4157_v26 = vpop.f32.mrf.mxu1  ;;  %v4106_v28 = vpop.f32.mrf.mxu0 }
 0x36a   : > { %v4107_v53 = vadd.f32 %v4106_v28, %v4056_v62  ;;  %v4274_v13 = vmax.f32 %v4105_v24, 0.0  ;;  %v4158_v12 = vadd.f32 %v4157_v26, %v3163_v17 }
 0x36b   : > { %v4159_v31 = vpop.f32.mrf.mxu1  ;;  %v4108_v29 = vpop.f32.mrf.mxu0 }
 0x36c   : > { %v4109_v57 = vadd.f32 %v4108_v29, %v4058_v11  ;;  %v4275_v39 = vmax.f32 %v4107_v53, 0.0  ;;  %v4156_v11 = vadd.f32 %v4155_v27, %v3159_v8  ;;  %v4160_v52 = vadd.f32 %v4159_v31, %v3159_v8 }
 0x36d   : > { %v4161_v46 = vpop.f32.mrf.mxu1  ;;  %v4110_v54 = vpop.f32.mrf.mxu0 }
 0x36e   : > { %v4278_v18 = vmax.f32 %v4109_v57, 0.0  ;;  %v4111_v35 = vadd.f32 %v4110_v54, %v4060_v22 }
 0x36f   : > { %v4165_v36 = vpop.f32.mrf.mxu1  ;;  %v4114_v30 = vpop.f32.mrf.mxu0 }
 0x370   : > { %v4286_v43 = vpack.c.bf16 %v4278_v18, %v4274_v13  ;;  %v4279_v44 = vmax.f32 %v4111_v35, 0.0  ;;  %v4115_v50 = vadd.f32 %v4114_v30, %v4064_v63  ;;  %v4162_v63 = vadd.f32 %v4161_v46, %v3163_v17 }
 0x371   : > { %v4167_v33 = vpop.f32.mrf.mxu1  ;;  %v4116_v59 = vpop.f32.mrf.mxu0  ;;  %v4166_v10 = vadd.f32 %v4165_v36, %v3159_v8  ;;  %v4358_v8 = vld [vmem:[#allocation13] sm:$0x3] }
 0x372   : > { %v4287_v42 = vpack.c.bf16 %v4279_v44, %v4275_v39  ;;  %v4117_v48 = vadd.f32 %v4116_v59, %v4066_v23  ;;  %v4282_v49 = vmax.f32 %v4115_v50, 0.0  ;;  %v4168_v32 = vadd.f32 %v4167_v33, %v3163_v17  ;;  %v6756_v33 = vld [vmem:[#allocation14 + $0x78] sm:$0xff]   ;;  %v6759_v44 = vld [vmem:[#allocation14 + $0x30] sm:$0xff]   ;;  %v6760_v59 = vld [vmem:[#allocation14 + $0x68] sm:$0xff]  }
 0x373   : > { %v4169_v45 = vpop.f32.mrf.mxu1  ;;  %v4118_v47 = vpop.f32.mrf.mxu0  ;;  %v6757_v39 = vld [vmem:[#allocation14 + $0x38] sm:$0xff]   ;;  %5837 = vmatprep.subr.bf16.mxu0 %v6756_v33  ;;  %5865 = vmatprep.subr.bf16.mxu1 %v6756_v33  ;;  %v4363_v17 = vrot.slane %v4358_v8, %v7484_v37 }
 0x374   : > { %v4283_v6 = vmax.f32 %v4117_v48, 0.0  ;;  %4722 = vmatprep.mubr.bf16.mxu0 %v4287_v42  ;;  %v4290_v60 = vpack.c.bf16 %v4282_v49, %v4282_v49  ;;  %v6761_v45 = vld [vmem:[#allocation14 + $0x28] sm:$0xff]   ;;  %v6762_v42 = vld [vmem:[#allocation14 + $0x60] sm:$0xff]   ;;  %v6764_v50 = vld [vmem:[#allocation14 + $0x58] sm:$0xff]  }
 0x375   : > { %v4170_v0 = vpop.f32.mrf.mxu1  ;;  %v4119_v55 = vpop.f32.mrf.mxu0  ;;  %4723 = vmatmul.mubr.bf16.vlgmr.msra.gmra.mxu0 %v4286_v43  ;;  %v6758_v43 = vld [vmem:[#allocation14 + $0x70] sm:$0xff]   ;;  %v6763_v48 = vld [vmem:[#allocation14 + $0x20] sm:$0xff]   ;;  %v6765_v47 = vld [vmem:[#allocation14 + $0x18] sm:$0xff]  }
 0x376   : > { %v4291_v61 = vpack.c.bf16 %v4283_v6, %v4283_v6  ;;  %5838 = vmatpush3.bf16.msra.mxu0 %v6757_v39  ;;  %v6766_v0 = vld [vmem:[#allocation14 + $0x50] sm:$0xff]   ;;  %v6768_v55 = vld [vmem:[#allocation14 + $0x48] sm:$0xff]   ;;  %v6770_v49 = vld [vmem:[#allocation14 + $0x40] sm:$0xff]  }
 0x377   : > { %5839 = vmatprep.subr.bf16.mxu0 %v6758_v43  ;;  %v6767_v6 = vld [vmem:[#allocation14 + $0x10] sm:$0xff]  }
 0x378   : > { %4732 = vmatprep.mubr.bf16.mxu0 %v4291_v61  ;;  %v6769_v61 = vld [vmem:[#allocation14 + $0x8] sm:$0xff]  }
 0x37a   : > { %5840 = vmatpush3.bf16.msra.mxu0 %v6759_v44 }
 0x37b   : > { %5841 = vmatprep.subr.bf16.mxu0 %v6760_v59 }
 0x37d   : > { %4733 = vmatmul.mubr.bf16.gmra.mxu0 %v4290_v60  ;;  %v6771_v60 = vld [vmem:[#allocation14] sm:$0xff]  }
 0x37e   : > { %5842 = vmatpush3.bf16.msra.mxu0 %v6761_v45 }
 0x37f   : > { %5843 = vmatprep.subr.bf16.mxu0 %v6762_v42 }
 0x382   : > { %5844 = vmatpush3.bf16.msra.mxu0 %v6763_v48 }
 0x383   : > { %5845 = vmatprep.subr.bf16.mxu0 %v6764_v50 }
 0x386   : > { %5846 = vmatpush3.bf16.msra.mxu0 %v6765_v47 }
 0x387   : > { %v4257_v2 = vpop.f32.mrf.mxu1  ;;  %5847 = vmatprep.subr.bf16.mxu0 %v6766_v0 }
 0x389   : > { %v4259_v1 = vpop.f32.mrf.mxu1 }
 0x38a   : > { %5848 = vmatpush3.bf16.msra.mxu0 %v6767_v6 }
 0x38b   : > { %v4261_v51 = vpop.f32.mrf.mxu1  ;;  %5849 = vmatprep.subr.bf16.mxu0 %v6768_v55 }
 0x38d   : > { %v4263_v7 = vpop.f32.mrf.mxu1 }
 0x38e   : > { %5850 = vmatpush3.bf16.msra.mxu0 %v6769_v61 }
 0x38f   : > { %v4267_v14 = vpop.f32.mrf.mxu1  ;;  %5851 = vmatprep.subr.bf16.mxu0 %v6770_v49 }
 0x391   : > { %v4269_v34 = vpop.f32.mrf.mxu1 }
 0x392   : > { %5852 = vmatpush3.bf16.msra.mxu0 %v6771_v60 }
 0x393   : > { %v4271_v62 = vpop.f32.mrf.mxu1 }
 0x395   : > { %v4272_v15 = vpop.f32.mrf.mxu1 }
 0x3a8   : > { %v4206_v5 = vpop.f32.mrf.mxu0 }
 0x3a9   : > { %v4207_v16 = vadd.f32 %v4206_v5, %v4156_v11  ;;  %v4367_v11 = vrot.slane %v4358_v8, %v7487_v40 }
 0x3aa   : > { %v4208_v22 = vpop.f32.mrf.mxu0 }
 0x3ab   : > { %v4209_v19 = vadd.f32 %v4208_v22, %v4158_v12  ;;  %v4258_v41 = vadd.f32 %v4257_v2, %v4207_v16 }
 0x3ac   : > { %v4210_v56 = vpop.f32.mrf.mxu0 }
 0x3ad   : > { %v4211_v21 = vadd.f32 %v4210_v56, %v4160_v52  ;;  %v4260_v20 = vadd.f32 %v4259_v1, %v4209_v19  ;;  %v4276_v38 = vmax.f32 %v4258_v41, 0.0 }
 0x3ae   : > { %v4212_v23 = vpop.f32.mrf.mxu0 }
 0x3af   : > { %v4262_v3 = vadd.f32 %v4261_v51, %v4211_v21  ;;  %v4213_v25 = vadd.f32 %v4212_v23, %v4162_v63  ;;  %v4277_v28 = vmax.f32 %v4260_v20, 0.0 }
 0x3b0   : > { %v4216_v58 = vpop.f32.mrf.mxu0 }
 0x3b1   : > { %v4280_v9 = vmax.f32 %v4262_v3, 0.0  ;;  %v4264_v4 = vadd.f32 %v4263_v7, %v4213_v25  ;;  %v4217_v27 = vadd.f32 %v4216_v58, %v4166_v10 }
 0x3b2   : > { %v4218_v26 = vpop.f32.mrf.mxu0 }
 0x3b3   : > { %v4288_v24 = vpack.c.bf16 %v4280_v9, %v4276_v38  ;;  %v4281_v31 = vmax.f32 %v4264_v4, 0.0  ;;  %v4219_v29 = vadd.f32 %v4218_v26, %v4168_v32  ;;  %v4268_v54 = vadd.f32 %v4267_v14, %v4217_v27 }
 0x3b4   : > { %v4220_v53 = vpop.f32.mrf.mxu0 }
 0x3b5   : > { %v4270_v46 = vadd.f32 %v4269_v34, %v4219_v29  ;;  %v4289_v57 = vpack.c.bf16 %v4281_v31, %v4277_v28  ;;  %v4284_v35 = vmax.f32 %v4268_v54, 0.0  ;;  %v5718_v54 = vld [vmem:[#allocation16] ss:$0 sm:$0xff] }
 0x3b6   : > { %v4221_v13 = vpop.f32.mrf.mxu0 }
 0x3b7   : > { %v4285_v18 = vmax.f32 %v4270_v46, 0.0  ;;  %4773 = vmatprep.mubr.bf16.mxu1 %v4289_v57  ;;  %v4292_v30 = vpack.c.bf16 %v4284_v35, %v4284_v35 }
 0x3b8   : > { %4774 = vmatmul.mubr.bf16.vlgmr.msra.gmra.mxu1 %v4288_v24 }
 0x3b9   : > { %v4293_v36 = vpack.c.bf16 %v4285_v18, %v4285_v18  ;;  %5873 = vmatpush3.bf16.msra.mxu1 %v6757_v39 }
 0x3ba   : > { %5866 = vmatprep.subr.bf16.mxu1 %v6758_v43 }
 0x3bb   : > { %4783 = vmatprep.mubr.bf16.mxu1 %v4293_v36 }
 0x3bd   : > { %5874 = vmatpush3.bf16.msra.mxu1 %v6759_v44 }
 0x3be   : > { %5867 = vmatprep.subr.bf16.mxu1 %v6760_v59 }
 0x3c0   : > { %4784 = vmatmul.mubr.bf16.gmra.mxu1 %v4292_v30 }
 0x3c1   : > { %5875 = vmatpush3.bf16.msra.mxu1 %v6761_v45 }
 0x3c2   : > { %5868 = vmatprep.subr.bf16.mxu1 %v6762_v42 }
 0x3c5   : > { %5876 = vmatpush3.bf16.msra.mxu1 %v6763_v48 }
 0x3c6   : > { %5869 = vmatprep.subr.bf16.mxu1 %v6764_v50 }
 0x3c9   : > { %5877 = vmatpush3.bf16.msra.mxu1 %v6765_v47 }
 0x3ca   : > { %5870 = vmatprep.subr.bf16.mxu1 %v6766_v0 }
 0x3cd   : > { %5878 = vmatpush3.bf16.msra.mxu1 %v6767_v6 }
 0x3ce   : > { %5871 = vmatprep.subr.bf16.mxu1 %v6768_v55 }
 0x3d1   : > { %5879 = vmatpush3.bf16.msra.mxu1 %v6769_v61 }
 0x3d2   : > { %5872 = vmatprep.subr.bf16.mxu1 %v6770_v49 }
 0x3d5   : > { %5880 = vmatpush3.bf16.msra.mxu1 %v6771_v60 }
 0x435   : > { %v4724_v2 = vpop.f32.mrf.mxu0 }
 0x436   : > { %v4725_v12 = vadd.f32 %v4724_v2, %v4363_v17 }
 0x437   : > { %v4726_v1 = vpop.f32.mrf.mxu0 }
 0x438   : > { %v4727_v22 = vadd.f32 %v4726_v1, %v4367_v11 }
 0x439   : > { %v4728_v51 = vpop.f32.mrf.mxu0 }
 0x43a   : > { %v4729_v52 = vadd.f32 %v4728_v51, %v4363_v17 }
 0x43b   : > { %v4730_v7 = vpop.f32.mrf.mxu0 }
 0x43c   : > { %v4731_v63 = vadd.f32 %v4730_v7, %v4367_v11 }
 0x43d   : > { %v4734_v14 = vpop.f32.mrf.mxu0 }
 0x43e   : > { %v4735_v20 = vadd.f32 %v4734_v14, %v4363_v17 }
 0x43f   : > { %v4736_v34 = vpop.f32.mrf.mxu0 }
 0x440   : > { %v4737_v58 = vadd.f32 %v4736_v34, %v4367_v11 }
 0x441   : > { %v4738_v62 = vpop.f32.mrf.mxu0 }
 0x443   : > { %v4739_v15 = vpop.f32.mrf.mxu0 }
 0x478   : > { %v4775_v5 = vpop.f32.mrf.mxu1 }
 0x479   : > { %v4776_v19 = vadd.f32 %v4775_v5, %v4725_v12 }
 0x47a   : > { %v4777_v16 = vpop.f32.mrf.mxu1 }
 0x47b   : > { %v4778_v41 = vadd.f32 %v4777_v16, %v4727_v22  ;;  %v4792_v3 = vmax.f32 %v4776_v19, 0.0 }
 0x47c   : > { %v4779_v56 = vpop.f32.mrf.mxu1 }
 0x47d   : > { %v4780_v21 = vadd.f32 %v4779_v56, %v4729_v52  ;;  %v4793_v37 = vmax.f32 %v4778_v41, 0.0 }
 0x47e   : > { %v4781_v23 = vpop.f32.mrf.mxu1 }
 0x47f   : > { %v4794_v25 = vmax.f32 %v4780_v21, 0.0  ;;  %v4782_v10 = vadd.f32 %v4781_v23, %v4731_v63 }
 0x480   : > { %v4785_v32 = vpop.f32.mrf.mxu1 }
 0x481   : > { %v4798_v38 = vpack.c.bf16 %v4794_v25, %v4792_v3  ;;  %v4795_v40 = vmax.f32 %v4782_v10, 0.0  ;;  %v4786_v9 = vadd.f32 %v4785_v32, %v4735_v20 }
 0x482   : > { %v4787_v4 = vpop.f32.mrf.mxu1 }
 0x483   : > { %v4799_v27 = vpack.c.bf16 %v4795_v40, %v4793_v37  ;;  %v4788_v26 = vadd.f32 %v4787_v4, %v4737_v58  ;;  %v4796_v28 = vmax.f32 %v4786_v9, 0.0 }
 0x484   : > { %v4789_v24 = vpop.f32.mrf.mxu1 }
 0x485   : > { %v4797_v31 = vmax.f32 %v4788_v26, 0.0  ;;  %4969 = vmatprep.mubr.bf16.mxu0 %v4799_v27  ;;  %v4800_v46 = vpack.c.bf16 %v4796_v28, %v4796_v28 }
 0x486   : > { %v4790_v29 = vpop.f32.mrf.mxu1  ;;  %4970 = vmatmul.mubr.bf16.vlgmr.msra.gmra.mxu0 %v4798_v38 }
 0x487   : > { %v4801_v53 = vpack.c.bf16 %v4797_v31, %v4797_v31 }
 0x489   : > { %4977 = vmatprep.mubr.bf16.mxu1 %v4801_v53 }
 0x48a   : > { %4978 = vmatmul.mubr.bf16.vlgmr.msra.gmra.mxu1 %v4800_v46 }
 0x546   : > { %v5853_v57 = vpop.f32.mrf.mxu0 }
 0x548   : > { %v5854_v13 = vpop.f32.mrf.mxu0 }
 0x549   : > { %v5855_v18 = vadd.f32 %v5854_v13, %v5853_v57 }
 0x54a   : > { %v5856_v36 = vpop.f32.mrf.mxu0  ;;  %v5859_v35 = vpop.f32.mrf.mxu1 }
 0x54b   : > { %v4972_v30 = vadd.f32 %v5855_v18, %v5718_v54 }
 0x54c   : > { %v5857_v33 = vpop.f32.mrf.mxu0  ;;  %v5860_v39 = vpop.f32.mrf.mxu1 }
 0x54d   : > { %v4985_v43 = vsub.f32 0.0, %v4972_v30  ;;  %v5858_v44 = vadd.f32 %v5857_v33, %v5856_v36  ;;  %v5861_v59 = vadd.f32 %v5860_v39, %v5859_v35 }
 0x54e   : > { %v5862_v45 = vpop.f32.mrf.mxu1 }
 0x54f   : > { %v4988_v42 = vmul.f32 1.442695, %v4985_v43  ;;  %v4975_v48 = vadd.f32 %v5858_v44, %v5718_v54  ;;  %v4980_v50 = vadd.f32 %v5861_v59, %v5718_v54 }
 0x550   : > { %v5863_v47 = vpop.f32.mrf.mxu1 }
 0x551   : > { %6772 = vpow2.f32 %v4988_v42  ;;  %v4986_v0 = vsub.f32 0.0, %v4975_v48  ;;  %v4987_v6 = vsub.f32 0.0, %v4980_v50 }
 0x553   : > { %v4990_v55 = vmul.f32 1.442695, %v4986_v0  ;;  %v4992_v61 = vmul.f32 1.442695, %v4987_v6 }
 0x555   : > { %6774 = vpow2.f32 %v4990_v55 }
 0x556   : > { %6776 = vpow2.f32 %v4992_v61 }
 0x55e   : > { %v6773_v49 = vpop.eup %6772 }
 0x55f   : > { %v4994_v60 = vadd.f32 1.0, %v6773_v49 }
 0x561   : > { %6778 = vrcp.f32 %v4994_v60 }
 0x562   : > { %v6775_v2 = vpop.eup %6774 }
 0x563   : > { %v6777_v1 = vpop.eup %6776  ;;  %v4995_v51 = vadd.f32 1.0, %v6775_v2 }
 0x564   : > { %v4996_v7 = vadd.f32 1.0, %v6777_v1 }
 0x565   : > { %6780 = vrcp.f32 %v4995_v51 }
 0x566   : > { %6782 = vrcp.f32 %v4996_v7 }
 0x56e   : > { %v6779_v14 = vpop.eup %6778 }
 0x572   : > { %v6781_v34 = vpop.eup %6780 }
 0x573   : > { %v6783_v62 = vpop.eup %6782  ;;  %v5750_v15 = vpack.c.bf16 %v6781_v34, %v6779_v14 }
 0x574   : > { %v5745_v8 = vpack.c.bf16 %v6783_v62, %v6783_v62 }
 0x575   : > { %5751 = vst [vmem:[%s459_s20] sm:$0xff] %v5750_v15  }
 0x576   : > { %5015 = vst [vmem:[%s459_s20 + $0x8] sm:$0xf] %v5745_v8 }
 0x577   : > { %7034 = shalt.err (!%p7031_p10)
}
 0x578   : > { %s7035_s18 = scalar_lea.hbm %s7650_s24, 192  ;;  %s7039_s16 = scalar_lea.hbm %s7704_s9, 384 }
 0x579   : > { %p7036_p11 = scmp.ne.s32.totalorder %s7650_s24, %s7035_s18  ;;  %p7040_p4 = scmp.lt.s32.totalorder %s7650_s24, %s7704_s9 }
 0x57a   : > { %p7041_p0 = scmp.lt.s32.totalorder %s7039_s16, %s7035_s18 }
 0x57b   : > { %p7037_p1 = pnand %p7036_p11, %p7735_p8 }
 0x57c   : > { %p7042_p6 = por %p7041_p0, %p7040_p4 }
 0x57d   : > { %p7038_p3 = pneg %p7037_p1 }
 0x57f   : > { %p7043_p5 = pnand %p7042_p6, %p7038_p3 }
 0x581   : > { %7046 = shalt.err (!%p7043_p5)
}
 0x582   : > { %s7123_s22 = smov 64   ;;  %s7124_s17 = smov 4  }
 0x583   : > { %5918 = dma.vmem_to_hbm [thread:$0]  (%p7735_p8), %s7652_s27, 192, %s7650_s24, %s5017_s15, %s7123_s22, %s7123_s22, %s7124_s17  }
 0x584 PF: > { %s5045_s21 = sand.u32 1, %s7089_s30   ;;  %p7736_p12 = scmp.ne.s32.totalorder %s7722_s26, 0 }
 0x585   : > { %p7737_p13 = scmp.ge.s32.totalorder %s7101_s12, 2  ;;  %s5046_s2 = scalar_lea.sflag [#allocation4], %s5045_s21 }
 0x587   : > { %p5950_p7 = pnand %p7737_p13, %p7736_p12 }
 0x589   : > { %p5951_p2 = pneg %p5950_p7 }
 0x58b   : > { %7084 = dma.done.wait (%p5951_p2), %s5046_s2, 192  }
 0x58c   : > { %7086 = vsyncadd (%p5951_p2), %s5046_s2, 4294967104  ;;  %p26_p9 = scmp.ge.s32.totalorder %s7290_s19, 4   ;;  %s7738_s30 = smov %s7093_s10 }
 0x58d   : > { %s7739_s10 = smov %s7097_s11  ;;  %s7740_s11 = smov %s7301_s14 }
 0x58e   : > { %s7741_s12 = smov %s7290_s19  ;;  %28 = sbr.rel (!%p26_p9) target bundleno = 13 (0xd), region = 133 }
 0x593   :  { %5051 = vsyncpa [#allocation3], 1 }
 0x594   :  { %5053 = vsyncpa [#allocation3 + $0x1], 1 }
 0x595   :  { %5054 = vsyncpa [#allocation6], 1 }
 0x596   :  { %5055 = vsyncpa [#allocation9], 1 }
 0x597   :  { %5056 = vsyncpa [#allocation12], 1 }
 0x598   :  { %5057 = vsyncpa [#allocation15], 1 }
 0x599   :  { %5058 = vsyncpa [#allocation4], 1 }
 0x59a   :  { %5060 = vsyncpa [#allocation4 + $0x1], 1 }

</bundles_post_ra>
